<compile_context>
chip_gen: v6e
topology: v6e:2x2x1
jax: 0.10.0
libtpu: 0.0.40
codegen_flags: <defaults>
</compile_context>

<pallas_src>
import jax
import jax.numpy as jnp
from jax import lax
from jax.experimental import pallas as pl
from jax.experimental.pallas import tpu as pltpu

# ----------------------------- configuration -------------------------------
B_TOTAL = 256    # total rows processed per call (batched to amortise launch cost)
TM = 128         # rows per grid step (one row tile)
IN_DIM = 32      # input_dim
HID = 32         # hidden_dim
LAT = 8          # latent_dim
N_LAYERS = 1     # n_layers (hidden blocks)
N_STATES = 4     # quantiser num_on_states (n_states=1 -> one state per group)
BN_EPS = 1e-5
OUT_W = 128      # lane-dense packed output width (one (8,128) tile)

assert HID >= 2 * LAT and HID >= N_STATES and HID >= 1
assert 4 * LAT + N_STATES + 3 <= OUT_W
assert B_TOTAL % TM == 0 and TM % 8 == 0

# packed-output column layout
_C_MU = 0
_C_SIG = LAT
_C_MEAN = 2 * LAT
_C_SAMP = 3 * LAT
_C_DISTS = 4 * LAT
_C_QDIST = 4 * LAT + N_STATES
_C_LENC = _C_QDIST + 1
_C_LREF = _C_QDIST + 2
_N_PAYLOAD = 4 * LAT + N_STATES + 3


# ----------------------- parameter-slab row layout --------------------------
def _slab_layout():
    off, r = {}, 0

    def add(name, nrows):
        nonlocal r
        off[name] = r
        r += -(-nrows // 8) * 8          # round each section up to 8 sublanes

    add("w_in", IN_DIM)                  # (IN_DIM, HID)
    add("aux_in", 3)                     # bias / bn_scale / bn_shift (3, HID)
    for l in range(N_LAYERS):
        add(f"w_hid{l}", HID)            # (HID, HID)
        add(f"aux_hid{l}", 3)
    add("w_head", HID)                   # (HID, 2*LAT) in cols [:2*LAT]
    add("b_head", 1)                     # (1, 2*LAT)
    add("on_mu", N_STATES)               # (S, LAT)
    add("on_sig", N_STATES)              # (S, LAT)
    add("on_mu_inv", N_STATES)           # on_mu * inv2s2
    add("inv2s2", N_STATES)              # 0.5 / on_sig^2
    add("const", 1)                      # per-state constant in cols [:S]
    return off, r


_SLAB_OFF, _SLAB_ROWS = _slab_layout()


# ------------------------------ fused kernel --------------------------------
def _encoder_w_kernel(x_ref, p_ref, eps_ref, out_ref):
    f32 = jnp.float32
    O = _SLAB_OFF

    def block(h, din, w_row, aux_row):
        # Linear -> ReLU -> Dropout(eval: identity) -> BatchNorm1d(eval, folded)
        # TODO(synk): Dropout / BatchNorm1d are eval-mode only (identity /
        # folded per-feature scale+shift); training-mode parity is out of scope.
        w = p_ref[w_row:w_row + din, :]            # (din, HID)
        aux = p_ref[aux_row:aux_row + 3, :]        # (3, HID)
        y = jnp.dot(h, w, preferred_element_type=f32) + aux[0:1, :]
        y = jnp.maximum(y, 0.0)
        return y * aux[1:2, :] + aux[2:3, :]

    h = block(x_ref[...], IN_DIM, O["w_in"], O["aux_in"])
    # TODO(synk): static unroll is fine at N_LAYERS=1; switch to lax.fori_loop
    # with dynamic slab row indexing if N_LAYERS grows large.
    for l in range(N_LAYERS):
        h = block(h, HID, O[f"w_hid{l}"], O[f"aux_hid{l}"])

    # fused mu/sigma heads: one (TM, HID)x(HID, HID-padded) matmul, slice 2*LAT
    heads = jnp.dot(h, p_ref[O["w_head"]:O["w_head"] + HID, :],
                    preferred_element_type=f32)
    heads = heads[:, :2 * LAT] + p_ref[O["b_head"]:O["b_head"] + 1, :2 * LAT]
    mu = heads[:, :LAT]
    log_sigma = heads[:, LAT:]
    sigma = jnp.exp(log_sigma)

    # ---------------- quantiser (softmin, n_states=1) ----------------------
    # TODO(synk): the reference's dist_metric / KL are not defined in the spec;
    # diagonal-Gaussian KL is used for both.  The quantiser re-exponentiates
    # its 2nd argument, so distances use q_sig = exp(sigma); log(q_sig)==sigma.
    # TODO(synk): the literal reference softmins the final dist over dim=0 (the
    # batch) — almost certainly a bug; the per-row softmin over codebook states
    # is implemented here.
    on_mu = p_ref[O["on_mu"]:O["on_mu"] + N_STATES, :LAT]           # (S, LAT)
    on_sig = p_ref[O["on_sig"]:O["on_sig"] + N_STATES, :LAT]        # (S, LAT)
    on_mu_inv = p_ref[O["on_mu_inv"]:O["on_mu_inv"] + N_STATES, :LAT]
    inv2s2 = p_ref[O["inv2s2"]:O["inv2s2"] + N_STATES, :LAT]
    const_s = p_ref[O["const"]:O["const"] + 1, :N_STATES]           # (1, S)

    dn = (((1,), (1,)), ((), ()))       # contract last dims: (TM,LAT)x(S,LAT)->(TM,S)
    # TODO(synk): exp(2*exp(log_sigma)) can overflow f32 for log_sigma >~ 3.8;
    # inherited from the reference's double exponentiation.
    q2 = jnp.exp(2.0 * sigma)                                       # q_sig**2
    sum_log_q = jnp.sum(sigma, axis=-1, keepdims=True)              # (TM, 1)
    quad = lax.dot_general(q2 + mu * mu, inv2s2, dn,
                           preferred_element_type=f32)              # (TM, S)
    cross = lax.dot_general(mu, on_mu_inv, dn,
                            preferred_element_type=f32)             # (TM, S)
    dists = const_s - sum_log_q + quad - 2.0 * cross                # (TM, S)

    # softmin over codebook states (numerically stabilised)
    m = jnp.min(dists, axis=-1, keepdims=True)
    e = jnp.exp(m - dists)
    p_soft = e / jnp.sum(e, axis=-1, keepdims=True)                 # (TM, S)
    quant_mu = jnp.dot(p_soft, on_mu, preferred_element_type=f32)   # (TM, LAT)
    quant_sig = jnp.dot(p_soft, on_sig, preferred_element_type=f32) # (TM, LAT)
    quant_dist = jnp.sum(p_soft * dists, axis=-1, keepdims=True)    # (TM, 1)

    # reparameterised sample (samples=1 -> mean_sample == the sample)
    sample = eps_ref[...] * quant_sig + quant_mu

    # KL(N(quant_mu, quant_sig) || N(mu, sigma)) per row, summed over latents.
    # TODO(synk): loss_enc / loss_ref differ only by .detach() placement, which
    # does not change forward values; no stop_gradient split is expressed here.
    diff = quant_mu - mu
    kl = jnp.sum(log_sigma - jnp.log(quant_sig)
                 + (quant_sig * quant_sig + diff * diff) / (2.0 * sigma * sigma)
                 - 0.5, axis=-1, keepdims=True)                     # (TM, 1)

    # -------- assemble the whole row in registers, ONE full-tile store ------
    pad = jnp.zeros((TM, OUT_W - _N_PAYLOAD), f32)
    out_ref[...] = jnp.concatenate(
        [mu, sigma, sample, sample, dists, quant_dist, kl, kl, pad], axis=-1)


# --------------------------- parameter init ---------------------------------
def _linear_init(key, din, dout):
    k1, k2 = jax.random.split(key)
    bound = 1.0 / (din ** 0.5)                        # PyTorch nn.Linear default
    w = jax.random.uniform(k1, (din, dout), jnp.float32, -bound, bound)
    b = jax.random.uniform(k2, (dout,), jnp.float32, -bound, bound)
    return w, b


def _bn_eval_fold(dim):
    # BatchNorm1d defaults: weight=1, bias=0, running_mean=0, running_var=1
    scale = jnp.full((dim,), 1.0 / (1.0 + BN_EPS) ** 0.5, jnp.float32)
    shift = jnp.zeros((dim,), jnp.float32)
    return scale, shift


def init_params(key):
    keys = jax.random.split(key, 8 + N_LAYERS)
    ki = iter(keys)

    slab = jnp.zeros((_SLAB_ROWS, HID), jnp.float32)

    def place(slab, name, arr):
        r = _SLAB_OFF[name]
        return slab.at[r:r + arr.shape[0], :arr.shape[1]].set(arr.astype(jnp.float32))

    w_in, b_in = _linear_init(next(ki), IN_DIM, HID)
    s_in, t_in = _bn_eval_fold(HID)
    slab = place(slab, "w_in", w_in)
    slab = place(slab, "aux_in", jnp.stack([b_in, s_in, t_in]))

    for l in range(N_LAYERS):
        w, b = _linear_init(next(ki), HID, HID)
        s, t = _bn_eval_fold(HID)
        slab = place(slab, f"w_hid{l}", w)
        slab = place(slab, f"aux_hid{l}", jnp.stack([b, s, t]))

    w_mu, b_mu = _linear_init(next(ki), HID, LAT)
    w_sig, b_sig = _linear_init(next(ki), HID, LAT)
    slab = place(slab, "w_head", jnp.concatenate([w_mu, w_sig], axis=1))
    slab = place(slab, "b_head", jnp.concatenate([b_mu, b_sig]).reshape(1, 2 * LAT))

    # quantiser on_states default init: mus = randn*3, sigs = exp(randn*2)*3
    on_mu = jax.random.normal(next(ki), (N_STATES, LAT), jnp.float32) * 3.0
    on_sig = jnp.exp(jax.random.normal(next(ki), (N_STATES, LAT), jnp.float32) * 2.0) * 3.0

    # codebook-only quantities hoisted out of the kernel
    inv2s2 = 0.5 / (on_sig * on_sig)
    on_mu_inv = on_mu * inv2s2
    const_s = (jnp.sum(jnp.log(on_sig), axis=-1)
               + jnp.sum(on_mu * on_mu * inv2s2, axis=-1)
               - 0.5 * LAT).reshape(1, N_STATES)

    slab = place(slab, "on_mu", on_mu)
    slab = place(slab, "on_sig", on_sig)
    slab = place(slab, "on_mu_inv", on_mu_inv)
    slab = place(slab, "inv2s2", inv2s2)
    slab = place(slab, "const", const_s)
    return slab


# ------------------------------ forward --------------------------------------
@jax.jit
def encoder_w_forward(param_slab, x, eps):
    """Returns the packed (B, OUT_W) slab; unpack at the final consumer."""
    bt = x.shape[0]
    return pl.pallas_call(
        _encoder_w_kernel,
        out_shape=jax.ShapeDtypeStruct((bt, OUT_W), jnp.float32),
        grid_spec=pltpu.PrefetchScalarGridSpec(
            num_scalar_prefetch=0,
            grid=(bt // TM,),
            in_specs=[pl.BlockSpec((TM, IN_DIM), lambda i: (i, 0)),
                      pl.BlockSpec((_SLAB_ROWS, HID), lambda i: (0, 0)),  # resident
                      pl.BlockSpec((TM, LAT), lambda i: (i, 0))],
            out_specs=pl.BlockSpec((TM, OUT_W), lambda i: (i, 0))),
        compiler_params=pltpu.CompilerParams(
            dimension_semantics=("parallel",)),     # 2 TCs on v7x; no-op on v5e/v6e
    )(x, param_slab, eps)


def unpack_outputs(packed):
    """Slice the packed slab into the reference 8-tuple (do this at the consumer)."""
    mu = packed[:, _C_MU:_C_MU + LAT]
    sigma = packed[:, _C_SIG:_C_SIG + LAT]
    mean_sample = packed[:, _C_MEAN:_C_MEAN + LAT]
    samples = [packed[:, _C_SAMP:_C_SAMP + LAT]]                  # samples=1
    dists = packed[:, _C_DISTS:_C_DISTS + N_STATES]
    quant_dist = packed[:, _C_QDIST]
    loss_enc = packed[:, _C_LENC]
    loss_ref = packed[:, _C_LREF]
    return mu, sigma, mean_sample, samples, quant_dist, dists, loss_enc, loss_ref


# -------------------------------- main ---------------------------------------
if __name__ == "__main__":
    key = jax.random.PRNGKey(0)
    kp, kx, ke = jax.random.split(key, 3)
    param_slab = init_params(kp)
    x = jax.random.normal(kx, (B_TOTAL, IN_DIM), jnp.float32)
    eps = jax.random.normal(ke, (B_TOTAL, LAT), jnp.float32)   # torch.randn_like noise

    packed = encoder_w_forward(param_slab, x, eps)
    jax.block_until_ready(packed)

    mu, sigma, mean_sample, samples, quant_dist, dists, loss_enc, loss_ref = \
        unpack_outputs(packed)
    assert packed.shape == (B_TOTAL, OUT_W)
    assert mu.shape == (B_TOTAL, LAT) and sigma.shape == (B_TOTAL, LAT)
    assert mean_sample.shape == (B_TOTAL, LAT) and samples[0].shape == (B_TOTAL, LAT)
    assert dists.shape == (B_TOTAL, N_STATES) and quant_dist.shape == (B_TOTAL,)
    assert loss_enc.shape == (B_TOTAL,) and loss_ref.shape == (B_TOTAL,)
    assert bool(jnp.all(jnp.isfinite(mu))) and bool(jnp.all(jnp.isfinite(sigma)))
    assert bool(jnp.all(jnp.isfinite(dists))) and bool(jnp.all(jnp.isfinite(loss_enc)))
    assert bool(jnp.all(jnp.isfinite(quant_dist))) and bool(jnp.all(jnp.isfinite(loss_ref)))
    print("KERNEL_OK")
</pallas_src>

<mosaic_0001>
module attributes {stable_mosaic.version = 11 : i64} {
  func.func @_encoder_w_kernel(%arg0: i32, %arg1: memref<128x32xf32, #tpu.memory_space<vmem>>, %arg2: memref<160x32xf32, #tpu.memory_space<vmem>>, %arg3: memref<128x8xf32, #tpu.memory_space<vmem>>, %arg4: memref<128x128xf32, #tpu.memory_space<vmem>>) attributes {dimension_semantics = [#tpu.dimension_semantics<parallel>], iteration_bounds = array<i64: 2>, scalar_prefetch = 0 : i64, scratch_operands = 0 : i64, tpu.core_type = #tpu.core_type<tc>, window_params = [{transform_indices = @transform_0, window_bounds = array<i64: 128, 32>}, {pipeline_mode = #tpu.pipeline_mode<synchronous>, transform_indices = @transform_1, window_bounds = array<i64: 160, 32>}, {transform_indices = @transform_2, window_bounds = array<i64: 128, 8>}, {transform_indices = @transform_3, window_bounds = array<i64: 128, 128>}]} {
    %c0 = arith.constant 0 : index
    %c0_0 = arith.constant 0 : index
    %0 = vector.load %arg1[%c0, %c0_0] : memref<128x32xf32, #tpu.memory_space<vmem>>, vector<128x32xf32>
    %c0_1 = arith.constant 0 : index
    %c0_2 = arith.constant 0 : index
    %1 = vector.load %arg2[%c0_1, %c0_2] : memref<160x32xf32, #tpu.memory_space<vmem>>, vector<32x32xf32>
    %c32 = arith.constant 32 : index
    %c0_3 = arith.constant 0 : index
    %2 = vector.load %arg2[%c32, %c0_3] : memref<160x32xf32, #tpu.memory_space<vmem>>, vector<3x32xf32>
    %cst = arith.constant dense<0.000000e+00> : vector<128x32xf32>
    %3 = tpu.matmul %0, %1, %cst {dimension_numbers = #tpu.dot_dimension_numbers<[1], [0], [0], [1], [0, 0, 1, 1], [], []>} : vector<128x32xf32>, vector<32x32xf32>, vector<128x32xf32> -> vector<128x32xf32>
    %4 = vector.extract_strided_slice %2 {offsets = [0, 0], sizes = [1, 32], strides = [1, 1]} : vector<3x32xf32> to vector<1x32xf32>
    %5 = vector.broadcast %4 : vector<1x32xf32> to vector<128x32xf32>
    %6 = arith.addf %3, %5 : vector<128x32xf32>
    %cst_4 = arith.constant 0.000000e+00 : f32
    %7 = vector.broadcast %cst_4 : f32 to vector<128x32xf32>
    %8 = arith.maximumf %6, %7 : vector<128x32xf32>
    %9 = vector.extract_strided_slice %2 {offsets = [1, 0], sizes = [1, 32], strides = [1, 1]} : vector<3x32xf32> to vector<1x32xf32>
    %10 = vector.broadcast %9 : vector<1x32xf32> to vector<128x32xf32>
    %11 = arith.mulf %8, %10 : vector<128x32xf32>
    %12 = vector.extract_strided_slice %2 {offsets = [2, 0], sizes = [1, 32], strides = [1, 1]} : vector<3x32xf32> to vector<1x32xf32>
    %13 = vector.broadcast %12 : vector<1x32xf32> to vector<128x32xf32>
    %14 = arith.addf %11, %13 : vector<128x32xf32>
    %c40 = arith.constant 40 : index
    %c0_5 = arith.constant 0 : index
    %15 = vector.load %arg2[%c40, %c0_5] : memref<160x32xf32, #tpu.memory_space<vmem>>, vector<32x32xf32>
    %c72 = arith.constant 72 : index
    %c0_6 = arith.constant 0 : index
    %16 = vector.load %arg2[%c72, %c0_6] : memref<160x32xf32, #tpu.memory_space<vmem>>, vector<3x32xf32>
    %cst_7 = arith.constant dense<0.000000e+00> : vector<128x32xf32>
    %17 = tpu.matmul %14, %15, %cst_7 {dimension_numbers = #tpu.dot_dimension_numbers<[1], [0], [0], [1], [0, 0, 1, 1], [], []>} : vector<128x32xf32>, vector<32x32xf32>, vector<128x32xf32> -> vector<128x32xf32>
    %18 = vector.extract_strided_slice %16 {offsets = [0, 0], sizes = [1, 32], strides = [1, 1]} : vector<3x32xf32> to vector<1x32xf32>
    %19 = vector.broadcast %18 : vector<1x32xf32> to vector<128x32xf32>
    %20 = arith.addf %17, %19 : vector<128x32xf32>
    %cst_8 = arith.constant 0.000000e+00 : f32
    %21 = vector.broadcast %cst_8 : f32 to vector<128x32xf32>
    %22 = arith.maximumf %20, %21 : vector<128x32xf32>
    %23 = vector.extract_strided_slice %16 {offsets = [1, 0], sizes = [1, 32], strides = [1, 1]} : vector<3x32xf32> to vector<1x32xf32>
    %24 = vector.broadcast %23 : vector<1x32xf32> to vector<128x32xf32>
    %25 = arith.mulf %22, %24 : vector<128x32xf32>
    %26 = vector.extract_strided_slice %16 {offsets = [2, 0], sizes = [1, 32], strides = [1, 1]} : vector<3x32xf32> to vector<1x32xf32>
    %27 = vector.broadcast %26 : vector<1x32xf32> to vector<128x32xf32>
    %28 = arith.addf %25, %27 : vector<128x32xf32>
    %c80 = arith.constant 80 : index
    %c0_9 = arith.constant 0 : index
    %29 = vector.load %arg2[%c80, %c0_9] : memref<160x32xf32, #tpu.memory_space<vmem>>, vector<32x32xf32>
    %cst_10 = arith.constant dense<0.000000e+00> : vector<128x32xf32>
    %30 = tpu.matmul %28, %29, %cst_10 {dimension_numbers = #tpu.dot_dimension_numbers<[1], [0], [0], [1], [0, 0, 1, 1], [], []>} : vector<128x32xf32>, vector<32x32xf32>, vector<128x32xf32> -> vector<128x32xf32>
    %31 = vector.extract_strided_slice %30 {offsets = [0, 0], sizes = [128, 16], strides = [1, 1]} : vector<128x32xf32> to vector<128x16xf32>
    %c112 = arith.constant 112 : index
    %c0_11 = arith.constant 0 : index
    %32 = vector.load %arg2[%c112, %c0_11] : memref<160x32xf32, #tpu.memory_space<vmem>>, vector<1x16xf32>
    %33 = vector.broadcast %32 : vector<1x16xf32> to vector<128x16xf32>
    %34 = arith.addf %31, %33 : vector<128x16xf32>
    %35 = vector.extract_strided_slice %34 {offsets = [0, 0], sizes = [128, 8], strides = [1, 1]} : vector<128x16xf32> to vector<128x8xf32>
    %36 = vector.extract_strided_slice %34 {offsets = [0, 8], sizes = [128, 8], strides = [1, 1]} : vector<128x16xf32> to vector<128x8xf32>
    %37 = math.exp %36 : vector<128x8xf32>
    %c120 = arith.constant 120 : index
    %c0_12 = arith.constant 0 : index
    %38 = vector.load %arg2[%c120, %c0_12] : memref<160x32xf32, #tpu.memory_space<vmem>>, vector<4x8xf32>
    %c128 = arith.constant 128 : index
    %c0_13 = arith.constant 0 : index
    %39 = vector.load %arg2[%c128, %c0_13] : memref<160x32xf32, #tpu.memory_space<vmem>>, vector<4x8xf32>
    %c136 = arith.constant 136 : index
    %c0_14 = arith.constant 0 : index
    %40 = vector.load %arg2[%c136, %c0_14] : memref<160x32xf32, #tpu.memory_space<vmem>>, vector<4x8xf32>
    %c144 = arith.constant 144 : index
    %c0_15 = arith.constant 0 : index
    %41 = vector.load %arg2[%c144, %c0_15] : memref<160x32xf32, #tpu.memory_space<vmem>>, vector<4x8xf32>
    %c152 = arith.constant 152 : index
    %c0_16 = arith.constant 0 : index
    %42 = vector.load %arg2[%c152, %c0_16] : memref<160x32xf32, #tpu.memory_space<vmem>>, vector<1x4xf32>
    %cst_17 = arith.constant 2.000000e+00 : f32
    %43 = vector.broadcast %cst_17 : f32 to vector<128x8xf32>
    %44 = arith.mulf %43, %37 : vector<128x8xf32>
    %45 = math.exp %44 : vector<128x8xf32>
    %cst_18 = arith.constant dense<0.000000e+00> : vector<128xf32>
    %46 = vector.multi_reduction <add>, %37, %cst_18 [1] : vector<128x8xf32> to vector<128xf32>
    %47 = vector.shape_cast %46 : vector<128xf32> to vector<128x1xf32>
    %48 = arith.mulf %35, %35 : vector<128x8xf32>
    %49 = arith.addf %45, %48 : vector<128x8xf32>
    %cst_19 = arith.constant dense<0.000000e+00> : vector<128x4xf32>
    %50 = tpu.matmul %49, %41, %cst_19 {dimension_numbers = #tpu.dot_dimension_numbers<[1], [1], [0], [0], [0, 0, 1, 0], [], []>} : vector<128x8xf32>, vector<4x8xf32>, vector<128x4xf32> -> vector<128x4xf32>
    %cst_20 = arith.constant dense<0.000000e+00> : vector<128x4xf32>
    %51 = tpu.matmul %35, %40, %cst_20 {dimension_numbers = #tpu.dot_dimension_numbers<[1], [1], [0], [0], [0, 0, 1, 0], [], []>} : vector<128x8xf32>, vector<4x8xf32>, vector<128x4xf32> -> vector<128x4xf32>
    %52 = vector.broadcast %42 : vector<1x4xf32> to vector<128x4xf32>
    %53 = vector.broadcast %47 : vector<128x1xf32> to vector<128x4xf32>
    %54 = arith.subf %52, %53 : vector<128x4xf32>
    %55 = arith.addf %54, %50 : vector<128x4xf32>
    %cst_21 = arith.constant 2.000000e+00 : f32
    %56 = vector.broadcast %cst_21 : f32 to vector<128x4xf32>
    %57 = arith.mulf %56, %51 : vector<128x4xf32>
    %58 = arith.subf %55, %57 : vector<128x4xf32>
    %cst_22 = arith.constant dense<0x7F800000> : vector<128xf32>
    %59 = vector.multi_reduction <minimumf>, %58, %cst_22 [1] : vector<128x4xf32> to vector<128xf32>
    %60 = vector.shape_cast %59 : vector<128xf32> to vector<128x1xf32>
    %61 = vector.broadcast %60 : vector<128x1xf32> to vector<128x4xf32>
    %62 = arith.subf %61, %58 : vector<128x4xf32>
    %63 = math.exp %62 : vector<128x4xf32>
    %cst_23 = arith.constant dense<0.000000e+00> : vector<128xf32>
    %64 = vector.multi_reduction <add>, %63, %cst_23 [1] : vector<128x4xf32> to vector<128xf32>
    %65 = vector.shape_cast %64 : vector<128xf32> to vector<128x1xf32>
    %66 = vector.broadcast %65 : vector<128x1xf32> to vector<128x4xf32>
    %67 = arith.divf %63, %66 : vector<128x4xf32>
    %cst_24 = arith.constant dense<0.000000e+00> : vector<128x8xf32>
    %68 = tpu.matmul %67, %38, %cst_24 {dimension_numbers = #tpu.dot_dimension_numbers<[1], [0], [0], [1], [0, 0, 1, 1], [], []>} : vector<128x4xf32>, vector<4x8xf32>, vector<128x8xf32> -> vector<128x8xf32>
    %cst_25 = arith.constant dense<0.000000e+00> : vector<128x8xf32>
    %69 = tpu.matmul %67, %39, %cst_25 {dimension_numbers = #tpu.dot_dimension_numbers<[1], [0], [0], [1], [0, 0, 1, 1], [], []>} : vector<128x4xf32>, vector<4x8xf32>, vector<128x8xf32> -> vector<128x8xf32>
    %70 = arith.mulf %67, %58 : vector<128x4xf32>
    %cst_26 = arith.constant dense<0.000000e+00> : vector<128xf32>
    %71 = vector.multi_reduction <add>, %70, %cst_26 [1] : vector<128x4xf32> to vector<128xf32>
    %72 = vector.shape_cast %71 : vector<128xf32> to vector<128x1xf32>
    %c0_27 = arith.constant 0 : index
    %c0_28 = arith.constant 0 : index
    %73 = vector.load %arg3[%c0_27, %c0_28] : memref<128x8xf32, #tpu.memory_space<vmem>>, vector<128x8xf32>
    %74 = arith.mulf %73, %69 : vector<128x8xf32>
    %75 = arith.addf %74, %68 : vector<128x8xf32>
    %76 = arith.subf %68, %35 : vector<128x8xf32>
    %77 = math.log %69 : vector<128x8xf32>
    %78 = arith.subf %36, %77 : vector<128x8xf32>
    %79 = arith.mulf %69, %69 : vector<128x8xf32>
    %80 = arith.mulf %76, %76 : vector<128x8xf32>
    %81 = arith.addf %79, %80 : vector<128x8xf32>
    %cst_29 = arith.constant 2.000000e+00 : f32
    %82 = vector.broadcast %cst_29 : f32 to vector<128x8xf32>
    %83 = arith.mulf %82, %37 : vector<128x8xf32>
    %84 = arith.mulf %83, %37 : vector<128x8xf32>
    %85 = arith.divf %81, %84 : vector<128x8xf32>
    %86 = arith.addf %78, %85 : vector<128x8xf32>
    %cst_30 = arith.constant 5.000000e-01 : f32
    %87 = vector.broadcast %cst_30 : f32 to vector<128x8xf32>
    %88 = arith.subf %86, %87 : vector<128x8xf32>
    %cst_31 = arith.constant dense<0.000000e+00> : vector<128xf32>
    %89 = vector.multi_reduction <add>, %88, %cst_31 [1] : vector<128x8xf32> to vector<128xf32>
    %90 = vector.shape_cast %89 : vector<128xf32> to vector<128x1xf32>
    %cst_32 = arith.constant 0.000000e+00 : f32
    %91 = vector.broadcast %cst_32 : f32 to vector<128x89xf32>
    %92 = tpu.concatenate %35, %37, %75, %75, %58, %72, %90, %90, %91 in 1 : vector<128x8xf32>, vector<128x8xf32>, vector<128x8xf32>, vector<128x8xf32>, vector<128x4xf32>, vector<128x1xf32>, vector<128x1xf32>, vector<128x1xf32>, vector<128x89xf32> -> vector<128x128xf32>
    %c0_33 = arith.constant 0 : index
    %c0_34 = arith.constant 0 : index
    %93 = vector.load %arg4[%c0_33, %c0_34] : memref<128x128xf32, #tpu.memory_space<vmem>>, vector<128x128xf32>
    tpu.vector_store %arg4[%c0_33, %c0_34], %92 {strides = array<i32>} : memref<128x128xf32, #tpu.memory_space<vmem>>, vector<128x128xf32>,
    return
  }
  func.func @transform_0(%arg0: i32) -> (i32, i32) {
    %c0_i32 = arith.constant 0 : i32
    %c0_i32_0 = arith.constant 0 : i32
    return %arg0, %c0_i32 : i32, i32
  }
  func.func @transform_1(%arg0: i32) -> (i32, i32) {
    %c0_i32 = arith.constant 0 : i32
    %c0_i32_0 = arith.constant 0 : i32
    %c0_i32_1 = arith.constant 0 : i32
    return %c0_i32, %c0_i32_0 : i32, i32
  }
  func.func @transform_2(%arg0: i32) -> (i32, i32) {
    %c0_i32 = arith.constant 0 : i32
    %c0_i32_0 = arith.constant 0 : i32
    return %arg0, %c0_i32 : i32, i32
  }
  func.func @transform_3(%arg0: i32) -> (i32, i32) {
    %c0_i32 = arith.constant 0 : i32
    %c0_i32_0 = arith.constant 0 : i32
    return %arg0, %c0_i32 : i32, i32
  }
}

</mosaic_0001>

<bundles_post_ra>
// kernel: encoder_w_forward.1
= control target key start
LH: loop header
LB: loop body
LE: loop exit
PB: predicated region body
PF: predicated region fallthrough
CT: control target
= control target key end

     0   :  { %8 = vsyncpa [#allocation3], 0  ;;  %s5685_s0 = inlined_call_operand.vmem [shape: f32[256,32], index: 0, kind: input, shape index: {}]   ;;  %s5686_s1 = inlined_call_operand.vmem [shape: f32[160,32], index: 1, kind: input, shape index: {}]   ;;  %s5687_s2 = inlined_call_operand.vmem [shape: f32[256,8], index: 2, kind: input, shape index: {}]   ;;  %s5688_s3 = inlined_call_operand.hbm [shape: f32[256,128], index: 3, kind: output, shape index: {}]  }
   0x1   :  { %10 = vsyncpa [#allocation3 + $0x1], 0  ;;  %s4086_s12 = smov 0   ;;  %s4088_s13 = smov 0  }
   0x2   :  { %s4090_s14 = smov 0   ;;  %s4092_s15 = smov 0  }
   0x3 LB: > { %s4107_s16 = sadd.s32 4294967295, %s4057_s15   ;;  %s3275_s17 = sadd.s32 4294967294, %s4057_s15   ;;  %s4057_s15 = sphi %s4092_s15, %s5819_s15   ;;  %s4053_s14 = sphi %s4090_s14, %s5818_s14   ;;  %s4049_s13 = sphi %s4088_s13, %s5817_s13   ;;  %s4045_s12 = sphi %s4086_s12, %s5816_s12  }
   0x4   : > { %s4111_s18 = sadd.s32 1, %s4057_s15   ;;  %s96_s19 = sadd.s32 1, %s4053_s14 }
   0x5   : > { %s93_s20 = ssub.s32 %s4057_s15, %s4111_s18  ;;  %p106_p0 = scmp.ne.s32.totalorder %s4053_s14, %s4049_s13 }
   0x6   : > { %p94_p1 = scmp.eq.s32.totalorder %s93_s20, 0  ;;  %p107_p2 = scmp.eq.s32.totalorder %s4107_s16, 1 }
   0x7   : > { %p112_p3 = scmp.ne.s32.totalorder %s4049_s13, %s4045_s12  ;;  %p113_p4 = scmp.eq.s32.totalorder %s3275_s17, 1 }
   0x8   : > { %s4122_s21 = scalar_select %p94_p1, %s4053_s14, %s96_s19  }
   0x9   : > { %p4124_p5 = por %p107_p2, %p106_p0  ;;  %p4128_p6 = por %p113_p4, %p112_p3 }
   0xa   : > { %p3278_p7 = scmp.ge.s32.totalorder %s4057_s15, 1  ;;  %p152_p8 = scmp.lt.s32.totalorder %s4057_s15, 3 }
   0xc   : > { %p153_p9 = pnand %p3278_p7, %p152_p8 }
   0xe   : > { %156 = sbr.rel (%p153_p9) target bundleno = 2111 (0x83f), region = 32 }
  0x13   : > { %v213_v0 = vld [vmem:[%s5686_s1 + $0x18] sm:$0xff]  ;;  %v212_v1 = vld [vmem:[%s5686_s1 + $0x10] sm:$0xff]  ;;  %s3280_s28 = sshll.u32 %s4107_s16, 4  ;;  %v211_v2 = vld [vmem:[%s5686_s1 + $0x8] sm:$0xff]  ;;  %vm219_vm0 = vcmask 261120   ;;  %v215_v26 = vlaneseq  ;;  %vm1094_vm1 = vcmask 64512  }
  0x14   : > { %3552 = vmatprep.subr.mxu0 %v213_v0  ;;  %p182_p10 = scmp.lt.s32.totalorder %s3280_s28, 31  ;;  %3752 = vmatprep.subr.mxu1 %v213_v0  ;;  %v210_v3 = vld [vmem:[%s5686_s1] sm:$0xff]  ;;  %v471_v9 = vld [vmem:[%s5686_s1 + $0x38] sm:$0xff]  ;;  %v470_v22 = vld [vmem:[%s5686_s1 + $0x30] sm:$0xff]  ;;  %s4059_s27 = smov 8   ;;  %vm1731_vm2 = vcmask 31744  }
  0x15   : > { %3553 = vmatpush3.msra.mxu0 %v213_v0  ;;  %3756 = vmatpush3.msra.mxu1 %v213_v0  ;;  %v472_v7 = vld [vmem:[%s5686_s1 + $0x40] sm:$0xff]  ;;  %v469_v23 = vld [vmem:[%s5686_s1 + $0x28] sm:$0xff]  ;;  %v4207_v27 = vshrl.u32 %v215_v26, 7  ;;  %s4060_s4 = smov 120   ;;  %vm1956_vm3 = vcmask 1043456   ;;  %s4061_s17 = smov 32  }
  0x16   : > { %3554 = vmatprep.subr.mxu0 %v212_v1  ;;  %s5821_s28 = smov (!%p182_p10, %s3280_s28), 31  ;;  %3753 = vmatprep.subr.mxu1 %v212_v1  ;;  %v730_v24 = vld [vmem:[%s5686_s1 + $0x68] sm:$0xff]  ;;  %v729_v25 = vld [vmem:[%s5686_s1 + $0x60] sm:$0xff]  ;;  %vm3053_vm4 = vcmask 130048   ;;  %vm3070_vm5 = vcmask 195584   ;;  %s178_s25 = sand.u32 1, %s4049_s13  }
  0x17   : > { %3555 = vmatpush3.msra.mxu0 %v212_v1  ;;  %3757 = vmatpush3.msra.mxu1 %v212_v1  ;;  %s3281_s6 = sshll.u32 %s5821_s28, 3  ;;  %v217_v28 = vsub.s32 0, %v4207_v27  ;;  %v214_v29 = vld [vmem:[%s5686_s1 + $0x20] sm:$0x7]  ;;  %v431_v31 = vsub.s32 1, %v4207_v27  ;;  %v451_v35 = vsub.s32 2, %v4207_v27 }
  0x18   : > { %3556 = vmatprep.subr.mxu0 %v211_v2  ;;  %3754 = vmatprep.subr.mxu1 %v211_v2  ;;  %s4155_s9 = scalar_lea.vmem %s5685_s0, %s3281_s6  ;;  %s5024_s24 = scalar_lea.vmem %s5687_s2, %s3281_s6  ;;  %vm3120_vm6 = vcmask 302080   ;;  %vm3103_vm7 = vcmask 293888   ;;  %vm3137_vm8 = vcmask 310272   ;;  %vm3154_vm9 = vcmask 318464  }
  0x19   : > { %3557 = vmatpush3.msra.mxu0 %v211_v2  ;;  %3758 = vmatpush3.msra.mxu1 %v211_v2  ;;  %v194_v4 = vld [vmem:[%s4155_s9] sm:$0xff]  ;;  %v195_v5 = vld [vmem:[%s4155_s9 + $0x8] sm:$0xff]  ;;  %v196_v6 = vld [vmem:[%s4155_s9 + $0x10] sm:$0xff]  ;;  %v4215_v30 = vrot.slane %v214_v29, %v217_v28  ;;  %v4221_v34 = vrot.slane %v214_v29, %v431_v31  ;;  %v4229_v45 = vrot.slane %v214_v29, %v451_v35  ;;  %s4062_s28 = smov 24   ;;  %s4063_s6 = smov 16  }
  0x1a   : > { %3558 = vmatprep.subr.mxu0 %v210_v3  ;;  %3755 = vmatprep.subr.mxu1 %v210_v3  ;;  %v202_v8 = vld [vmem:[%s4155_s9 + $0x40] sm:$0xff]  ;;  %v197_v10 = vld [vmem:[%s4155_s9 + $0x18] sm:$0xff]  ;;  %v203_v11 = vld [vmem:[%s4155_s9 + $0x48] sm:$0xff]  ;;  %s3279_s26 = sshll.u32 %s178_s25, 7  ;;  %s3423_s30 = sshll.u32 %s4107_s16, 11 }
  0x1b   : > { %3559 = vmatpush3.msra.mxu0 %v210_v3  ;;  %3560 = vmatprep.mubr.msk.f32.mxu0 %vm219_vm0, %v194_v4  ;;  %v204_v12 = vld [vmem:[%s4155_s9 + $0x50] sm:$0xff]  ;;  %v198_v13 = vld [vmem:[%s4155_s9 + $0x20] sm:$0xff]  ;;  %v205_v14 = vld [vmem:[%s4155_s9 + $0x58] sm:$0xff]  ;;  %s5517_s29 = scalar_lea.vmem [#allocation2], %s3279_s26  ;;  %s5635_s8 = scalar_lea.hbm %s5688_s3, %s3423_s30 }
  0x1c   : > { %3561 = vmatmul.mubr.msk.f32.vlgmr.msra.gmra.mxu0 %vm219_vm0, %v195_v5  ;;  %3759 = vmatpush3.msra.mxu1 %v210_v3  ;;  %v206_v15 = vld [vmem:[%s4155_s9 + $0x60] sm:$0xff]  ;;  %v199_v16 = vld [vmem:[%s4155_s9 + $0x28] sm:$0xff]  ;;  %v200_v17 = vld [vmem:[%s4155_s9 + $0x30] sm:$0xff]  ;;  %s5644_s16 = scalar_lea.sflag [#allocation3], %s178_s25  ;;  %s4064_s10 = smov [#allocation2]  }
  0x1d   : > { %3563 = vmatprep.mubr.msk.f32.mxu0 %vm219_vm0, %v196_v6  ;;  %3572 = vmatprep.mubr.msk.f32.mxu1 %vm219_vm0, %v202_v8  ;;  %v207_v18 = vld [vmem:[%s4155_s9 + $0x68] sm:$0xff]  ;;  %v208_v19 = vld [vmem:[%s4155_s9 + $0x70] sm:$0xff]  ;;  %v201_v20 = vld [vmem:[%s4155_s9 + $0x38] sm:$0xff]  ;;  %s4001_s11 = sshll.u32 %s4064_s10, 4  ;;  %s4002_s11 = int_to_ptr.vmem [resolvable:$false] %s4001_s11 }
  0x1e   : > { %3573 = vmatmul.mubr.msk.f32.vlgmr.msra.gmra.mxu1 %vm219_vm0, %v203_v11  ;;  %3584 = vmatprep.subr.mxu1 %v472_v7  ;;  %v209_v21 = vld [vmem:[%s4155_s9 + $0x78] sm:$0xff] }
  0x1f   : > { %3575 = vmatprep.mubr.msk.f32.mxu1 %vm219_vm0, %v204_v12  ;;  %3585 = vmatpush3.msra.mxu1 %v472_v7 }
  0x20   : > { %3564 = vmatmul.mubr.msk.f32.gmra.mxu0 %vm219_vm0, %v197_v10  ;;  %3586 = vmatprep.subr.mxu1 %v471_v9 }
  0x21   : > { %3566 = vmatprep.mubr.msk.f32.mxu0 %vm219_vm0, %v198_v13  ;;  %3587 = vmatpush3.msra.mxu1 %v471_v9 }
  0x22   : > { %3576 = vmatmul.mubr.msk.f32.gmra.mxu1 %vm219_vm0, %v205_v14  ;;  %3588 = vmatprep.subr.mxu1 %v470_v22 }
  0x23   : > { %3578 = vmatprep.mubr.msk.f32.mxu1 %vm219_vm0, %v206_v15  ;;  %3589 = vmatpush3.msra.mxu1 %v470_v22 }
  0x24   : > { %3567 = vmatmul.mubr.msk.f32.gmra.mxu0 %vm219_vm0, %v199_v16  ;;  %3590 = vmatprep.subr.mxu1 %v469_v23 }
  0x25   : > { %3569 = vmatprep.mubr.msk.f32.mxu0 %vm219_vm0, %v200_v17  ;;  %3591 = vmatpush3.msra.mxu1 %v469_v23 }
  0x26   : > { %3579 = vmatmul.mubr.msk.f32.gmra.mxu1 %vm219_vm0, %v207_v18  ;;  %3616 = vmatprep.subr.mxu0 %v730_v24 }
  0x27   : > { %3581 = vmatprep.mubr.msk.f32.mxu1 %vm219_vm0, %v208_v19  ;;  %3617 = vmatpush3.msra.mxu0 %v730_v24 }
  0x28   : > { %3570 = vmatmul.mubr.msk.f32.gmra.mxu0 %vm219_vm0, %v201_v20  ;;  %3618 = vmatprep.subr.mxu0 %v729_v25 }
  0x29   : > { %3619 = vmatpush3.msra.mxu0 %v729_v25 }
  0x2a   : > { %3582 = vmatmul.mubr.msk.f32.gmra.mxu1 %vm219_vm0, %v209_v21 }
  0xdc   : > { %v3562_v32 = vpop.f32.mrf.mxu0 }
  0xdd   : > { %v340_v33 = vadd.f32 %v3562_v32, %v4215_v30 }
  0xde   : > { %v334_v36 = vpop.f32.mrf.mxu0  ;;  %v3574_v37 = vpop.f32.mrf.mxu1 }
  0xdf   : > { %v414_v38 = vmax.f32 %v340_v33, 0.0  ;;  %v335_v39 = vadd.f32 %v334_v36, %v4215_v30  ;;  %v380_v0 = vadd.f32 %v3574_v37, %v4215_v30 }
  0xe0   : > { %v3565_v40 = vpop.f32.mrf.mxu0  ;;  %v374_v41 = vpop.f32.mrf.mxu1 }
  0xe1   : > { %v413_v42 = vmax.f32 %v335_v39, 0.0  ;;  %v350_v43 = vadd.f32 %v3565_v40, %v4215_v30  ;;  %v434_v44 = vmul.f32 %v4221_v34, %v414_v38  ;;  %v375_v52 = vadd.f32 %v374_v41, %v4215_v30 }
  0xe2   : > { %v344_v46 = vpop.f32.mrf.mxu0  ;;  %v3577_v47 = vpop.f32.mrf.mxu1  ;;  %v422_v15 = vmax.f32 %v380_v0, 0.0 }
  0xe3   : > { %v433_v48 = vmul.f32 %v4221_v34, %v413_v42  ;;  %v416_v49 = vmax.f32 %v350_v43, 0.0  ;;  %v345_v50 = vadd.f32 %v344_v46, %v4215_v30  ;;  %v454_v58 = vadd.f32 %v4229_v45, %v434_v44 }
  0xe4   : > { %v3568_v51 = vpop.f32.mrf.mxu0  ;;  %v384_v53 = vpop.f32.mrf.mxu1  ;;  %v421_v3 = vmax.f32 %v375_v52, 0.0  ;;  %v390_v18 = vadd.f32 %v3577_v47, %v4215_v30  ;;  %v442_v26 = vmul.f32 %v4221_v34, %v422_v15 }
  0xe5   : > { %v453_v54 = vadd.f32 %v4229_v45, %v433_v48  ;;  %v436_v55 = vmul.f32 %v4221_v34, %v416_v49  ;;  %v415_v56 = vmax.f32 %v345_v50, 0.0  ;;  %v360_v57 = vadd.f32 %v3568_v51, %v4215_v30 }
  0xe6   : > { %v354_v59 = vpop.f32.mrf.mxu0  ;;  %v3580_v60 = vpop.f32.mrf.mxu1  ;;  %v385_v4 = vadd.f32 %v384_v53, %v4215_v30  ;;  %v441_v17 = vmul.f32 %v4221_v34, %v421_v3  ;;  %v424_v33 = vmax.f32 %v390_v18, 0.0  ;;  %v462_v41 = vadd.f32 %v4229_v45, %v442_v26 }
  0xe7   : > { %v435_v61 = vmul.f32 %v4221_v34, %v415_v56  ;;  %v418_v62 = vmax.f32 %v360_v57, 0.0  ;;  %v355_v63 = vadd.f32 %v354_v59, %v4215_v30  ;;  %3592 = vmatprep.mubr.msk.f32.mxu1 %vm219_vm0, %v453_v54  ;;  %v456_v1 = vadd.f32 %v4229_v45, %v436_v55  ;;  %v728_v57 = vld [vmem:[%s5686_s1 + $0x58] sm:$0xff] }
  0xe8   : > { %v3571_v2 = vpop.f32.mrf.mxu0  ;;  %3593 = vmatmul.mubr.msk.f32.vlgmr.msra.gmra.mxu1 %vm219_vm0, %v454_v58  ;;  %v394_v5 = vpop.f32.mrf.mxu1  ;;  %v423_v19 = vmax.f32 %v385_v4, 0.0  ;;  %v461_v32 = vadd.f32 %v4229_v45, %v441_v17  ;;  %v400_v36 = vadd.f32 %v3580_v60, %v4215_v30  ;;  %v444_v42 = vmul.f32 %v4221_v34, %v424_v33  ;;  %3620 = vmatprep.subr.mxu0 %v728_v57 }
  0xe9   : > { %v455_v6 = vadd.f32 %v4229_v45, %v435_v61  ;;  %v438_v7 = vmul.f32 %v4221_v34, %v418_v62  ;;  %v417_v8 = vmax.f32 %v355_v63, 0.0  ;;  %v370_v9 = vadd.f32 %v3571_v2, %v4215_v30  ;;  %3621 = vmatpush3.msra.mxu0 %v728_v57 }
  0xea   : > { %v364_v10 = vpop.f32.mrf.mxu0  ;;  %v3583_v11 = vpop.f32.mrf.mxu1  ;;  %v395_v23 = vadd.f32 %v394_v5, %v4215_v30  ;;  %v443_v38 = vmul.f32 %v4221_v34, %v423_v19  ;;  %v426_v43 = vmax.f32 %v400_v36, 0.0  ;;  %v464_v49 = vadd.f32 %v4229_v45, %v444_v42 }
  0xeb   : > { %v437_v12 = vmul.f32 %v4221_v34, %v417_v8  ;;  %v420_v13 = vmax.f32 %v370_v9, 0.0  ;;  %v365_v14 = vadd.f32 %v364_v10, %v4215_v30  ;;  %3595 = vmatprep.mubr.msk.f32.mxu1 %vm219_vm0, %v455_v6  ;;  %v458_v16 = vadd.f32 %v4229_v45, %v438_v7 }
  0xec   : > { %3596 = vmatmul.mubr.msk.f32.gmra.mxu1 %vm219_vm0, %v456_v1  ;;  %v404_v24 = vpop.f32.mrf.mxu1  ;;  %v425_v39 = vmax.f32 %v395_v23, 0.0  ;;  %v410_v44 = vadd.f32 %v3583_v11, %v4215_v30  ;;  %v463_v46 = vadd.f32 %v4229_v45, %v443_v38  ;;  %v446_v50 = vmul.f32 %v4221_v34, %v426_v43 }
  0xed   : > { %v457_v20 = vadd.f32 %v4229_v45, %v437_v12  ;;  %v440_v21 = vmul.f32 %v4221_v34, %v420_v13  ;;  %v419_v22 = vmax.f32 %v365_v14, 0.0  ;;  %v405_v40 = vadd.f32 %v404_v24, %v4215_v30 }
  0xee   : > { %v445_v47 = vmul.f32 %v4221_v34, %v425_v39  ;;  %v428_v51 = vmax.f32 %v410_v44, 0.0  ;;  %v466_v30 = vadd.f32 %v4229_v45, %v446_v50 }
  0xef   : > { %v439_v25 = vmul.f32 %v4221_v34, %v419_v22  ;;  %3598 = vmatprep.mubr.msk.f32.mxu1 %vm219_vm0, %v457_v20  ;;  %v460_v29 = vadd.f32 %v4229_v45, %v440_v21  ;;  %v427_v48 = vmax.f32 %v405_v40, 0.0 }
  0xf0   : > { %3599 = vmatmul.mubr.msk.f32.gmra.mxu1 %vm219_vm0, %v458_v16  ;;  %v465_v52 = vadd.f32 %v4229_v45, %v445_v47  ;;  %v448_v54 = vmul.f32 %v4221_v34, %v428_v51 }
  0xf1   : > { %v459_v37 = vadd.f32 %v4229_v45, %v439_v25  ;;  %v447_v53 = vmul.f32 %v4221_v34, %v427_v48  ;;  %v727_v34 = vld [vmem:[%s5686_s1 + $0x50] sm:$0xff] }
  0xf2   : > { %v468_v56 = vadd.f32 %v4229_v45, %v448_v54  ;;  %3622 = vmatprep.subr.mxu0 %v727_v34 }
  0xf3   : > { %3601 = vmatprep.mubr.msk.f32.mxu1 %vm219_vm0, %v459_v37  ;;  %v467_v55 = vadd.f32 %v4229_v45, %v447_v53  ;;  %3623 = vmatpush3.msra.mxu0 %v727_v34  ;;  %v473_v45 = vld [vmem:[%s5686_s1 + $0x48] sm:$0x7] }
  0xf4   : > { %3602 = vmatmul.mubr.msk.f32.gmra.mxu1 %vm219_vm0, %v460_v29  ;;  %v4302_v58 = vrot.slane %v473_v45, %v217_v28  ;;  %v4307_v61 = vrot.slane %v473_v45, %v431_v31  ;;  %v4314_v28 = vrot.slane %v473_v45, %v451_v35 }
  0xf5   : > { %3604 = vmatprep.mubr.msk.f32.mxu1 %vm219_vm0, %v461_v32 }
  0xf8   : > { %3605 = vmatmul.mubr.msk.f32.gmra.mxu1 %vm219_vm0, %v462_v41 }
  0xf9   : > { %3607 = vmatprep.mubr.msk.f32.mxu1 %vm219_vm0, %v463_v46 }
  0xfc   : > { %3608 = vmatmul.mubr.msk.f32.gmra.mxu1 %vm219_vm0, %v464_v49 }
  0xfd   : > { %3610 = vmatprep.mubr.msk.f32.mxu1 %vm219_vm0, %v465_v52 }
 0x100   : > { %3611 = vmatmul.mubr.msk.f32.gmra.mxu1 %vm219_vm0, %v466_v30 }
 0x101   : > { %3613 = vmatprep.mubr.msk.f32.mxu1 %vm219_vm0, %v467_v55 }
 0x104   : > { %3614 = vmatmul.mubr.msk.f32.gmra.mxu1 %vm219_vm0, %v468_v56 }
 0x1a8   : > { %v3594_v59 = vpop.f32.mrf.mxu1 }
 0x1a9   : > { %v598_v60 = vadd.f32 %v3594_v59, %v4302_v58 }
 0x1aa   : > { %v592_v62 = vpop.f32.mrf.mxu1 }
 0x1ab   : > { %v672_v63 = vmax.f32 %v598_v60, 0.0  ;;  %v593_v0 = vadd.f32 %v592_v62, %v4302_v58 }
 0x1ac   : > { %v3597_v1 = vpop.f32.mrf.mxu1 }
 0x1ad   : > { %v671_v2 = vmax.f32 %v593_v0, 0.0  ;;  %v608_v3 = vadd.f32 %v3597_v1, %v4302_v58  ;;  %v692_v4 = vmul.f32 %v4307_v61, %v672_v63 }
 0x1ae   : > { %v602_v5 = vpop.f32.mrf.mxu1 }
 0x1af   : > { %v691_v6 = vmul.f32 %v4307_v61, %v671_v2  ;;  %v674_v7 = vmax.f32 %v608_v3, 0.0  ;;  %v603_v31 = vadd.f32 %v602_v5, %v4302_v58  ;;  %v712_v13 = vadd.f32 %v4314_v28, %v692_v4 }
 0x1b0   : > { %v3600_v8 = vpop.f32.mrf.mxu1 }
 0x1b1   : > { %v711_v9 = vadd.f32 %v4314_v28, %v691_v6  ;;  %v694_v10 = vmul.f32 %v4307_v61, %v674_v7  ;;  %v673_v11 = vmax.f32 %v603_v31, 0.0  ;;  %v618_v12 = vadd.f32 %v3600_v8, %v4302_v58 }
 0x1b2   : > { %v612_v14 = vpop.f32.mrf.mxu1 }
 0x1b3   : > { %v693_v27 = vmul.f32 %v4307_v61, %v673_v11  ;;  %v676_v35 = vmax.f32 %v618_v12, 0.0  ;;  %v613_v15 = vadd.f32 %v612_v14, %v4302_v58  ;;  %3624 = vmatprep.mubr.msk.f32.mxu0 %vm219_vm0, %v711_v9  ;;  %v714_v16 = vadd.f32 %v4314_v28, %v694_v10  ;;  %v4384_v14 = vld [vmem:[%s5686_s1 + $0x70] ss:$0 sm:$0xff] }
 0x1b4   : > { %v3603_v17 = vpop.f32.mrf.mxu1  ;;  %3625 = vmatmul.mubr.msk.f32.vlgmr.msra.gmra.mxu0 %vm219_vm0, %v712_v13  ;;  %v979_v13 = vld [vmem:[%s5686_s1 + $0x88] sm:$0xf] }
 0x1b5   : > { %v713_v18 = vadd.f32 %v4314_v28, %v693_v27  ;;  %v696_v19 = vmul.f32 %v4307_v61, %v676_v35  ;;  %v675_v20 = vmax.f32 %v613_v15, 0.0  ;;  %v628_v21 = vadd.f32 %v3603_v17, %v4302_v58  ;;  %3674 = vmatprep.subr.msk.mxu0 %vm1094_vm1, %v979_v13 }
 0x1b6   : > { %v622_v22 = vpop.f32.mrf.mxu1  ;;  %3675 = vmatpush3.xpose.msk.msra.mxu0 %vm1094_vm1, %v979_v13 }
 0x1b7   : > { %v695_v23 = vmul.f32 %v4307_v61, %v675_v20  ;;  %v678_v24 = vmax.f32 %v628_v21, 0.0  ;;  %v623_v25 = vadd.f32 %v622_v22, %v4302_v58  ;;  %3627 = vmatprep.mubr.msk.f32.mxu0 %vm219_vm0, %v713_v18  ;;  %v716_v26 = vadd.f32 %v4314_v28, %v696_v19 }
 0x1b8   : > { %v3606_v29 = vpop.f32.mrf.mxu1  ;;  %3628 = vmatmul.mubr.msk.f32.gmra.mxu0 %vm219_vm0, %v714_v16 }
 0x1b9   : > { %v715_v32 = vadd.f32 %v4314_v28, %v695_v23  ;;  %v698_v33 = vmul.f32 %v4307_v61, %v678_v24  ;;  %v677_v36 = vmax.f32 %v623_v25, 0.0  ;;  %v638_v37 = vadd.f32 %v3606_v29, %v4302_v58 }
 0x1ba   : > { %v632_v38 = vpop.f32.mrf.mxu1 }
 0x1bb   : > { %v697_v39 = vmul.f32 %v4307_v61, %v677_v36  ;;  %v680_v40 = vmax.f32 %v638_v37, 0.0  ;;  %v633_v41 = vadd.f32 %v632_v38, %v4302_v58  ;;  %3630 = vmatprep.mubr.msk.f32.mxu0 %vm219_vm0, %v715_v32  ;;  %v718_v42 = vadd.f32 %v4314_v28, %v698_v33 }
 0x1bc   : > { %v3609_v43 = vpop.f32.mrf.mxu1  ;;  %3631 = vmatmul.mubr.msk.f32.gmra.mxu0 %vm219_vm0, %v716_v26 }
 0x1bd   : > { %v717_v44 = vadd.f32 %v4314_v28, %v697_v39  ;;  %v700_v46 = vmul.f32 %v4307_v61, %v680_v40  ;;  %v679_v47 = vmax.f32 %v633_v41, 0.0  ;;  %v648_v48 = vadd.f32 %v3609_v43, %v4302_v58 }
 0x1be   : > { %v642_v49 = vpop.f32.mrf.mxu1 }
 0x1bf   : > { %v699_v50 = vmul.f32 %v4307_v61, %v679_v47  ;;  %v682_v51 = vmax.f32 %v648_v48, 0.0  ;;  %v643_v52 = vadd.f32 %v642_v49, %v4302_v58  ;;  %3633 = vmatprep.mubr.msk.f32.mxu0 %vm219_vm0, %v717_v44  ;;  %v720_v53 = vadd.f32 %v4314_v28, %v700_v46 }
 0x1c0   : > { %v3612_v30 = vpop.f32.mrf.mxu1  ;;  %3634 = vmatmul.mubr.msk.f32.gmra.mxu0 %vm219_vm0, %v718_v42 }
 0x1c1   : > { %v719_v54 = vadd.f32 %v4314_v28, %v699_v50  ;;  %v702_v55 = vmul.f32 %v4307_v61, %v682_v51  ;;  %v681_v56 = vmax.f32 %v643_v52, 0.0  ;;  %v658_v57 = vadd.f32 %v3612_v30, %v4302_v58 }
 0x1c2   : > { %v652_v34 = vpop.f32.mrf.mxu1 }
 0x1c3   : > { %v701_v45 = vmul.f32 %v4307_v61, %v681_v56  ;;  %v684_v59 = vmax.f32 %v658_v57, 0.0  ;;  %v653_v60 = vadd.f32 %v652_v34, %v4302_v58  ;;  %3636 = vmatprep.mubr.msk.f32.mxu0 %vm219_vm0, %v719_v54  ;;  %v722_v62 = vadd.f32 %v4314_v28, %v702_v55 }
 0x1c4   : > { %v3615_v63 = vpop.f32.mrf.mxu1  ;;  %3637 = vmatmul.mubr.msk.f32.gmra.mxu0 %vm219_vm0, %v720_v53 }
 0x1c5   : > { %v721_v0 = vadd.f32 %v4314_v28, %v701_v45  ;;  %v704_v1 = vmul.f32 %v4307_v61, %v684_v59  ;;  %v683_v2 = vmax.f32 %v653_v60, 0.0  ;;  %v668_v3 = vadd.f32 %v3615_v63, %v4302_v58 }
 0x1c6   : > { %v662_v4 = vpop.f32.mrf.mxu1 }
 0x1c7   : > { %v703_v5 = vmul.f32 %v4307_v61, %v683_v2  ;;  %v686_v6 = vmax.f32 %v668_v3, 0.0  ;;  %v663_v7 = vadd.f32 %v662_v4, %v4302_v58  ;;  %3639 = vmatprep.mubr.msk.f32.mxu0 %vm219_vm0, %v721_v0  ;;  %v724_v31 = vadd.f32 %v4314_v28, %v704_v1  ;;  %v980_v1 = vld [vmem:[%s5686_s1 + $0x90] sm:$0xf] }
 0x1c8   : > { %3640 = vmatmul.mubr.msk.f32.gmra.mxu0 %vm219_vm0, %v722_v62  ;;  %3648 = vmatprep.subr.msk.mxu1 %vm1094_vm1, %v980_v1 }
 0x1c9   : > { %v723_v8 = vadd.f32 %v4314_v28, %v703_v5  ;;  %v706_v9 = vmul.f32 %v4307_v61, %v686_v6  ;;  %v685_v10 = vmax.f32 %v663_v7, 0.0  ;;  %3649 = vmatpush3.xpose.msk.msra.mxu1 %vm1094_vm1, %v980_v1 }
 0x1cb   : > { %v705_v11 = vmul.f32 %v4307_v61, %v685_v10  ;;  %3642 = vmatprep.mubr.msk.f32.mxu0 %vm219_vm0, %v723_v8  ;;  %v726_v12 = vadd.f32 %v4314_v28, %v706_v9 }
 0x1cc   : > { %3643 = vmatmul.mubr.msk.f32.gmra.mxu0 %vm219_vm0, %v724_v31 }
 0x1cd   : > { %v725_v58 = vadd.f32 %v4314_v28, %v705_v11 }
 0x1cf   : > { %3645 = vmatprep.mubr.msk.f32.mxu0 %vm219_vm0, %v725_v58 }
 0x1d0   : > { %3646 = vmatmul.mubr.msk.f32.gmra.mxu0 %vm219_vm0, %v726_v12 }
 0x274   : > { %v3626_v61 = vpop.f32.mrf.mxu0 }
 0x275   : > { %v4390_v35 = vadd.f32 %v3626_v61, %v4384_v14 }
 0x276   : > { %v845_v28 = vpop.f32.mrf.mxu0 }
 0x277   : > { %v4387_v27 = vadd.f32 %v4384_v14, %v845_v28  ;;  %5739 = vst [vmem:[#allocation6_spill] sm:$0xff] %v4390_v35  ;;  %v1144_v21 = vmul.f32 %v4390_v35, %v4390_v35  ;;  %v947_v3 = vmul.f32 1.442695, %v4390_v35 }
 0x278   : > { %v3629_v15 = vpop.f32.mrf.mxu0 }
 0x279   : > { %5738 = vst [vmem:[#allocation5_spill] sm:$0xff] %v4387_v27  ;;  %3676 = vmatprep.mubr.msk.f32.mxu0 %vm1094_vm1, %v4387_v27  ;;  %v1143_v16 = vmul.f32 %v4387_v27, %v4387_v27  ;;  %v4403_v19 = vadd.f32 %v3629_v15, %v4384_v14  ;;  %v945_v2 = vmul.f32 1.442695, %v4387_v27 }
 0x27a   : > { %v855_v17 = vpop.f32.mrf.mxu0  ;;  %3677 = vmatmul.mubr.msk.f32.vlgmr.msra.gmra.mxu0 %vm1094_vm1, %v4390_v35 }
 0x27b   : > { %v4399_v18 = vadd.f32 %v4384_v14, %v855_v17  ;;  %1175 = vrot.lane.b32.xlu0 %v1143_v16, %s4059_s27  ;;  %5741 = vst [vmem:[#allocation8_spill] sm:$0xff] %v4403_v19  ;;  %v1146_v29 = vmul.f32 %v4403_v19, %v4403_v19  ;;  %3805 = vpow2.f32 %v945_v2  ;;  %v951_v5 = vmul.f32 1.442695, %v4403_v19 }
 0x27c   : > { %v3632_v20 = vpop.f32.mrf.mxu0  ;;  %3807 = vpow2.f32 %v947_v3 }
 0x27d   : > { %5740 = vst [vmem:[#allocation7_spill] sm:$0xff] %v4399_v18  ;;  %3679 = vmatprep.mubr.msk.f32.mxu0 %vm1094_vm1, %v4399_v18  ;;  %v1145_v22 = vmul.f32 %v4399_v18, %v4399_v18  ;;  %v4419_v25 = vadd.f32 %v3632_v20, %v4384_v14  ;;  %v949_v4 = vmul.f32 1.442695, %v4399_v18 }
 0x27e   : > { %v865_v23 = vpop.f32.mrf.mxu0  ;;  %3680 = vmatmul.mubr.msk.f32.gmra.mxu0 %vm1094_vm1, %v4403_v19 }
 0x27f   : > { %v4414_v24 = vadd.f32 %v4384_v14, %v865_v23  ;;  %1177 = vrot.lane.b32.xlu0 %v1144_v21, %s4059_s27  ;;  %1179 = vrot.lane.b32.xlu1 %v1145_v22, %s4059_s27  ;;  %5743 = vst [vmem:[#allocation10_spill] sm:$0xff] %v4419_v25  ;;  %v1148_v37 = vmul.f32 %v4419_v25, %v4419_v25  ;;  %3809 = vpow2.f32 %v949_v4  ;;  %v955_v7 = vmul.f32 1.442695, %v4419_v25 }
 0x280   : > { %v3635_v26 = vpop.f32.mrf.mxu0  ;;  %3811 = vpow2.f32 %v951_v5 }
 0x281   : > { %5742 = vst [vmem:[#allocation9_spill] sm:$0xff] %v4414_v24  ;;  %v1147_v32 = vmul.f32 %v4414_v24, %v4414_v24  ;;  %3682 = vmatprep.mubr.msk.f32.mxu0 %vm1094_vm1, %v4414_v24  ;;  %v4437_v38 = vadd.f32 %v3635_v26, %v4384_v14  ;;  %v953_v6 = vmul.f32 1.442695, %v4414_v24 }
 0x282   : > { %v875_v33 = vpop.f32.mrf.mxu0  ;;  %3683 = vmatmul.mubr.msk.f32.gmra.mxu0 %vm1094_vm1, %v4419_v25 }
 0x283   : > { %v4430_v36 = vadd.f32 %v4384_v14, %v875_v33  ;;  %1181 = vrot.lane.b32.xlu1 %v1146_v29, %s4059_s27  ;;  %1183 = vrot.lane.b32.xlu0 %v1147_v32, %s4059_s27  ;;  %5745 = vst [vmem:[#allocation12_spill] sm:$0xff] %v4437_v38  ;;  %v1150_v43 = vmul.f32 %v4437_v38, %v4437_v38  ;;  %3813 = vpow2.f32 %v953_v6  ;;  %v959_v10 = vmul.f32 1.442695, %v4437_v38 }
 0x284   : > { %v3638_v39 = vpop.f32.mrf.mxu0  ;;  %3815 = vpow2.f32 %v955_v7 }
 0x285   : > { %5744 = vst [vmem:[#allocation11_spill] sm:$0xff] %v4430_v36  ;;  %v1149_v40 = vmul.f32 %v4430_v36, %v4430_v36  ;;  %3685 = vmatprep.mubr.msk.f32.mxu0 %vm1094_vm1, %v4430_v36  ;;  %v4453_v44 = vadd.f32 %v3638_v39, %v4384_v14  ;;  %v957_v8 = vmul.f32 1.442695, %v4430_v36 }
 0x286   : > { %v885_v41 = vpop.f32.mrf.mxu0  ;;  %3686 = vmatmul.mubr.msk.f32.gmra.mxu0 %vm1094_vm1, %v4437_v38 }
 0x287   : > { %v4446_v42 = vadd.f32 %v4384_v14, %v885_v41  ;;  %1185 = vrot.lane.b32.xlu1 %v1148_v37, %s4059_s27  ;;  %1187 = vrot.lane.b32.xlu0 %v1149_v40, %s4059_s27  ;;  %5747 = vst [vmem:[#allocation14_spill] sm:$0xff] %v4453_v44  ;;  %v1152_v50 = vmul.f32 %v4453_v44, %v4453_v44  ;;  %3817 = vpow2.f32 %v957_v8  ;;  %v963_v61 = vmul.f32 1.442695, %v4453_v44 }
 0x288   : > { %v3641_v46 = vpop.f32.mrf.mxu0  ;;  %v4525_v31 = vpop.eup %3805  ;;  %3819 = vpow2.f32 %v959_v10 }
 0x289   : > { %5746 = vst [vmem:[#allocation13_spill] sm:$0xff] %v4446_v42  ;;  %v1151_v47 = vmul.f32 %v4446_v42, %v4446_v42  ;;  %3688 = vmatprep.mubr.msk.f32.mxu0 %vm1094_vm1, %v4446_v42  ;;  %v4469_v51 = vadd.f32 %v3641_v46, %v4384_v14  ;;  %5754 = vst [vmem:[#allocation21_spill] sm:$0xff] %v4525_v31  ;;  %v4528_v9 = vpop.eup %3807  ;;  %v4532_v11 = vmul.f32 2.0, %v4525_v31  ;;  %v961_v58 = vmul.f32 1.442695, %v4446_v42 }
 0x28a   : > { %v895_v48 = vpop.f32.mrf.mxu0  ;;  %3689 = vmatmul.mubr.msk.f32.gmra.mxu0 %vm1094_vm1, %v4453_v44  ;;  %5755 = vst [vmem:[#allocation22_spill] sm:$0xff] %v4528_v9  ;;  %v4538_v13 = vmul.f32 2.0, %v4528_v9 }
 0x28b   : > { %v4462_v49 = vadd.f32 %v4384_v14, %v895_v48  ;;  %1189 = vrot.lane.b32.xlu1 %v1150_v43, %s4059_s27  ;;  %1191 = vrot.lane.b32.xlu0 %v1151_v47, %s4059_s27  ;;  %5749 = vst [vmem:[#allocation16_spill] sm:$0xff] %v4469_v51  ;;  %v1154_v55 = vmul.f32 %v4469_v51, %v4469_v51  ;;  %3821 = vpow2.f32 %v961_v58  ;;  %v967_v20 = vmul.f32 1.442695, %v4469_v51 }
 0x28c   : > { %v3644_v52 = vpop.f32.mrf.mxu0  ;;  %v4534_v12 = vpop.eup %3809  ;;  %v1000_v17 = vmul.f32 1.442695, %v4538_v13  ;;  %3823 = vpow2.f32 %v963_v61 }
 0x28d   : > { %5748 = vst [vmem:[#allocation15_spill] sm:$0xff] %v4462_v49  ;;  %v1153_v53 = vmul.f32 %v4462_v49, %v4462_v49  ;;  %3691 = vmatprep.mubr.msk.f32.mxu0 %vm1094_vm1, %v4462_v49  ;;  %v4485_v56 = vadd.f32 %v3644_v52, %v4384_v14  ;;  %5756 = vst [vmem:[#allocation23_spill] sm:$0xff] %v4534_v12  ;;  %v4543_v28 = vmul.f32 2.0, %v4534_v12  ;;  %v4545_v15 = vpop.eup %3811  ;;  %v965_v16 = vmul.f32 1.442695, %v4462_v49 }
 0x28e   : > { %v905_v30 = vpop.f32.mrf.mxu0  ;;  %3692 = vmatmul.mubr.msk.f32.gmra.mxu0 %vm1094_vm1, %v4469_v51  ;;  %5757 = vst [vmem:[#allocation24_spill] sm:$0xff] %v4545_v15  ;;  %v4552_v22 = vmul.f32 2.0, %v4545_v15 }
 0x28f   : > { %v4478_v54 = vadd.f32 %v4384_v14, %v905_v30  ;;  %1193 = vrot.lane.b32.xlu1 %v1152_v50, %s4059_s27  ;;  %1195 = vrot.lane.b32.xlu0 %v1153_v53, %s4059_s27  ;;  %5751 = vst [vmem:[#allocation18_spill] sm:$0xff] %v4485_v56  ;;  %v1156_v60 = vmul.f32 %v4485_v56, %v4485_v56  ;;  %v1002_v21 = vmul.f32 1.442695, %v4543_v28  ;;  %v971_v33 = vmul.f32 1.442695, %v4485_v56 }
 0x290   : > { %v3647_v57 = vpop.f32.mrf.mxu0  ;;  %v4554_v23 = vpop.eup %3813  ;;  %v1004_v29 = vmul.f32 1.442695, %v4552_v22 }
 0x291   : > { %5750 = vst [vmem:[#allocation17_spill] sm:$0xff] %v4478_v54  ;;  %v1155_v34 = vmul.f32 %v4478_v54, %v4478_v54  ;;  %3694 = vmatprep.mubr.msk.f32.mxu0 %vm1094_vm1, %v4478_v54  ;;  %v4501_v62 = vadd.f32 %v3647_v57, %v4384_v14  ;;  %v969_v26 = vmul.f32 1.442695, %v4478_v54  ;;  %v4559_v32 = vmul.f32 2.0, %v4554_v23  ;;  %v4562_v37 = vpop.eup %3815 }
 0x292   : > { %v915_v45 = vpop.f32.mrf.mxu0  ;;  %3695 = vmatmul.mubr.msk.f32.gmra.mxu0 %vm1094_vm1, %v4485_v56  ;;  %v4567_v41 = vmul.f32 2.0, %v4562_v37 }
 0x293   : > { %v4494_v59 = vadd.f32 %v4384_v14, %v915_v45  ;;  %1197 = vrot.lane.b32.xlu1 %v1154_v55, %s4059_s27  ;;  %1199 = vrot.lane.b32.xlu0 %v1155_v34, %s4059_s27  ;;  %5753 = vst [vmem:[#allocation20_spill] sm:$0xff] %v4501_v62  ;;  %v1158_v0 = vmul.f32 %v4501_v62, %v4501_v62  ;;  %v998_v14 = vmul.f32 1.442695, %v4532_v11  ;;  %v1006_v39 = vmul.f32 1.442695, %v4559_v32 }
 0x294   : > { %v4569_v43 = vpop.eup %3817  ;;  %v1008_v46 = vmul.f32 1.442695, %v4567_v41  ;;  %v975_v48 = vmul.f32 1.442695, %v4501_v62 }
 0x295   : > { %5752 = vst [vmem:[#allocation19_spill] sm:$0xff] %v4494_v59  ;;  %v1157_v63 = vmul.f32 %v4494_v59, %v4494_v59  ;;  %3697 = vmatprep.mubr.msk.f32.mxu0 %vm1094_vm1, %v4494_v59  ;;  %3825 = vpow2.f32 %v998_v14  ;;  %v973_v40 = vmul.f32 1.442695, %v4494_v59  ;;  %v4573_v47 = vmul.f32 2.0, %v4569_v43  ;;  %v4576_v50 = vpop.eup %3819 }
 0x296   : > { %3698 = vmatmul.mubr.msk.f32.gmra.mxu0 %vm1094_vm1, %v4501_v62  ;;  %3827 = vpow2.f32 %v965_v16  ;;  %v4582_v30 = vmul.f32 2.0, %v4576_v50 }
 0x297   : > { %1201 = vrot.lane.b32.xlu1 %v1156_v60, %s4059_s27  ;;  %1203 = vrot.lane.b32.xlu0 %v1157_v63, %s4059_s27  ;;  %3829 = vpow2.f32 %v1000_v17  ;;  %v1010_v52 = vmul.f32 1.442695, %v4573_v47 }
 0x298   : > { %3831 = vpow2.f32 %v967_v20  ;;  %v4579_v53 = vpop.eup %3821  ;;  %v1012_v34 = vmul.f32 1.442695, %v4582_v30 }
 0x299   : > { %3833 = vpow2.f32 %v1002_v21  ;;  %v4585_v55 = vmul.f32 2.0, %v4579_v53  ;;  %v4587_v57 = vpop.eup %3823 }
 0x29a   : > { %3835 = vpow2.f32 %v969_v26  ;;  %v4594_v1 = vmul.f32 2.0, %v4587_v57 }
 0x29b   : > { %1205 = vrot.lane.b32.xlu1 %v1158_v0, %s4059_s27  ;;  %3837 = vpow2.f32 %v1004_v29  ;;  %v1014_v60 = vmul.f32 1.442695, %v4585_v55 }
 0x29c   : > { %3839 = vpow2.f32 %v971_v33  ;;  %v1016_v6 = vmul.f32 1.442695, %v4594_v1 }
 0x29d   : > { %3841 = vpow2.f32 %v1006_v39 }
 0x29e   : > { %3843 = vpow2.f32 %v973_v40 }
 0x29f   : > { %3845 = vpow2.f32 %v1008_v46 }
 0x2a0   : > { %3847 = vpow2.f32 %v975_v48 }
 0x2a1   : > { %3849 = vpow2.f32 %v1010_v52 }
 0x2a2   : > { %v3826_v45 = vpop.eup %3825  ;;  %3851 = vpow2.f32 %v1012_v34 }
 0x2a3   : > { %v4591_v63 = vpop.eup %3827  ;;  %3853 = vpow2.f32 %v1014_v60 }
 0x2a4   : > { %v3830_v2 = vpop.eup %3829  ;;  %v4597_v4 = vmul.f32 2.0, %v4591_v63  ;;  %3855 = vpow2.f32 %v1016_v6 }
 0x2a5   : > { %v4599_v5 = vpop.eup %3831 }
 0x2a6   : > { %v3834_v7 = vpop.eup %3833  ;;  %v1018_v8 = vmul.f32 1.442695, %v4597_v4  ;;  %v4607_v14 = vmul.f32 2.0, %v4599_v5 }
 0x2a7   : > { %v4604_v10 = vpop.eup %3835 }
 0x2a8   : > { %v3838_v16 = vpop.eup %3837  ;;  %v4610_v21 = vmul.f32 2.0, %v4604_v10  ;;  %v1020_v29 = vmul.f32 1.442695, %v4607_v14  ;;  %3857 = vpow2.f32 %v1018_v8 }
 0x2a9   : > { %v4612_v26 = vpop.eup %3839 }
 0x2aa   : > { %v3842_v33 = vpop.eup %3841  ;;  %v1022_v39 = vmul.f32 1.442695, %v4610_v21  ;;  %v4621_v52 = vmul.f32 2.0, %v4612_v26  ;;  %3859 = vpow2.f32 %v1020_v29 }
 0x2ab   : > { %v4618_v40 = vpop.eup %3843 }
 0x2ac   : > { %5758 = vst [vmem:[#allocation25_spill] sm:$0xff] %v4618_v40  ;;  %v4624_v60 = vmul.f32 2.0, %v4618_v40  ;;  %3861 = vpow2.f32 %v1022_v39 }
 0x2ae   : > { %v1026_v6 = vmul.f32 1.442695, %v4624_v60 }
 0x2ed   : > { %v1176_v0 = vpop.permute.xlu0 %1175 }
 0x2ee   : > { %v1223_v3 = vadd.f32 %v3826_v45, %v1176_v0  ;;  %v3846_v0 = vpop.eup %3845 }
 0x2f0   : > { %1255 = vrot.lane.b32.xlu0 %v1223_v3, %s4060_s4  ;;  %v4627_v3 = vpop.eup %3847 }
 0x2f1   : > { %v1178_v58 = vpop.permute.xlu0 %1177  ;;  %v1180_v61 = vpop.permute.xlu1 %1179  ;;  %5759 = vst [vmem:[#allocation26_spill] sm:$0xff] %v4627_v3 }
 0x2f2   : > { %v1224_v17 = vadd.f32 %v3830_v2, %v1178_v58  ;;  %v1225_v20 = vadd.f32 %v3834_v7, %v1180_v61  ;;  %v1024_v2 = vmul.f32 1.442695, %v4621_v52  ;;  %v3850_v7 = vpop.eup %3849 }
 0x2f4   : > { %1257 = vrot.lane.b32.xlu1 %v1224_v17, %s4060_s4  ;;  %1259 = vrot.lane.b32.xlu0 %v1225_v20, %s4060_s4  ;;  %v4633_v17 = vmul.f32 2.0, %v4627_v3  ;;  %3863 = vpow2.f32 %v1024_v2  ;;  %v3852_v20 = vpop.eup %3851 }
 0x2f5   : > { %v1182_v46 = vpop.permute.xlu1 %1181  ;;  %v1184_v48 = vpop.permute.xlu0 %1183  ;;  %3865 = vpow2.f32 %v1026_v6 }
 0x2f6   : > { %v1226_v34 = vadd.f32 %v3838_v16, %v1182_v46  ;;  %v1227_v45 = vadd.f32 %v3842_v33, %v1184_v48  ;;  %v1028_v29 = vmul.f32 1.442695, %v4633_v17  ;;  %v3854_v33 = vpop.eup %3853 }
 0x2f8   : > { %1261 = vrot.lane.b32.xlu1 %v1226_v34, %s4060_s4  ;;  %1263 = vrot.lane.b32.xlu0 %v1227_v45, %s4060_s4  ;;  %v3856_v45 = vpop.eup %3855  ;;  %3867 = vpow2.f32 %v1028_v29 }
 0x2f9   : > { %v1186_v8 = vpop.permute.xlu1 %1185  ;;  %v1188_v58 = vpop.permute.xlu0 %1187 }
 0x2fa   : > { %v1228_v61 = vadd.f32 %v3846_v0, %v1186_v8  ;;  %v1229_v16 = vadd.f32 %v3850_v7, %v1188_v58  ;;  %v3858_v0 = vpop.eup %3857 }
 0x2fc   : > { %1265 = vrot.lane.b32.xlu1 %v1228_v61, %s4060_s4  ;;  %1267 = vrot.lane.b32.xlu0 %v1229_v16, %s4060_s4  ;;  %v3860_v61 = vpop.eup %3859 }
 0x2fd   : > { %v1190_v39 = vpop.permute.xlu1 %1189  ;;  %v1192_v46 = vpop.permute.xlu0 %1191 }
 0x2fe   : > { %v1230_v48 = vadd.f32 %v3852_v20, %v1190_v39  ;;  %v1231_v34 = vadd.f32 %v3854_v33, %v1192_v46  ;;  %v3862_v6 = vpop.eup %3861 }
 0x300   : > { %1269 = vrot.lane.b32.xlu1 %v1230_v48, %s4060_s4  ;;  %1271 = vrot.lane.b32.xlu0 %v1231_v34, %s4060_s4 }
 0x301   : > { %v1194_v2 = vpop.permute.xlu1 %1193  ;;  %v1196_v7 = vpop.permute.xlu0 %1195 }
 0x302   : > { %v1232_v8 = vadd.f32 %v3856_v45, %v1194_v2  ;;  %v1233_v58 = vadd.f32 %v3858_v0, %v1196_v7  ;;  %v3864_v46 = vpop.eup %3863 }
 0x303   : > { %v3866_v29 = vpop.eup %3865 }
 0x304   : > { %1273 = vrot.lane.b32.xlu1 %v1232_v8, %s4060_s4  ;;  %1275 = vrot.lane.b32.xlu0 %v1233_v58, %s4060_s4 }
 0x305   : > { %v1198_v16 = vpop.permute.xlu1 %1197  ;;  %v1200_v20 = vpop.permute.xlu0 %1199 }
 0x306   : > { %v1234_v33 = vadd.f32 %v3860_v61, %v1198_v16  ;;  %v1235_v39 = vadd.f32 %v3862_v6, %v1200_v20  ;;  %v3868_v2 = vpop.eup %3867 }
 0x308   : > { %1277 = vrot.lane.b32.xlu1 %v1234_v33, %s4060_s4  ;;  %1279 = vrot.lane.b32.xlu0 %v1235_v39, %s4060_s4 }
 0x309   : > { %v1202_v48 = vpop.permute.xlu1 %1201  ;;  %v1204_v34 = vpop.permute.xlu0 %1203 }
 0x30a   : > { %v1236_v45 = vadd.f32 %v3864_v46, %v1202_v48  ;;  %v1237_v0 = vadd.f32 %v3866_v29, %v1204_v34 }
 0x30c   : > { %1281 = vrot.lane.b32.xlu1 %v1236_v45, %s4060_s4  ;;  %1283 = vrot.lane.b32.xlu0 %v1237_v0, %s4060_s4 }
 0x30d   : > { %v1206_v7 = vpop.permute.xlu1 %1205 }
 0x30e   : > { %v1238_v8 = vadd.f32 %v3868_v2, %v1206_v7 }
 0x310   : > { %1285 = vrot.lane.b32.xlu1 %v1238_v8, %s4060_s4  ;;  %1046 = vrot.lane.b32.xlu0 %v4525_v31, %s4060_s4 }
 0x314   : > { %1048 = vrot.lane.b32.xlu1 %v4528_v9, %s4060_s4  ;;  %1050 = vrot.lane.b32.xlu0 %v4534_v12, %s4060_s4 }
 0x318   : > { %1052 = vrot.lane.b32.xlu1 %v4545_v15, %s4060_s4  ;;  %1054 = vrot.lane.b32.xlu0 %v4554_v23, %s4060_s4 }
 0x31c   : > { %1056 = vrot.lane.b32.xlu1 %v4562_v37, %s4060_s4  ;;  %1058 = vrot.lane.b32.xlu0 %v4569_v43, %s4060_s4 }
 0x320   : > { %1060 = vrot.lane.b32.xlu1 %v4576_v50, %s4060_s4  ;;  %1062 = vrot.lane.b32.xlu0 %v4579_v53, %s4060_s4 }
 0x324   : > { %1064 = vrot.lane.b32.xlu1 %v4587_v57, %s4060_s4  ;;  %1066 = vrot.lane.b32.xlu0 %v4591_v63, %s4060_s4 }
 0x328   : > { %1068 = vrot.lane.b32.xlu1 %v4599_v5, %s4060_s4  ;;  %1070 = vrot.lane.b32.xlu0 %v4604_v10, %s4060_s4 }
 0x32c   : > { %1072 = vrot.lane.b32.xlu1 %v4612_v26, %s4060_s4  ;;  %1074 = vrot.lane.b32.xlu0 %v4618_v40, %s4060_s4 }
 0x330   : > { %1076 = vrot.lane.b32.xlu1 %v4627_v3, %s4060_s4 }
 0x362   : > { %v1256_v58 = vpop.permute.xlu0 %1255 }
 0x363   : > { %3650 = vmatprep.mubr.msk.f32.mxu1 %vm1094_vm1, %v1256_v58 }
 0x366   : > { %v1258_v61 = vpop.permute.xlu1 %1257  ;;  %v1260_v6 = vpop.permute.xlu0 %1259 }
 0x367   : > { %3651 = vmatmul.mubr.msk.f32.vlgmr.msra.gmra.mxu1 %vm1094_vm1, %v1258_v61 }
 0x368   : > { %3653 = vmatprep.mubr.msk.f32.mxu1 %vm1094_vm1, %v1260_v6 }
 0x36a   : > { %v1262_v16 = vpop.permute.xlu1 %1261  ;;  %v1264_v20 = vpop.permute.xlu0 %1263 }
 0x36b   : > { %3654 = vmatmul.mubr.msk.f32.gmra.mxu1 %vm1094_vm1, %v1262_v16 }
 0x36c   : > { %3656 = vmatprep.mubr.msk.f32.mxu1 %vm1094_vm1, %v1264_v20 }
 0x36e   : > { %v1266_v33 = vpop.permute.xlu1 %1265  ;;  %v1268_v39 = vpop.permute.xlu0 %1267 }
 0x36f   : > { %3657 = vmatmul.mubr.msk.f32.gmra.mxu1 %vm1094_vm1, %v1266_v33 }
 0x370   : > { %3659 = vmatprep.mubr.msk.f32.mxu1 %vm1094_vm1, %v1268_v39 }
 0x372   : > { %v1270_v46 = vpop.permute.xlu1 %1269  ;;  %v1272_v29 = vpop.permute.xlu0 %1271 }
 0x373   : > { %3660 = vmatmul.mubr.msk.f32.gmra.mxu1 %vm1094_vm1, %v1270_v46 }
 0x374   : > { %3662 = vmatprep.mubr.msk.f32.mxu1 %vm1094_vm1, %v1272_v29 }
 0x376   : > { %v1274_v48 = vpop.permute.xlu1 %1273  ;;  %v1276_v34 = vpop.permute.xlu0 %1275 }
 0x377   : > { %3663 = vmatmul.mubr.msk.f32.gmra.mxu1 %vm1094_vm1, %v1274_v48 }
 0x378   : > { %3665 = vmatprep.mubr.msk.f32.mxu1 %vm1094_vm1, %v1276_v34 }
 0x37a   : > { %v1278_v45 = vpop.permute.xlu1 %1277  ;;  %v1280_v0 = vpop.permute.xlu0 %1279 }
 0x37b   : > { %3666 = vmatmul.mubr.msk.f32.gmra.mxu1 %vm1094_vm1, %v1278_v45 }
 0x37c   : > { %3668 = vmatprep.mubr.msk.f32.mxu1 %vm1094_vm1, %v1280_v0 }
 0x37e   : > { %v1282_v2 = vpop.permute.xlu1 %1281  ;;  %v1284_v7 = vpop.permute.xlu0 %1283 }
 0x37f   : > { %3669 = vmatmul.mubr.msk.f32.gmra.mxu1 %vm1094_vm1, %v1282_v2 }
 0x380   : > { %3671 = vmatprep.mubr.msk.f32.mxu1 %vm1094_vm1, %v1284_v7 }
 0x382   : > { %v1286_v8 = vpop.permute.xlu1 %1285  ;;  %v1047_v58 = vpop.permute.xlu0 %1046 }
 0x383   : > { %3672 = vmatmul.mubr.msk.f32.gmra.mxu1 %vm1094_vm1, %v1286_v8  ;;  %v1095_v61 = vsel %vm1094_vm1, %v1047_v58, 0.0 }
 0x384   : > { %1096 = vadd.xlane.f32.xlu0 %v1095_v61 }
 0x386   : > { %v1049_v6 = vpop.permute.xlu1 %1048  ;;  %v1051_v16 = vpop.permute.xlu0 %1050 }
 0x387   : > { %v1098_v20 = vsel %vm1094_vm1, %v1049_v6, 0.0  ;;  %v1101_v33 = vsel %vm1094_vm1, %v1051_v16, 0.0 }
 0x388   : > { %1099 = vadd.xlane.f32.xlu1 %v1098_v20  ;;  %1102 = vadd.xlane.f32.xlu0 %v1101_v33 }
 0x38a   : > { %v1053_v39 = vpop.permute.xlu1 %1052  ;;  %v1055_v46 = vpop.permute.xlu0 %1054 }
 0x38b   : > { %v1104_v29 = vsel %vm1094_vm1, %v1053_v39, 0.0  ;;  %v1107_v48 = vsel %vm1094_vm1, %v1055_v46, 0.0 }
 0x38c   : > { %1105 = vadd.xlane.f32.xlu0 %v1104_v29  ;;  %1108 = vadd.xlane.f32.xlu1 %v1107_v48 }
 0x38e   : > { %v1057_v34 = vpop.permute.xlu1 %1056  ;;  %v1059_v45 = vpop.permute.xlu0 %1058 }
 0x38f   : > { %v1110_v0 = vsel %vm1094_vm1, %v1057_v34, 0.0  ;;  %v1113_v2 = vsel %vm1094_vm1, %v1059_v45, 0.0 }
 0x390   : > { %1111 = vadd.xlane.f32.xlu0 %v1110_v0  ;;  %1114 = vadd.xlane.f32.xlu1 %v1113_v2 }
 0x392   : > { %v1061_v7 = vpop.permute.xlu1 %1060  ;;  %v1063_v8 = vpop.permute.xlu0 %1062 }
 0x393   : > { %v1116_v58 = vsel %vm1094_vm1, %v1061_v7, 0.0  ;;  %v1119_v61 = vsel %vm1094_vm1, %v1063_v8, 0.0 }
 0x394   : > { %1117 = vadd.xlane.f32.xlu0 %v1116_v58  ;;  %1120 = vadd.xlane.f32.xlu1 %v1119_v61  ;;  %v3678_v58 = vpop.f32.mrf.mxu0 }
 0x395   : > { %v1700_v54 = vmul.f32 2.0, %v3678_v58 }
 0x396   : > { %v1065_v6 = vpop.permute.xlu1 %1064  ;;  %v1067_v16 = vpop.permute.xlu0 %1066 }
 0x397   : > { %v1122_v20 = vsel %vm1094_vm1, %v1065_v6, 0.0  ;;  %v1125_v33 = vsel %vm1094_vm1, %v1067_v16, 0.0  ;;  %v1584_v61 = vpop.f32.mrf.mxu0 }
 0x398   : > { %1123 = vadd.xlane.f32.xlu0 %v1122_v20  ;;  %1126 = vadd.xlane.f32.xlu1 %v1125_v33  ;;  %v1699_v38 = vmul.f32 2.0, %v1584_v61 }
 0x399   : > { %v3681_v16 = vpop.f32.mrf.mxu0 }
 0x39a   : > { %v1069_v39 = vpop.permute.xlu1 %1068  ;;  %v1071_v46 = vpop.permute.xlu0 %1070  ;;  %v1702_v18 = vmul.f32 2.0, %v3681_v16 }
 0x39b   : > { %v1128_v29 = vsel %vm1094_vm1, %v1069_v39, 0.0  ;;  %v1131_v48 = vsel %vm1094_vm1, %v1071_v46, 0.0  ;;  %v1594_v33 = vpop.f32.mrf.mxu0 }
 0x39c   : > { %1129 = vadd.xlane.f32.xlu0 %v1128_v29  ;;  %1132 = vadd.xlane.f32.xlu1 %v1131_v48 }
 0x39d   : > { %v3684_v39 = vpop.f32.mrf.mxu0 }
 0x39e   : > { %v1073_v34 = vpop.permute.xlu1 %1072  ;;  %v1075_v45 = vpop.permute.xlu0 %1074 }
 0x39f   : > { %v1134_v0 = vsel %vm1094_vm1, %v1073_v34, 0.0  ;;  %v1137_v2 = vsel %vm1094_vm1, %v1075_v45, 0.0  ;;  %v1604_v29 = vpop.f32.mrf.mxu0 }
 0x3a0   : > { %1135 = vadd.xlane.f32.xlu0 %v1134_v0  ;;  %1138 = vadd.xlane.f32.xlu1 %v1137_v2  ;;  %v4714_v0 = vld [vmem:[%s5686_s1 + $0x98] ss:$0 sm:$0xff] }
 0x3a1   : > { %v3687_v62 = vpop.f32.mrf.mxu0 }
 0x3a2   : > { %v1077_v7 = vpop.permute.xlu1 %1076 }
 0x3a3   : > { %v1140_v8 = vsel %vm1094_vm1, %v1077_v7, 0.0  ;;  %v1614_v59 = vpop.f32.mrf.mxu0 }
 0x3a4   : > { %1141 = vadd.xlane.f32.xlu0 %v1140_v8 }
 0x3a5   : > { %v4716_v2 = vpop.f32.mrf.mxu0 }
 0x3a7   : > { %v1624_v36 = vpop.f32.mrf.mxu0 }
 0x3a9   : > { %v3693_v61 = vpop.f32.mrf.mxu0 }
 0x40d   : > { %v1097_v6 = vpop.xlane.xlu0 %1096 }
 0x40e   : > { %v1667_v51 = vsub.f32 %v4714_v0, %v1097_v6  ;;  %v1701_v6 = vmul.f32 2.0, %v1594_v33  ;;  %v1703_v33 = vmul.f32 2.0, %v1604_v29 }
 0x411   : > { %v1103_v20 = vpop.xlane.xlu0 %1102  ;;  %v1100_v48 = vpop.xlane.xlu1 %1099 }
 0x412   : > { %v1668_v7 = vsub.f32 %v4714_v0, %v1100_v48  ;;  %v1669_v48 = vsub.f32 %v4714_v0, %v1103_v20 }
 0x415   : > { %v1106_v46 = vpop.xlane.xlu0 %1105  ;;  %v1109_v45 = vpop.xlane.xlu1 %1108 }
 0x416   : > { %v1670_v25 = vsub.f32 %v4714_v0, %v1106_v46 }
 0x419   : > { %v1112_v34 = vpop.xlane.xlu0 %1111  ;;  %v1115_v44 = vpop.xlane.xlu1 %1114 }
 0x41a   : > { %v1672_v46 = vsub.f32 %v4714_v0, %v1112_v34 }
 0x41d   : > { %v1118_v8 = vpop.xlane.xlu0 %1117 }
 0x427   : > { %v3652_v56 = vpop.f32.mrf.mxu1 }
 0x428   : > { %v1684_v49 = vadd.f32 %v3652_v56, %v1668_v7  ;;  %v1124_v7 = vpop.xlane.xlu0 %1123 }
 0x429   : > { %v1388_v42 = vpop.f32.mrf.mxu1 }
 0x42a   : > { %v4721_v24 = vsub.f32 %v1684_v49, %v1700_v54  ;;  %v1683_v19 = vadd.f32 %v1667_v51, %v1388_v42  ;;  %v1704_v54 = vmul.f32 2.0, %v3684_v39 }
 0x42b   : > { %v3655_v27 = vpop.f32.mrf.mxu1 }
 0x42c   : > { %v4724_v35 = vsub.f32 %v1683_v19, %v1699_v38  ;;  %v1686_v58 = vadd.f32 %v3655_v27, %v1670_v25  ;;  %v1735_v56 = vsel %vm1731_vm2, %v4721_v24, inf  ;;  %v1121_v19 = vpop.xlane.xlu1 %1120  ;;  %v1671_v27 = vsub.f32 %v4714_v0, %v1109_v45  ;;  %v1130_v45 = vpop.xlane.xlu0 %1129 }
 0x42d   : > { %v1398_v40 = vpop.f32.mrf.mxu1  ;;  %1736 = vmin.xlane.f32.xlu0 %v1735_v56  ;;  %v1706_v56 = vmul.f32 2.0, %v3687_v62 }
 0x42e   : > { %v4729_v49 = vsub.f32 %v1686_v58, %v1702_v18  ;;  %v1685_v42 = vadd.f32 %v1669_v48, %v1398_v40  ;;  %v1732_v51 = vsel %vm1731_vm2, %v4724_v35, inf  ;;  %v1634_v18 = vpop.f32.mrf.mxu0  ;;  %v1674_v40 = vsub.f32 %v4714_v0, %v1118_v8 }
 0x42f   : > { %v3658_v38 = vpop.f32.mrf.mxu1  ;;  %1733 = vmin.xlane.f32.xlu1 %v1732_v51 }
 0x430   : > { %v4734_v25 = vsub.f32 %v1685_v42, %v1701_v6  ;;  %v1688_v16 = vadd.f32 %v3658_v38, %v1672_v46  ;;  %v1741_v20 = vsel %vm1731_vm2, %v4729_v49, inf  ;;  %v1673_v46 = vsub.f32 %v4714_v0, %v1115_v44  ;;  %v1127_v8 = vpop.xlane.xlu1 %1126 }
 0x431   : > { %v1408_v34 = vpop.f32.mrf.mxu1  ;;  %1742 = vmin.xlane.f32.xlu0 %v1741_v20  ;;  %v1705_v38 = vmul.f32 2.0, %v1614_v59  ;;  %v1708_v44 = vmul.f32 2.0, %v4716_v2 }
 0x432   : > { %v4739_v48 = vsub.f32 %v1688_v16, %v1704_v54  ;;  %v1687_v39 = vadd.f32 %v1671_v27, %v1408_v34  ;;  %v1738_v58 = vsel %vm1731_vm2, %v4734_v25, inf  ;;  %v3696_v27 = vpop.f32.mrf.mxu0  ;;  %v1676_v16 = vsub.f32 %v4714_v0, %v1124_v7  ;;  %v1136_v7 = vpop.xlane.xlu0 %1135 }
 0x433   : > { %v3661_v6 = vpop.f32.mrf.mxu1  ;;  %1739 = vmin.xlane.f32.xlu1 %v1738_v58 }
 0x434   : > { %v4744_v42 = vsub.f32 %v1687_v39, %v1703_v33  ;;  %v1690_v29 = vadd.f32 %v3661_v6, %v1674_v40  ;;  %v1747_v51 = vsel %vm1731_vm2, %v4739_v48, inf  ;;  %v1675_v40 = vsub.f32 %v4714_v0, %v1121_v19 }
 0x435   : > { %v1418_v54 = vpop.f32.mrf.mxu1  ;;  %1748 = vmin.xlane.f32.xlu0 %v1747_v51  ;;  %v1707_v6 = vmul.f32 2.0, %v1624_v36  ;;  %v1710_v19 = vmul.f32 2.0, %v3693_v61 }
 0x436   : > { %v4749_v20 = vsub.f32 %v1690_v29, %v1706_v56  ;;  %v1689_v62 = vadd.f32 %v1673_v46, %v1418_v54  ;;  %v1744_v34 = vsel %vm1731_vm2, %v4744_v42, inf  ;;  %v1644_v46 = vpop.f32.mrf.mxu0  ;;  %v1678_v29 = vsub.f32 %v4714_v0, %v1130_v45 }
 0x437   : > { %v3664_v33 = vpop.f32.mrf.mxu1  ;;  %1745 = vmin.xlane.f32.xlu1 %v1744_v34 }
 0x438   : > { %v4755_v39 = vsub.f32 %v1689_v62, %v1705_v38  ;;  %v1692_v59 = vadd.f32 %v3664_v33, %v1676_v16  ;;  %v1753_v58 = vsel %vm1731_vm2, %v4749_v20, inf  ;;  %v1133_v38 = vpop.xlane.xlu1 %1132  ;;  %v1677_v16 = vsub.f32 %v4714_v0, %v1127_v8  ;;  %v1142_v8 = vpop.xlane.xlu0 %1141 }
 0x439   : > { %v1428_v56 = vpop.f32.mrf.mxu1  ;;  %1754 = vmin.xlane.f32.xlu0 %v1753_v58  ;;  %v1709_v58 = vmul.f32 2.0, %v1634_v18 }
 0x43a   : > { %v4760_v51 = vsub.f32 %v1692_v59, %v1708_v44  ;;  %v1691_v2 = vadd.f32 %v1675_v40, %v1428_v56  ;;  %v1750_v54 = vsel %vm1731_vm2, %v4755_v39, inf  ;;  %v3699_v44 = vpop.f32.mrf.mxu0  ;;  %v1680_v40 = vsub.f32 %v4714_v0, %v1136_v7 }
 0x43b   : > { %v3667_v62 = vpop.f32.mrf.mxu1  ;;  %1751 = vmin.xlane.f32.xlu1 %v1750_v54  ;;  %v1712_v54 = vmul.f32 2.0, %v3696_v27 }
 0x43c   : > { %v4765_v34 = vsub.f32 %v1691_v2, %v1707_v6  ;;  %v1694_v36 = vadd.f32 %v3667_v62, %v1678_v29  ;;  %v1759_v33 = vsel %vm1731_vm2, %v4760_v51, inf  ;;  %v1679_v29 = vsub.f32 %v4714_v0, %v1133_v38  ;;  %v1139_v7 = vpop.xlane.xlu1 %1138  ;;  %v1654_v38 = vpop.f32.mrf.mxu0 }
 0x43d   : > { %v1438_v45 = vpop.f32.mrf.mxu1  ;;  %1760 = vmin.xlane.f32.xlu0 %v1759_v33  ;;  %v1711_v33 = vmul.f32 2.0, %v1644_v46 }
 0x43e   : > { %v4770_v59 = vsub.f32 %v1694_v36, %v1710_v19  ;;  %v1693_v61 = vadd.f32 %v1677_v16, %v1438_v45  ;;  %v1756_v56 = vsel %vm1731_vm2, %v4765_v34, inf  ;;  %v1682_v16 = vsub.f32 %v4714_v0, %v1142_v8 }
 0x43f   : > { %v3670_v6 = vpop.f32.mrf.mxu1  ;;  %1757 = vmin.xlane.f32.xlu1 %v1756_v56  ;;  %v1714_v56 = vmul.f32 2.0, %v3699_v44 }
 0x440   : > { %v4775_v2 = vsub.f32 %v1693_v61, %v1709_v58  ;;  %v1696_v18 = vadd.f32 %v3670_v6, %v1680_v40  ;;  %v1765_v62 = vsel %vm1731_vm2, %v4770_v59, inf  ;;  %v1681_v40 = vsub.f32 %v4714_v0, %v1139_v7  ;;  %v978_v7 = vld [vmem:[%s5686_s1 + $0x80] sm:$0xf] }
 0x441   : > { %v1448_v19 = vpop.f32.mrf.mxu1  ;;  %1766 = vmin.xlane.f32.xlu0 %v1765_v62  ;;  %3726 = vmatprep.subr.msk.mxu0 %vm1956_vm3, %v978_v7 }
 0x442   : > { %v4780_v36 = vsub.f32 %v1696_v18, %v1712_v54  ;;  %v1695_v27 = vadd.f32 %v1679_v29, %v1448_v19  ;;  %v1762_v45 = vsel %vm1731_vm2, %v4775_v2, inf  ;;  %v1713_v54 = vmul.f32 2.0, %v1654_v38  ;;  %v977_v19 = vld [vmem:[%s5686_s1 + $0x78] sm:$0xf]  ;;  %3727 = vmatpush3.msk.msra.mxu0 %vm1956_vm3, %v978_v7 }
 0x443   : > { %v3673_v58 = vpop.f32.mrf.mxu1  ;;  %1763 = vmin.xlane.f32.xlu1 %v1762_v45  ;;  %3700 = vmatprep.subr.msk.mxu1 %vm1956_vm3, %v977_v19 }
 0x444   : > { %5760 = vst [vmem:[#allocation27_spill] sm:$0xff] %v4780_v36  ;;  %v4785_v61 = vsub.f32 %v1695_v27, %v1711_v33  ;;  %v1698_v46 = vadd.f32 %v3673_v58, %v1682_v16  ;;  %v1771_v6 = vsel %vm1731_vm2, %v4780_v36, inf  ;;  %3701 = vmatpush3.msk.msra.mxu1 %vm1956_vm3, %v977_v19 }
 0x445   : > { %v1458_v62 = vpop.f32.mrf.mxu1  ;;  %1772 = vmin.xlane.f32.xlu0 %v1771_v6 }
 0x446   : > { %5761 = vst [vmem:[#allocation28_spill] sm:$0xff] %v4785_v61  ;;  %v4789_v8 = vsub.f32 %v1698_v46, %v1714_v56  ;;  %v1697_v29 = vadd.f32 %v1681_v40, %v1458_v62  ;;  %v1768_v44 = vsel %vm1731_vm2, %v4785_v61, inf }
 0x447   : > { %1769 = vmin.xlane.f32.xlu1 %v1768_v44 }
 0x448   : > { %5762 = vst [vmem:[#allocation29_spill] sm:$0xff] %v4789_v8  ;;  %v4793_v18 = vsub.f32 %v1697_v29, %v1713_v54  ;;  %v1777_v0 = vsel %vm1731_vm2, %v4789_v8, inf }
 0x449   : > { %1778 = vmin.xlane.f32.xlu0 %v1777_v0 }
 0x44a   : > { %5763 = vst [vmem:[#allocation30_spill] sm:$0xff] %v4793_v18  ;;  %v1774_v33 = vsel %vm1731_vm2, %v4793_v18, inf }
 0x44b   : > { %1775 = vmin.xlane.f32.xlu1 %v1774_v33 }
 0x4b6   : > { %v1737_v16 = vpop.xlane.xlu0 %1736 }
 0x4b7   : > { %v1781_v27 = vsub.f32 %v1737_v16, %v4721_v24 }
 0x4b8   : > { %v1734_v45 = vpop.xlane.xlu1 %1733 }
 0x4b9   : > { %v1798_v56 = vmul.f32 1.442695, %v1781_v27  ;;  %v1780_v38 = vsub.f32 %v1734_v45, %v4724_v35 }
 0x4ba   : > { %v1743_v58 = vpop.xlane.xlu0 %1742 }
 0x4bb   : > { %3869 = vpow2.f32 %v1798_v56  ;;  %v1796_v40 = vmul.f32 1.442695, %v1780_v38  ;;  %v1783_v46 = vsub.f32 %v1743_v58, %v4729_v49 }
 0x4bc   : > { %v1740_v6 = vpop.xlane.xlu1 %1739 }
 0x4bd   : > { %3871 = vpow2.f32 %v1796_v40  ;;  %v1802_v62 = vmul.f32 1.442695, %v1783_v46  ;;  %v1782_v54 = vsub.f32 %v1740_v6, %v4734_v25 }
 0x4be   : > { %v1749_v29 = vpop.xlane.xlu0 %1748 }
 0x4bf   : > { %3873 = vpow2.f32 %v1802_v62  ;;  %v1800_v44 = vmul.f32 1.442695, %v1782_v54  ;;  %v1785_v0 = vsub.f32 %v1749_v29, %v4739_v48 }
 0x4c0   : > { %v1746_v33 = vpop.xlane.xlu1 %1745 }
 0x4c1   : > { %3875 = vpow2.f32 %v1800_v44  ;;  %v1806_v7 = vmul.f32 1.442695, %v1785_v0  ;;  %v1784_v19 = vsub.f32 %v1746_v33, %v4744_v42 }
 0x4c2   : > { %v1755_v16 = vpop.xlane.xlu0 %1754 }
 0x4c3   : > { %3877 = vpow2.f32 %v1806_v7  ;;  %v1804_v27 = vmul.f32 1.442695, %v1784_v19  ;;  %v1787_v45 = vsub.f32 %v1755_v16, %v4749_v20 }
 0x4c4   : > { %v1752_v56 = vpop.xlane.xlu1 %1751 }
 0x4c5   : > { %3879 = vpow2.f32 %v1804_v27  ;;  %v1810_v38 = vmul.f32 1.442695, %v1787_v45  ;;  %v1786_v58 = vsub.f32 %v1752_v56, %v4755_v39 }
 0x4c6   : > { %v1761_v40 = vpop.xlane.xlu0 %1760 }
 0x4c7   : > { %3881 = vpow2.f32 %v1810_v38  ;;  %v1808_v46 = vmul.f32 1.442695, %v1786_v58  ;;  %v1789_v6 = vsub.f32 %v1761_v40, %v4760_v51 }
 0x4c8   : > { %v4814_v62 = vpop.eup %3869  ;;  %v1758_v54 = vpop.xlane.xlu1 %1757 }
 0x4c9   : > { %3883 = vpow2.f32 %v1808_v46  ;;  %v1814_v29 = vmul.f32 1.442695, %v1789_v6  ;;  %v1788_v44 = vsub.f32 %v1758_v54, %v4765_v34  ;;  %v1831_v0 = vsel %vm1731_vm2, %v4814_v62, 0.0 }
 0x4ca   : > { %v4819_v33 = vpop.eup %3871  ;;  %1832 = vadd.xlane.f32.xlu0 %v1831_v0  ;;  %v1767_v7 = vpop.xlane.xlu0 %1766 }
 0x4cb   : > { %3885 = vpow2.f32 %v1814_v29  ;;  %v1812_v19 = vmul.f32 1.442695, %v1788_v44  ;;  %v1791_v16 = vsub.f32 %v1767_v7, %v4770_v59  ;;  %v1828_v27 = vsel %vm1731_vm2, %v4819_v33, 0.0 }
 0x4cc   : > { %v4824_v45 = vpop.eup %3873  ;;  %1829 = vadd.xlane.f32.xlu1 %v1828_v27  ;;  %v1764_v56 = vpop.xlane.xlu1 %1763 }
 0x4cd   : > { %3887 = vpow2.f32 %v1812_v19  ;;  %v1818_v38 = vmul.f32 1.442695, %v1791_v16  ;;  %v1790_v58 = vsub.f32 %v1764_v56, %v4775_v2  ;;  %v1837_v40 = vsel %vm1731_vm2, %v4824_v45, 0.0 }
 0x4ce   : > { %v4829_v46 = vpop.eup %3875  ;;  %1838 = vadd.xlane.f32.xlu0 %v1837_v40  ;;  %v1773_v6 = vpop.xlane.xlu0 %1772 }
 0x4cf   : > { %3889 = vpow2.f32 %v1818_v38  ;;  %v1816_v54 = vmul.f32 1.442695, %v1790_v58  ;;  %v1793_v29 = vsub.f32 %v1773_v6, %v4780_v36  ;;  %v1834_v44 = vsel %vm1731_vm2, %v4829_v46, 0.0 }
 0x4d0   : > { %v4834_v0 = vpop.eup %3877  ;;  %1835 = vadd.xlane.f32.xlu1 %v1834_v44  ;;  %v1770_v7 = vpop.xlane.xlu1 %1769  ;;  %v2542_v36 = vmul.f32 %v4528_v9, %v4538_v13  ;;  %v2548_v13 = vmul.f32 %v4576_v50, %v4582_v30  ;;  %v2554_v30 = vmul.f32 %v4612_v26, %v4621_v52 }
 0x4d1   : > { %3891 = vpow2.f32 %v1816_v54  ;;  %v1822_v19 = vmul.f32 1.442695, %v1793_v29  ;;  %v1792_v16 = vsub.f32 %v1770_v7, %v4785_v61  ;;  %v1843_v27 = vsel %vm1731_vm2, %v4834_v0, 0.0 }
 0x4d2   : > { %v4839_v56 = vpop.eup %3879  ;;  %1844 = vadd.xlane.f32.xlu0 %v1843_v27  ;;  %v1779_v38 = vpop.xlane.xlu0 %1778 }
 0x4d3   : > { %3893 = vpow2.f32 %v1822_v19  ;;  %v1820_v58 = vmul.f32 1.442695, %v1792_v16  ;;  %v1795_v40 = vsub.f32 %v1779_v38, %v4789_v8  ;;  %v1840_v6 = vsel %vm1731_vm2, %v4839_v56, 0.0 }
 0x4d4   : > { %v4844_v44 = vpop.eup %3881  ;;  %1841 = vadd.xlane.f32.xlu1 %v1840_v6  ;;  %v1776_v54 = vpop.xlane.xlu1 %1775 }
 0x4d5   : > { %3895 = vpow2.f32 %v1820_v58  ;;  %v1826_v29 = vmul.f32 1.442695, %v1795_v40  ;;  %v1794_v7 = vsub.f32 %v1776_v54, %v4793_v18  ;;  %v1849_v61 = vsel %vm1731_vm2, %v4844_v44, 0.0 }
 0x4d6   : > { %v4849_v27 = vpop.eup %3883  ;;  %1850 = vadd.xlane.f32.xlu0 %v1849_v61 }
 0x4d7   : > { %3897 = vpow2.f32 %v1826_v29  ;;  %v1824_v19 = vmul.f32 1.442695, %v1794_v7  ;;  %v1846_v16 = vsel %vm1731_vm2, %v4849_v27, 0.0 }
 0x4d8   : > { %v4853_v38 = vpop.eup %3885  ;;  %1847 = vadd.xlane.f32.xlu1 %v1846_v16 }
 0x4d9   : > { %3899 = vpow2.f32 %v1824_v19  ;;  %v1855_v58 = vsel %vm1731_vm2, %v4853_v38, 0.0 }
 0x4da   : > { %v4857_v40 = vpop.eup %3887  ;;  %1856 = vadd.xlane.f32.xlu0 %v1855_v58 }
 0x4db   : > { %v1852_v6 = vsel %vm1731_vm2, %v4857_v40, 0.0 }
 0x4dc   : > { %v4861_v54 = vpop.eup %3889  ;;  %1853 = vadd.xlane.f32.xlu1 %v1852_v6 }
 0x4dd   : > { %v1861_v61 = vsel %vm1731_vm2, %v4861_v54, 0.0 }
 0x4de   : > { %v4865_v29 = vpop.eup %3891  ;;  %1862 = vadd.xlane.f32.xlu0 %v1861_v61 }
 0x4df   : > { %v1858_v7 = vsel %vm1731_vm2, %v4865_v29, 0.0 }
 0x4e0   : > { %v4869_v19 = vpop.eup %3893  ;;  %1859 = vadd.xlane.f32.xlu1 %v1858_v7 }
 0x4e1   : > { %v1867_v16 = vsel %vm1731_vm2, %v4869_v19, 0.0 }
 0x4e2   : > { %v4873_v58 = vpop.eup %3895  ;;  %1868 = vadd.xlane.f32.xlu0 %v1867_v16  ;;  %v2541_v16 = vmul.f32 %v4525_v31, %v4532_v11  ;;  %v2545_v11 = vmul.f32 %v4554_v23, %v4559_v32  ;;  %v2549_v32 = vmul.f32 %v4579_v53, %v4585_v55  ;;  %v2553_v55 = vmul.f32 %v4604_v10, %v4610_v21 }
 0x4e3   : > { %v1864_v6 = vsel %vm1731_vm2, %v4873_v58, 0.0 }
 0x4e4   : > { %v4877_v18 = vpop.eup %3897  ;;  %1865 = vadd.xlane.f32.xlu1 %v1864_v6  ;;  %v2544_v6 = vmul.f32 %v4545_v15, %v4552_v22  ;;  %v2550_v22 = vmul.f32 %v4587_v57, %v4594_v1  ;;  %v2556_v1 = vmul.f32 %v4627_v3, %v4633_v17  ;;  %v2327_v15 = vld [vmem:[%s5024_s24 + $0x50] sm:$0xff] }
 0x4e5   : > { %v1873_v61 = vsel %vm1731_vm2, %v4877_v18, 0.0 }
 0x4e6   : > { %v4881_v8 = vpop.eup %3899  ;;  %1874 = vadd.xlane.f32.xlu0 %v1873_v61  ;;  %v2543_v61 = vmul.f32 %v4534_v12, %v4543_v28  ;;  %v2547_v28 = vmul.f32 %v4569_v43, %v4573_v47  ;;  %v2551_v47 = vmul.f32 %v4591_v63, %v4597_v4 }
 0x4e7   : > { %v1870_v7 = vsel %vm1731_vm2, %v4881_v8, 0.0 }
 0x4e8   : > { %1871 = vadd.xlane.f32.xlu1 %v1870_v7  ;;  %v2546_v7 = vmul.f32 %v4562_v37, %v4567_v41  ;;  %v2552_v41 = vmul.f32 %v4599_v5, %v4607_v14  ;;  %v5764_v14 = vld [vmem:[#allocation25_spill] sm:$0xff] }
 0x4e9   : > { %v2555_v4 = vmul.f32 %v5764_v14, %v4624_v60 }
 0x4f9   : > { %2575 = vrot.lane.b32.xlu1 %v2542_v36, %s4060_s4 }
 0x4fc   : > { %2573 = vrot.lane.b32.xlu0 %v2541_v16, %s4060_s4 }
 0x4fd   : > { %2579 = vrot.lane.b32.xlu1 %v2544_v6, %s4060_s4 }
 0x500   : > { %2577 = vrot.lane.b32.xlu0 %v2543_v61, %s4060_s4 }
 0x501   : > { %2583 = vrot.lane.b32.xlu1 %v2546_v7, %s4060_s4 }
 0x504   : > { %2581 = vrot.lane.b32.xlu0 %v2545_v11, %s4060_s4 }
 0x505   : > { %2587 = vrot.lane.b32.xlu1 %v2548_v13, %s4060_s4 }
 0x508   : > { %2585 = vrot.lane.b32.xlu0 %v2547_v28, %s4060_s4 }
 0x509   : > { %2591 = vrot.lane.b32.xlu1 %v2550_v22, %s4060_s4 }
 0x50c   : > { %2589 = vrot.lane.b32.xlu0 %v2549_v32, %s4060_s4 }
 0x50d   : > { %2595 = vrot.lane.b32.xlu1 %v2552_v41, %s4060_s4 }
 0x510   : > { %2593 = vrot.lane.b32.xlu0 %v2551_v47, %s4060_s4 }
 0x511   : > { %2599 = vrot.lane.b32.xlu1 %v2554_v30, %s4060_s4 }
 0x514   : > { %2597 = vrot.lane.b32.xlu0 %v2553_v55, %s4060_s4 }
 0x515   : > { %2603 = vrot.lane.b32.xlu1 %v2556_v1, %s4060_s4 }
 0x518   : > { %2601 = vrot.lane.b32.xlu0 %v2555_v4, %s4060_s4 }
 0x519   : > { %2991 = vrot.lane.b32.xlu1 %v4721_v24, %s4061_s17 }
 0x51c   : > { %2989 = vrot.lane.b32.xlu0 %v4724_v35, %s4061_s17 }
 0x520   : > { %2993 = vrot.lane.b32.xlu0 %v4734_v25, %s4061_s17 }
 0x553   : > { %v1833_v21 = vpop.xlane.xlu0 %1832 }
 0x554   : > { %3901 = vrcp.f32 %v1833_v21 }
 0x555   : > { %v1830_v52 = vpop.xlane.xlu1 %1829 }
 0x556   : > { %3903 = vrcp.f32 %v1830_v52 }
 0x557   : > { %v1839_v17 = vpop.xlane.xlu0 %1838 }
 0x558   : > { %3905 = vrcp.f32 %v1839_v17 }
 0x559   : > { %v1836_v36 = vpop.xlane.xlu1 %1835 }
 0x55a   : > { %3907 = vrcp.f32 %v1836_v36 }
 0x55b   : > { %v1845_v60 = vpop.xlane.xlu0 %1844 }
 0x55c   : > { %3909 = vrcp.f32 %v1845_v60 }
 0x55d   : > { %v1842_v16 = vpop.xlane.xlu1 %1841 }
 0x55e   : > { %3911 = vrcp.f32 %v1842_v16 }
 0x55f   : > { %v1851_v6 = vpop.xlane.xlu0 %1850 }
 0x560   : > { %3913 = vrcp.f32 %v1851_v6 }
 0x561   : > { %v3902_v61 = vpop.eup %3901  ;;  %v1848_v7 = vpop.xlane.xlu1 %1847 }
 0x562   : > { %3915 = vrcp.f32 %v1848_v7  ;;  %v1879_v11 = vmul.f32 %v3902_v61, %v4814_v62 }
 0x563   : > { %v3904_v13 = vpop.eup %3903  ;;  %v1857_v28 = vpop.xlane.xlu0 %1856 }
 0x564   : > { %3917 = vrcp.f32 %v1857_v28  ;;  %v1877_v22 = vmul.f32 %v3904_v13, %v4819_v33  ;;  %v2254_v32 = vmul.f32 %v1879_v11, %v4721_v24 }
 0x565   : > { %v3906_v41 = vpop.eup %3905  ;;  %v1854_v47 = vpop.xlane.xlu1 %1853 }
 0x566   : > { %3919 = vrcp.f32 %v1854_v47  ;;  %3702 = vmatprep.mubr.msk.f32.mxu1 %vm1731_vm2, %v1877_v22  ;;  %3728 = vmatprep.mubr.msk.f32.mxu0 %vm1731_vm2, %v1877_v22  ;;  %v2272_v30 = vsel %vm1731_vm2, %v2254_v32, 0.0  ;;  %v2253_v55 = vmul.f32 %v1877_v22, %v4724_v35  ;;  %v1883_v62 = vmul.f32 %v3906_v41, %v4824_v45 }
 0x567   : > { %v3908_v1 = vpop.eup %3907  ;;  %2273 = vadd.xlane.f32.xlu0 %v2272_v30  ;;  %3703 = vmatmul.mubr.msk.f32.vlgmr.msra.gmra.mxu1 %vm1731_vm2, %v1879_v11  ;;  %v1863_v33 = vpop.xlane.xlu0 %1862 }
 0x568   : > { %3729 = vmatmul.mubr.msk.f32.vlgmr.msra.gmra.mxu0 %vm1731_vm2, %v1879_v11  ;;  %3921 = vrcp.f32 %v1863_v33  ;;  %v2269_v24 = vsel %vm1731_vm2, %v2253_v55, 0.0  ;;  %v1881_v4 = vmul.f32 %v3908_v1, %v4829_v46  ;;  %v2256_v21 = vmul.f32 %v1883_v62, %v4729_v49 }
 0x569   : > { %v3910_v52 = vpop.eup %3909  ;;  %2270 = vadd.xlane.f32.xlu1 %v2269_v24  ;;  %v1860_v17 = vpop.xlane.xlu1 %1859 }
 0x56a   : > { %3923 = vrcp.f32 %v1860_v17  ;;  %3705 = vmatprep.mubr.msk.f32.mxu1 %vm1731_vm2, %v1881_v4  ;;  %3731 = vmatprep.mubr.msk.f32.mxu0 %vm1731_vm2, %v1881_v4  ;;  %v2278_v35 = vsel %vm1731_vm2, %v2256_v21, 0.0  ;;  %v2255_v45 = vmul.f32 %v1881_v4, %v4734_v25  ;;  %v1887_v36 = vmul.f32 %v3910_v52, %v4834_v0 }
 0x56b   : > { %v3912_v60 = vpop.eup %3911  ;;  %2279 = vadd.xlane.f32.xlu0 %v2278_v35  ;;  %3706 = vmatmul.mubr.msk.f32.gmra.mxu1 %vm1731_vm2, %v1883_v62  ;;  %v1869_v46 = vpop.xlane.xlu0 %1868 }
 0x56c   : > { %3732 = vmatmul.mubr.msk.f32.gmra.mxu0 %vm1731_vm2, %v1883_v62  ;;  %3925 = vrcp.f32 %v1869_v46  ;;  %v2275_v16 = vsel %vm1731_vm2, %v2255_v45, 0.0  ;;  %v1885_v6 = vmul.f32 %v3912_v60, %v4839_v56  ;;  %v2258_v61 = vmul.f32 %v1887_v36, %v4739_v48 }
 0x56d   : > { %v3914_v7 = vpop.eup %3913  ;;  %2276 = vadd.xlane.f32.xlu1 %v2275_v16  ;;  %v1866_v11 = vpop.xlane.xlu1 %1865 }
 0x56e   : > { %3927 = vrcp.f32 %v1866_v11  ;;  %3708 = vmatprep.mubr.msk.f32.mxu1 %vm1731_vm2, %v1885_v6  ;;  %3734 = vmatprep.mubr.msk.f32.mxu0 %vm1731_vm2, %v1885_v6  ;;  %v2284_v25 = vsel %vm1731_vm2, %v2258_v61, 0.0  ;;  %v2257_v0 = vmul.f32 %v1885_v6, %v4744_v42  ;;  %v1891_v13 = vmul.f32 %v3914_v7, %v4844_v44  ;;  %v5765_v61 = vld [vmem:[#allocation27_spill] sm:$0xff] }
 0x56f   : > { %v3916_v28 = vpop.eup %3915  ;;  %2285 = vadd.xlane.f32.xlu0 %v2284_v25  ;;  %3709 = vmatmul.mubr.msk.f32.gmra.mxu1 %vm1731_vm2, %v1887_v36  ;;  %v1875_v56 = vpop.xlane.xlu0 %1874  ;;  %v5766_v25 = vld [vmem:[#allocation28_spill] sm:$0xff] }
 0x570   : > { %3735 = vmatmul.mubr.msk.f32.gmra.mxu0 %vm1731_vm2, %v1887_v36  ;;  %3929 = vrcp.f32 %v1875_v56  ;;  %v2281_v22 = vsel %vm1731_vm2, %v2257_v0, 0.0  ;;  %v1889_v32 = vmul.f32 %v3916_v28, %v4849_v27  ;;  %v2260_v41 = vmul.f32 %v1891_v13, %v4749_v20 }
 0x571   : > { %v3918_v47 = vpop.eup %3917  ;;  %2282 = vadd.xlane.f32.xlu1 %v2281_v22  ;;  %v1872_v30 = vpop.xlane.xlu1 %1871  ;;  %v5767_v22 = vld [vmem:[#allocation29_spill] sm:$0xff] }
 0x572   : > { %3931 = vrcp.f32 %v1872_v30  ;;  %3711 = vmatprep.mubr.msk.f32.mxu1 %vm1731_vm2, %v1889_v32  ;;  %3737 = vmatprep.mubr.msk.f32.mxu0 %vm1731_vm2, %v1889_v32  ;;  %v2290_v44 = vsel %vm1731_vm2, %v2260_v41, 0.0  ;;  %v2259_v55 = vmul.f32 %v1889_v32, %v4755_v39  ;;  %v1895_v62 = vmul.f32 %v3918_v47, %v4853_v38  ;;  %v5768_v41 = vld [vmem:[#allocation30_spill] sm:$0xff] }
 0x573   : > { %v3920_v1 = vpop.eup %3919  ;;  %2291 = vadd.xlane.f32.xlu0 %v2290_v44  ;;  %3712 = vmatmul.mubr.msk.f32.gmra.mxu1 %vm1731_vm2, %v1891_v13 }
 0x574   : > { %3738 = vmatmul.mubr.msk.f32.gmra.mxu0 %vm1731_vm2, %v1891_v13  ;;  %v2287_v27 = vsel %vm1731_vm2, %v2259_v55, 0.0  ;;  %v1893_v33 = vmul.f32 %v3920_v1, %v4857_v40  ;;  %v2262_v24 = vmul.f32 %v1895_v62, %v4760_v51  ;;  %v2318_v55 = vld [vmem:[%s5024_s24 + $0x8] sm:$0xff] }
 0x575   : > { %v3922_v4 = vpop.eup %3921  ;;  %2288 = vadd.xlane.f32.xlu1 %v2287_v27  ;;  %v2576_v44 = vpop.permute.xlu1 %2575  ;;  %v5769_v1 = vld [vmem:[#allocation6_spill] sm:$0xff] }
 0x576   : > { %3714 = vmatprep.mubr.msk.f32.mxu1 %vm1731_vm2, %v1893_v33  ;;  %3740 = vmatprep.mubr.msk.f32.mxu0 %vm1731_vm2, %v1893_v33  ;;  %v2296_v38 = vsel %vm1731_vm2, %v2262_v24, 0.0  ;;  %v2261_v21 = vmul.f32 %v1893_v33, %v4765_v34  ;;  %v1899_v52 = vmul.f32 %v3922_v4, %v4861_v54  ;;  %v2317_v24 = vld [vmem:[%s5024_s24] sm:$0xff] }
 0x577   : > { %v3924_v17 = vpop.eup %3923  ;;  %2297 = vadd.xlane.f32.xlu0 %v2296_v38  ;;  %3715 = vmatmul.mubr.msk.f32.gmra.mxu1 %vm1731_vm2, %v1895_v62 }
 0x578   : > { %3741 = vmatmul.mubr.msk.f32.gmra.mxu0 %vm1731_vm2, %v1895_v62  ;;  %v2293_v40 = vsel %vm1731_vm2, %v2261_v21, 0.0  ;;  %v1897_v35 = vmul.f32 %v3924_v17, %v4865_v29  ;;  %v2264_v45 = vmul.f32 %v1899_v52, %v4770_v59 }
 0x579   : > { %v3926_v36 = vpop.eup %3925  ;;  %2294 = vadd.xlane.f32.xlu1 %v2293_v40 }
 0x57a   : > { %3717 = vmatprep.mubr.msk.f32.mxu1 %vm1731_vm2, %v1897_v35  ;;  %3743 = vmatprep.mubr.msk.f32.mxu0 %vm1731_vm2, %v1897_v35  ;;  %v2302_v54 = vsel %vm1731_vm2, %v2264_v45, 0.0  ;;  %v2263_v60 = vmul.f32 %v1897_v35, %v4775_v2  ;;  %v1903_v46 = vmul.f32 %v3926_v36, %v4869_v19 }
 0x57b   : > { %v3928_v16 = vpop.eup %3927  ;;  %2303 = vadd.xlane.f32.xlu0 %v2302_v54  ;;  %3718 = vmatmul.mubr.msk.f32.gmra.mxu1 %vm1731_vm2, %v1899_v52 }
 0x57c   : > { %3744 = vmatmul.mubr.msk.f32.gmra.mxu0 %vm1731_vm2, %v1899_v52  ;;  %v2299_v29 = vsel %vm1731_vm2, %v2263_v60, 0.0  ;;  %v1901_v6 = vmul.f32 %v3928_v16, %v4873_v58  ;;  %v2266_v7 = vmul.f32 %v1903_v46, %v5765_v61  ;;  %v5770_v52 = vld [vmem:[#allocation5_spill] sm:$0xff] }
 0x57d   : > { %v3930_v11 = vpop.eup %3929  ;;  %2300 = vadd.xlane.f32.xlu1 %v2299_v29 }
 0x57e   : > { %3720 = vmatprep.mubr.msk.f32.mxu1 %vm1731_vm2, %v1901_v6  ;;  %3746 = vmatprep.mubr.msk.f32.mxu0 %vm1731_vm2, %v1901_v6  ;;  %v2308_v19 = vsel %vm1731_vm2, %v2266_v7, 0.0  ;;  %v2265_v0 = vmul.f32 %v1901_v6, %v5766_v25  ;;  %v1907_v13 = vmul.f32 %v3930_v11, %v4877_v18 }
 0x57f   : > { %v3932_v28 = vpop.eup %3931  ;;  %2309 = vadd.xlane.f32.xlu0 %v2308_v19  ;;  %3721 = vmatmul.mubr.msk.f32.gmra.mxu1 %vm1731_vm2, %v1903_v46 }
 0x580   : > { %3747 = vmatmul.mubr.msk.f32.gmra.mxu0 %vm1731_vm2, %v1903_v46  ;;  %v2305_v58 = vsel %vm1731_vm2, %v2265_v0, 0.0  ;;  %v1905_v56 = vmul.f32 %v3932_v28, %v4881_v8  ;;  %v2268_v32 = vmul.f32 %v1907_v13, %v5767_v22  ;;  %v2574_v8 = vpop.permute.xlu0 %2573  ;;  %v2320_v0 = vld [vmem:[%s5024_s24 + $0x18] sm:$0xff] }
 0x581   : > { %2306 = vadd.xlane.f32.xlu1 %v2305_v58  ;;  %3933 = vrcp.f32 %v2574_v8 }
 0x582   : > { %3723 = vmatprep.mubr.msk.f32.mxu1 %vm1731_vm2, %v1905_v56  ;;  %3749 = vmatprep.mubr.msk.f32.mxu0 %vm1731_vm2, %v1905_v56  ;;  %v2314_v18 = vsel %vm1731_vm2, %v2268_v32, 0.0  ;;  %v2267_v47 = vmul.f32 %v1905_v56, %v5768_v41  ;;  %3935 = vrcp.f32 %v2576_v44  ;;  %v2319_v56 = vld [vmem:[%s5024_s24 + $0x10] sm:$0xff] }
 0x583   : > { %2315 = vadd.xlane.f32.xlu0 %v2314_v18  ;;  %3724 = vmatmul.mubr.msk.f32.gmra.mxu1 %vm1731_vm2, %v1907_v13 }
 0x584   : > { %3750 = vmatmul.mubr.msk.f32.gmra.mxu0 %vm1731_vm2, %v1907_v13  ;;  %v2311_v30 = vsel %vm1731_vm2, %v2267_v47, 0.0  ;;  %v2578_v21 = vpop.permute.xlu0 %2577  ;;  %v5771_v13 = vld [vmem:[#allocation7_spill] sm:$0xff]  ;;  %v2580_v47 = vpop.permute.xlu1 %2579 }
 0x585   : > { %2312 = vadd.xlane.f32.xlu1 %v2311_v30  ;;  %3937 = vrcp.f32 %v2578_v21 }
 0x586   : > { %3939 = vrcp.f32 %v2580_v47 }
 0x58e   : > { %v3934_v32 = vpop.eup %3933 }
 0x58f   : > { %v3936_v18 = vpop.eup %3935 }
 0x627   : > { %v3704_v62 = vpop.f32.mrf.mxu1 }
 0x628   : > { %v2366_v27 = vsub.f32 %v3704_v62, %v5769_v1  ;;  %v3730_v33 = vpop.f32.mrf.mxu0 }
 0x629   : > { %v2334_v4 = vmul.f32 %v3730_v33, %v2318_v55  ;;  %v2026_v38 = vpop.f32.mrf.mxu1  ;;  %v2494_v16 = vmul.f32 %v3730_v33, %v3730_v33  ;;  %3941 = vlog2.f32 %v3730_v33 }
 0x62a   : > { %v2365_v17 = vsub.f32 %v2026_v38, %v5770_v52  ;;  %v5030_v40 = vpop.f32.mrf.mxu0  ;;  %v2510_v35 = vmul.f32 %v2366_v27, %v2366_v27 }
 0x62b   : > { %v2350_v45 = vadd.f32 %v3704_v62, %v2334_v4  ;;  %v2333_v36 = vmul.f32 %v2317_v24, %v5030_v40  ;;  %v3707_v54 = vpop.f32.mrf.mxu1  ;;  %v2493_v29 = vmul.f32 %v5030_v40, %v5030_v40  ;;  %v5772_v4 = vld [vmem:[#allocation8_spill] sm:$0xff] }
 0x62c   : > { %v2509_v60 = vmul.f32 %v2365_v17, %v2365_v17  ;;  %v5033_v46 = vpop.f32.mrf.mxu0  ;;  %v2526_v7 = vadd.f32 %v2510_v35, %v2494_v16  ;;  %v3938_v16 = vpop.eup %3937 }
 0x62d   : > { %2927 = vrot.lane.b32.xlu1 %v2350_v45, %s4062_s28  ;;  %2879 = vrot.lane.b32.xlu0 %v2350_v45, %s4063_s6  ;;  %v2036_v6 = vpop.f32.mrf.mxu1  ;;  %v2349_v11 = vadd.f32 %v2333_v36, %v2026_v38  ;;  %v2336_v30 = vmul.f32 %v5033_v46, %v2320_v0  ;;  %v2368_v38 = vsub.f32 %v3707_v54, %v5772_v4  ;;  %v3940_v47 = vpop.eup %3939 }
 0x62e   : > { %v2525_v19 = vadd.f32 %v2509_v60, %v2493_v29  ;;  %v2367_v28 = vsub.f32 %v2036_v6, %v5771_v13  ;;  %v5041_v58 = vpop.f32.mrf.mxu0  ;;  %v2624_v55 = vmul.f32 %v3936_v18, %v2526_v7  ;;  %v2321_v60 = vld [vmem:[%s5024_s24 + $0x20] sm:$0xff]  ;;  %v2582_v29 = vpop.permute.xlu0 %2581  ;;  %v2322_v18 = vld [vmem:[%s5024_s24 + $0x28] sm:$0xff] }
 0x62f   : > { %v2335_v44 = vmul.f32 %v2319_v56, %v5041_v58  ;;  %v2495_v24 = vmul.f32 %v5041_v58, %v5041_v58  ;;  %v2352_v21 = vadd.f32 %v3707_v54, %v2336_v30  ;;  %v3710_v45 = vpop.f32.mrf.mxu1  ;;  %v2512_v7 = vmul.f32 %v2368_v38, %v2368_v38 }
 0x630   : > { %v2511_v8 = vmul.f32 %v2367_v28, %v2367_v28  ;;  %v2622_v62 = vmul.f32 %v3934_v32, %v2525_v19  ;;  %v5048_v27 = vpop.f32.mrf.mxu0  ;;  %3943 = vrcp.f32 %v2582_v29  ;;  %v2496_v54 = vmul.f32 %v5033_v46, %v5033_v46  ;;  %v5773_v28 = vld [vmem:[#allocation9_spill] sm:$0xff] }
 0x631   : > { %2877 = vrot.lane.b32.xlu1 %v2349_v11, %s4063_s6  ;;  %2925 = vrot.lane.b32.xlu0 %v2349_v11, %s4062_s28  ;;  %v2351_v17 = vadd.f32 %v2335_v44, %v2036_v6  ;;  %v2046_v19 = vpop.f32.mrf.mxu1  ;;  %v2584_v6 = vpop.permute.xlu1 %2583 }
 0x632   : > { %v2527_v35 = vadd.f32 %v2511_v8, %v2495_v24  ;;  %v5055_v36 = vpop.f32.mrf.mxu0  ;;  %v2528_v0 = vadd.f32 %v2512_v7, %v2496_v54  ;;  %v2369_v56 = vsub.f32 %v2046_v19, %v5773_v28  ;;  %3945 = vrcp.f32 %v2584_v6  ;;  %v5774_v8 = vld [vmem:[#allocation10_spill] sm:$0xff] }
 0x633   : > { %v2337_v11 = vmul.f32 %v2321_v60, %v5055_v36  ;;  %v2370_v44 = vsub.f32 %v3710_v45, %v5774_v8  ;;  %v3713_v38 = vpop.f32.mrf.mxu1  ;;  %v2498_v54 = vmul.f32 %v5048_v27, %v5048_v27 }
 0x634   : > { %v2626_v33 = vmul.f32 %v3938_v16, %v2527_v35  ;;  %v2628_v24 = vmul.f32 %v3940_v47, %v2528_v0  ;;  %v2497_v35 = vmul.f32 %v5055_v36, %v5055_v36  ;;  %v2324_v47 = vld [vmem:[%s5024_s24 + $0x38] sm:$0xff] }
 0x635   : > { %2671 = vrot.lane.b32.xlu1 %v2624_v55, %s4059_s27  ;;  %2669 = vrot.lane.b32.xlu0 %v2622_v62, %s4059_s27  ;;  %v2353_v32 = vadd.f32 %v2337_v11, %v2046_v19  ;;  %v2338_v55 = vmul.f32 %v5048_v27, %v2322_v18  ;;  %v2513_v62 = vmul.f32 %v2369_v56, %v2369_v56  ;;  %v2056_v11 = vpop.f32.mrf.mxu1  ;;  %v2323_v19 = vld [vmem:[%s5024_s24 + $0x30] sm:$0xff] }
 0x636   : > { %v3942_v30 = vpop.eup %3941  ;;  %v2514_v16 = vmul.f32 %v2370_v44, %v2370_v44  ;;  %v5775_v56 = vld [vmem:[#allocation11_spill] sm:$0xff]  ;;  %v2588_v44 = vpop.permute.xlu1 %2587 }
 0x637   : > { %v2384_v60 = vmul.f32 0.6931472, %v3942_v30  ;;  %v2354_v29 = vadd.f32 %v3710_v45, %v2338_v55  ;;  %v2529_v7 = vadd.f32 %v2513_v62, %v2497_v35 }
 0x638   : > { %v2530_v0 = vadd.f32 %v2514_v16, %v2498_v54 }
 0x639   : > { %2883 = vrot.lane.b32.xlu1 %v2352_v21, %s4063_s6  ;;  %2929 = vrot.lane.b32.xlu0 %v2351_v17, %s4062_s28 }
 0x63d   : > { %2931 = vrot.lane.b32.xlu1 %v2352_v21, %s4062_s28  ;;  %2673 = vrot.lane.b32.xlu0 %v2626_v33, %s4059_s27  ;;  %v5071_v21 = vpop.f32.mrf.mxu0  ;;  %v3944_v6 = vpop.eup %3943 }
 0x63e   : > { %v2630_v18 = vmul.f32 %v3944_v6, %v2529_v7  ;;  %v2340_v62 = vmul.f32 %v5071_v21, %v2324_v47 }
 0x63f   : > { %v5077_v33 = vpop.f32.mrf.mxu0  ;;  %v3946_v30 = vpop.eup %3945 }
 0x640   : > { %v2339_v45 = vmul.f32 %v2323_v19, %v5077_v33  ;;  %v2632_v35 = vmul.f32 %v3946_v30, %v2530_v0  ;;  %v2325_v19 = vld [vmem:[%s5024_s24 + $0x40] sm:$0xff] }
 0x641   : > { %2881 = vrot.lane.b32.xlu1 %v2351_v17, %s4063_s6  ;;  %2885 = vrot.lane.b32.xlu0 %v2353_v32, %s4063_s6  ;;  %v2586_v17 = vpop.permute.xlu0 %2585 }
 0x642   : > { %3947 = vrcp.f32 %v2586_v17  ;;  %v5092_v17 = vpop.f32.mrf.mxu0 }
 0x643   : > { %3949 = vlog2.f32 %v5030_v40 }
 0x644   : > { %3951 = vlog2.f32 %v5033_v46  ;;  %v2356_v46 = vadd.f32 %v3713_v38, %v2340_v62  ;;  %v5099_v7 = vpop.f32.mrf.mxu0 }
 0x645   : > { %2675 = vrot.lane.b32.xlu1 %v2628_v24, %s4059_s27  ;;  %2933 = vrot.lane.b32.xlu0 %v2353_v32, %s4062_s28  ;;  %v2371_v32 = vsub.f32 %v2056_v11, %v5775_v56  ;;  %v2590_v55 = vpop.permute.xlu0 %2589  ;;  %v2355_v24 = vadd.f32 %v2339_v45, %v2056_v11  ;;  %3953 = vlog2.f32 %v5055_v36  ;;  %v2592_v11 = vpop.permute.xlu1 %2591 }
 0x646   : > { %3955 = vrcp.f32 %v2588_v44 }
 0x647   : > { %v2515_v40 = vmul.f32 %v2371_v32, %v2371_v32  ;;  %v5776_v32 = vld [vmem:[#allocation12_spill] sm:$0xff]  ;;  %3957 = vrcp.f32 %v2590_v55 }
 0x648   : > { %v2372_v45 = vsub.f32 %v3713_v38, %v5776_v32  ;;  %3959 = vlog2.f32 %v5041_v58 }
 0x649   : > { %2887 = vrot.lane.b32.xlu1 %v2354_v29, %s4063_s6  ;;  %2431 = vrot.lane.b32.xlu0 %v2384_v60, %s4059_s27  ;;  %v2499_v60 = vmul.f32 %v5077_v33, %v5077_v33  ;;  %v2594_v54 = vpop.permute.xlu0 %2593  ;;  %v5108_v44 = vpop.permute.xlu1 %2595  ;;  %3961 = vlog2.f32 %v5048_v27 }
 0x64a   : > { %3963 = vlog2.f32 %v5077_v33 }
 0x64b   : > { %v2531_v16 = vadd.f32 %v2515_v40, %v2499_v60  ;;  %3965 = vrcp.f32 %v2592_v11 }
 0x64c   : > { %3967 = vrcp.f32 %v2594_v54 }
 0x64d   : > { %2935 = vrot.lane.b32.xlu1 %v2354_v29, %s4062_s28  ;;  %2677 = vrot.lane.b32.xlu0 %v2630_v18, %s4059_s27  ;;  %v3716_v29 = vpop.f32.mrf.mxu1  ;;  %v2341_v18 = vmul.f32 %v2325_v19, %v5099_v7  ;;  %v5110_v62 = vpop.permute.xlu0 %2597  ;;  %3969 = vlog2.f32 %v5071_v21 }
 0x64e   : > { %3971 = vlog2.f32 %v5099_v7 }
 0x64f   : > { %v3948_v6 = vpop.eup %3947  ;;  %v2066_v47 = vpop.f32.mrf.mxu1  ;;  %3973 = vrcp.f32 %v5108_v44 }
 0x650   : > { %v3950_v0 = vpop.eup %3949  ;;  %v2634_v36 = vmul.f32 %v3948_v6, %v2531_v16  ;;  %v2357_v38 = vadd.f32 %v2341_v18, %v2066_v47  ;;  %v2500_v16 = vmul.f32 %v5071_v21, %v5071_v21  ;;  %3975 = vrcp.f32 %v5110_v62 }
 0x651   : > { %2679 = vrot.lane.b32.xlu1 %v2632_v35, %s4059_s27  ;;  %2889 = vrot.lane.b32.xlu0 %v2355_v24, %s4063_s6  ;;  %v3952_v30 = vpop.eup %3951  ;;  %v2382_v40 = vmul.f32 0.6931472, %v3950_v0  ;;  %v5777_v35 = vld [vmem:[#allocation13_spill] sm:$0xff]  ;;  %v5119_v0 = vpop.f32.mrf.mxu0  ;;  %3977 = vlog2.f32 %v5092_v17 }
 0x652   : > { %v2373_v60 = vsub.f32 %v2066_v47, %v5777_v35  ;;  %v2388_v55 = vmul.f32 0.6931472, %v3952_v30  ;;  %v3954_v6 = vpop.eup %3953  ;;  %v5123_v18 = vpop.permute.xlu0 %2601  ;;  %v2501_v47 = vmul.f32 %v5099_v7, %v5099_v7 }
 0x653   : > { %v3956_v58 = vpop.eup %3955  ;;  %v2390_v30 = vmul.f32 0.6931472, %v3954_v6  ;;  %v5132_v12 = vpop.f32.mrf.mxu0 }
 0x654   : > { %v2517_v19 = vmul.f32 %v2373_v60, %v2373_v60  ;;  %v3958_v27 = vpop.eup %3957  ;;  %v2343_v33 = vmul.f32 %v2327_v15, %v5132_v12  ;;  %3979 = vlog2.f32 %v5132_v12 }
 0x655   : > { %2891 = vrot.lane.b32.xlu1 %v2356_v46, %s4063_s6  ;;  %2937 = vrot.lane.b32.xlu0 %v2355_v24, %s4062_s28  ;;  %v2516_v24 = vmul.f32 %v2372_v45, %v2372_v45  ;;  %v5121_v45 = vpop.permute.xlu1 %2599 }
 0x656   : > { %3981 = vrcp.f32 %v5121_v45 }
 0x657   : > { %3983 = vrcp.f32 %v5123_v18 }
 0x659   : > { %2939 = vrot.lane.b32.xlu1 %v2356_v46, %s4062_s28  ;;  %2681 = vrot.lane.b32.xlu0 %v2634_v36, %s4059_s27  ;;  %v2532_v46 = vadd.f32 %v2516_v24, %v2500_v16  ;;  %v2326_v36 = vld [vmem:[%s5024_s24 + $0x48] sm:$0xff]  ;;  %v2533_v24 = vadd.f32 %v2517_v19, %v2501_v47  ;;  %v3719_v16 = vpop.f32.mrf.mxu1  ;;  %v5780_v47 = vld [vmem:[#allocation15_spill] sm:$0xff] }
 0x65b   : > { %v2636_v60 = vmul.f32 %v3956_v58, %v2532_v46  ;;  %v2638_v6 = vmul.f32 %v3958_v27, %v2533_v24  ;;  %v2076_v19 = vpop.f32.mrf.mxu1  ;;  %v5779_v46 = vld [vmem:[#allocation14_spill] sm:$0xff]  ;;  %v5152_v27 = vpop.f32.mrf.mxu0 }
 0x65c   : > { %v2375_v58 = vsub.f32 %v2076_v19, %v5780_v47 }
 0x65d   : > { %2429 = vrot.lane.b32.xlu1 %v2382_v40, %s4059_s27  ;;  %2893 = vrot.lane.b32.xlu0 %v2357_v38, %s4063_s6  ;;  %v2342_v40 = vmul.f32 %v5092_v17, %v2326_v36  ;;  %v2374_v36 = vsub.f32 %v3716_v29, %v5779_v46  ;;  %v5169_v21 = vpop.f32.mrf.mxu0 }
 0x65e   : > { %v2519_v24 = vmul.f32 %v2375_v58, %v2375_v58  ;;  %3985 = vlog2.f32 %v5169_v21 }
 0x65f   : > { %v2358_v9 = vadd.f32 %v3716_v29, %v2342_v40  ;;  %v2518_v40 = vmul.f32 %v2374_v36, %v2374_v36  ;;  %3987 = vlog2.f32 %v5119_v0 }
 0x661   : > { %2435 = vrot.lane.b32.xlu1 %v2388_v55, %s4059_s27  ;;  %2941 = vrot.lane.b32.xlu0 %v2357_v38, %s4062_s28  ;;  %v5137_v55 = vpop.permute.xlu1 %2603  ;;  %v5139_v38 = vpop.permute.xlu0 %2989 }
 0x662   : > { %5778 = vst [vmem:[#allocation25_spill] sm:$0xff] %v5139_v38 }
 0x665   : > { %2683 = vrot.lane.b32.xlu1 %v2636_v60, %s4059_s27  ;;  %2437 = vrot.lane.b32.xlu0 %v2390_v30, %s4059_s27  ;;  %v2359_v30 = vadd.f32 %v2343_v33, %v2076_v19  ;;  %v3960_v60 = vpop.eup %3959  ;;  %v5146_v31 = vpop.permute.xlu1 %2991 }
 0x666   : > { %5781 = vst [vmem:[#allocation27_spill] sm:$0xff] %v5146_v31  ;;  %v5148_v38 = vpop.permute.xlu0 %2993  ;;  %v3962_v15 = vpop.eup %3961  ;;  %v2386_v54 = vmul.f32 0.6931472, %v3960_v60  ;;  %v2329_v31 = vld [vmem:[%s5024_s24 + $0x60] sm:$0xff] }
 0x667   : > { %5782 = vst [vmem:[#allocation28_spill] sm:$0xff] %v5148_v38  ;;  %v3964_v11 = vpop.eup %3963  ;;  %v2392_v19 = vmul.f32 0.6931472, %v3962_v15  ;;  %v2328_v38 = vld [vmem:[%s5024_s24 + $0x58] sm:$0xff]  ;;  %v2345_v15 = vmul.f32 %v2329_v31, %v5169_v21 }
 0x668   : > { %v2394_v36 = vmul.f32 0.6931472, %v3964_v11  ;;  %v2344_v7 = vmul.f32 %v5119_v0, %v2328_v38 }
 0x669   : > { %2895 = vrot.lane.b32.xlu1 %v2358_v9, %s4063_s6  ;;  %2685 = vrot.lane.b32.xlu0 %v2638_v6, %s4059_s27  ;;  %v5156_v33 = vpop.xlane.xlu1 %2270  ;;  %v2503_v6 = vmul.f32 %v5132_v12, %v5132_v12 }
 0x66a   : > { %v5154_v29 = vpop.xlane.xlu0 %2273  ;;  %5784 = vst [vmem:[#allocation5_spill] sm:$0xff] %v5156_v33  ;;  %v3966_v33 = vpop.eup %3965 }
 0x66b   : > { %5783 = vst [vmem:[#allocation6_spill] sm:$0xff] %v5154_v29  ;;  %v2535_v60 = vadd.f32 %v2519_v24, %v2503_v6  ;;  %v5167_v29 = vpop.f32.mrf.mxu1 }
 0x66d   : > { %2943 = vrot.lane.b32.xlu1 %v2358_v9, %s4062_s28  ;;  %2897 = vrot.lane.b32.xlu0 %v2359_v30, %s4063_s6  ;;  %v2502_v9 = vmul.f32 %v5092_v17, %v5092_v17  ;;  %v2086_v24 = vpop.f32.mrf.mxu1 }
 0x66e   : > { %v5174_v41 = vpop.xlane.xlu0 %2279 }
 0x66f   : > { %v2534_v58 = vadd.f32 %v2518_v40, %v2502_v9  ;;  %5785 = vst [vmem:[#allocation7_spill] sm:$0xff] %v5174_v41  ;;  %v5787_v9 = vld [vmem:[#allocation16_spill] sm:$0xff]  ;;  %v2361_v41 = vadd.f32 %v2345_v15, %v2086_v24 }
 0x670   : > { %v2376_v6 = vsub.f32 %v3719_v16, %v5787_v9 }
 0x671   : > { %2433 = vrot.lane.b32.xlu1 %v2386_v54, %s4059_s27  ;;  %2945 = vrot.lane.b32.xlu0 %v2359_v30, %s4062_s28  ;;  %v3968_v54 = vpop.eup %3967  ;;  %v5176_v30 = vpop.xlane.xlu1 %2276  ;;  %v2640_v11 = vmul.f32 %v3966_v33, %v2534_v58 }
 0x672   : > { %5786 = vst [vmem:[#allocation8_spill] sm:$0xff] %v5176_v30  ;;  %v2642_v40 = vmul.f32 %v3968_v54, %v2535_v60  ;;  %v5186_v38 = vpop.xlane.xlu0 %2285  ;;  %v3970_v44 = vpop.eup %3969  ;;  %v2520_v33 = vmul.f32 %v2376_v6, %v2376_v6  ;;  %v2505_v54 = vmul.f32 %v5169_v21, %v5169_v21 }
 0x673   : > { %5789 = vst [vmem:[#allocation9_spill] sm:$0xff] %v5186_v38  ;;  %v3972_v62 = vpop.eup %3971  ;;  %v5192_v60 = vpop.f32.mrf.mxu0  ;;  %v2396_v15 = vmul.f32 0.6931472, %v3970_v44 }
 0x674   : > { %v3725_v6 = vpop.f32.mrf.mxu1  ;;  %v3974_v22 = vpop.eup %3973 }
 0x675   : > { %2439 = vrot.lane.b32.xlu1 %v2392_v19, %s4059_s27  ;;  %2441 = vrot.lane.b32.xlu0 %v2394_v36, %s4059_s27  ;;  %v2360_v19 = vadd.f32 %v3719_v16, %v2344_v7  ;;  %v5788_v36 = vld [vmem:[#allocation17_spill] sm:$0xff]  ;;  %v5188_v31 = vpop.xlane.xlu1 %2282  ;;  %v2504_v16 = vmul.f32 %v5119_v0, %v5119_v0  ;;  %v2244_v38 = vpop.f32.mrf.mxu0 }
 0x676   : > { %v2377_v30 = vsub.f32 %v2086_v24, %v5788_v36  ;;  %5790 = vst [vmem:[#allocation10_spill] sm:$0xff] %v5188_v31  ;;  %v5202_v7 = vpop.xlane.xlu0 %2291  ;;  %v2330_v24 = vld [vmem:[%s5024_s24 + $0x68] sm:$0xff]  ;;  %v2331_v31 = vld [vmem:[%s5024_s24 + $0x70] sm:$0xff]  ;;  %v2096_v44 = vpop.f32.mrf.mxu1  ;;  %v2507_v21 = vmul.f32 %v2244_v38, %v2244_v38  ;;  %3989 = vlog2.f32 %v2244_v38 }
 0x677   : > { %5791 = vst [vmem:[#allocation11_spill] sm:$0xff] %v5202_v7  ;;  %v2346_v12 = vmul.f32 %v5152_v27, %v2330_v24  ;;  %3991 = vrcp.f32 %v5137_v55 }
 0x678   : > { %v2521_v58 = vmul.f32 %v2377_v30, %v2377_v30  ;;  %3993 = vlog2.f32 %v5152_v27 }
 0x679   : > { %2687 = vrot.lane.b32.xlu1 %v2640_v11, %s4059_s27  ;;  %2689 = vrot.lane.b32.xlu0 %v2642_v40, %s4059_s27  ;;  %v5204_v30 = vpop.xlane.xlu1 %2288  ;;  %v2398_v11 = vmul.f32 0.6931472, %v3972_v62  ;;  %v2536_v40 = vadd.f32 %v2520_v33, %v2504_v16  ;;  %3995 = vlog2.f32 %v5192_v60 }
 0x67a   : > { %v2537_v17 = vadd.f32 %v2521_v58, %v2505_v54  ;;  %v5213_v62 = vpop.xlane.xlu0 %2297  ;;  %v5792_v58 = vld [vmem:[#allocation18_spill] sm:$0xff] }
 0x67b   : > { %v2644_v7 = vmul.f32 %v3974_v22, %v2536_v40  ;;  %v2378_v16 = vsub.f32 %v5167_v29, %v5792_v58  ;;  %v5793_v22 = vld [vmem:[#allocation19_spill] sm:$0xff] }
 0x67c   : > { %v2379_v45 = vsub.f32 %v2096_v44, %v5793_v22 }
 0x67d   : > { %2899 = vrot.lane.b32.xlu1 %v2360_v19, %s4063_s6  ;;  %2901 = vrot.lane.b32.xlu0 %v2361_v41, %s4063_s6  ;;  %v5215_v33 = vpop.xlane.xlu1 %2294 }
 0x67e   : > { %v2523_v40 = vmul.f32 %v2379_v45, %v2379_v45 }
 0x681   : > { %2947 = vrot.lane.b32.xlu1 %v2360_v19, %s4062_s28  ;;  %2949 = vrot.lane.b32.xlu0 %v2361_v41, %s4062_s28  ;;  %v3976_v41 = vpop.eup %3975  ;;  %v2347_v19 = vmul.f32 %v2331_v31, %v2244_v38  ;;  %v2362_v31 = vadd.f32 %v5167_v29, %v2346_v12  ;;  %v2506_v29 = vmul.f32 %v5152_v27, %v5152_v27 }
 0x682   : > { %v2646_v3 = vmul.f32 %v3976_v41, %v2537_v17  ;;  %v3978_v18 = vpop.eup %3977  ;;  %v2539_v12 = vadd.f32 %v2523_v40, %v2507_v21  ;;  %v5796_v40 = vld [vmem:[#allocation20_spill] sm:$0xff]  ;;  %v2508_v27 = vmul.f32 %v5192_v60, %v5192_v60 }
 0x683   : > { %v2363_v54 = vadd.f32 %v2347_v19, %v2096_v44  ;;  %v2400_v24 = vmul.f32 0.6931472, %v3978_v18  ;;  %v2332_v19 = vld [vmem:[%s5024_s24 + $0x78] sm:$0xff] }
 0x685   : > { %2443 = vrot.lane.b32.xlu1 %v2396_v15, %s4059_s27  ;;  %2445 = vrot.lane.b32.xlu0 %v2398_v11, %s4059_s27  ;;  %v2522_v15 = vmul.f32 %v2378_v16, %v2378_v16  ;;  %v5226_v11 = vpop.xlane.xlu0 %2303 }
 0x686   : > { %5794 = vst [vmem:[#allocation12_spill] sm:$0xff] %v5226_v11 }
 0x687   : > { %v2538_v17 = vadd.f32 %v2522_v15, %v2506_v29  ;;  %v2380_v29 = vsub.f32 %v3725_v6, %v5796_v40 }
 0x689   : > { %2691 = vrot.lane.b32.xlu1 %v2644_v7, %s4059_s27  ;;  %2693 = vrot.lane.b32.xlu0 %v2646_v3, %s4059_s27  ;;  %v3980_v7 = vpop.eup %3979  ;;  %v5228_v3 = vpop.xlane.xlu1 %2300  ;;  %v2524_v55 = vmul.f32 %v2380_v29, %v2380_v29 }
 0x68a   : > { %v2402_v41 = vmul.f32 0.6931472, %v3980_v7  ;;  %v3982_v44 = vpop.eup %3981  ;;  %v5236_v16 = vpop.xlane.xlu0 %2309 }
 0x68b   : > { %v2648_v0 = vmul.f32 %v3982_v44, %v2538_v17 }
 0x68d   : > { %2903 = vrot.lane.b32.xlu1 %v2362_v31, %s4063_s6  ;;  %2905 = vrot.lane.b32.xlu0 %v2363_v54, %s4063_s6  ;;  %v5238_v45 = vpop.xlane.xlu1 %2306 }
 0x68e   : > { %v5246_v38 = vpop.xlane.xlu0 %2315 }
 0x691   : > { %2951 = vrot.lane.b32.xlu1 %v2362_v31, %s4062_s28  ;;  %2953 = vrot.lane.b32.xlu0 %v2363_v54, %s4062_s28  ;;  %v3984_v31 = vpop.eup %3983  ;;  %v2348_v54 = vmul.f32 %v5192_v60, %v2332_v19  ;;  %v5248_v18 = vpop.xlane.xlu1 %2312 }
 0x692   : > { %v2650_v11 = vmul.f32 %v3984_v31, %v2539_v12  ;;  %v3986_v15 = vpop.eup %3985  ;;  %5795 = vst [vmem:[#allocation13_spill] sm:$0xff] %v5248_v18  ;;  %v2540_v12 = vadd.f32 %v2524_v55, %v2508_v27 }
 0x693   : > { %v2406_v7 = vmul.f32 0.6931472, %v3986_v15  ;;  %v2364_v21 = vadd.f32 %v3725_v6, %v2348_v54  ;;  %v3988_v17 = vpop.eup %3987 }
 0x694   : > { %v2404_v6 = vmul.f32 0.6931472, %v3988_v17 }
 0x695   : > { %2447 = vrot.lane.b32.xlu1 %v2400_v24, %s4059_s27  ;;  %2449 = vrot.lane.b32.xlu0 %v2402_v41, %s4059_s27  ;;  %v3990_v41 = vpop.eup %3989 }
 0x696   : > { %v2410_v19 = vmul.f32 0.6931472, %v3990_v41  ;;  %v3992_v54 = vpop.eup %3991 }
 0x697   : > { %v2652_v60 = vmul.f32 %v3992_v54, %v2540_v12 }
 0x699   : > { %2695 = vrot.lane.b32.xlu1 %v2648_v0, %s4059_s27  ;;  %2697 = vrot.lane.b32.xlu0 %v2650_v11, %s4059_s27 }
 0x69d   : > { %2907 = vrot.lane.b32.xlu1 %v2364_v21, %s4063_s6  ;;  %2453 = vrot.lane.b32.xlu0 %v2406_v7, %s4059_s27  ;;  %v3994_v7 = vpop.eup %3993 }
 0x69e   : > { %v3996_v17 = vpop.eup %3995 }
 0x69f   : > { %v5255_v24 = vpop.permute.xlu1 %2927  ;;  %v5257_v11 = vpop.permute.xlu0 %2879  ;;  %v2412_v55 = vmul.f32 0.6931472, %v3996_v17 }
 0x6a1   : > { %2955 = vrot.lane.b32.xlu1 %v2364_v21, %s4062_s28  ;;  %2997 = vrot.lane.b32.xlu0 %v4744_v42, %s4061_s17  ;;  %v2408_v42 = vmul.f32 0.6931472, %v3994_v7 }
 0x6a3   : > { %v5264_v44 = vpop.permute.xlu1 %2877  ;;  %v5266_v31 = vpop.permute.xlu0 %2925 }
 0x6a5   : > { %2451 = vrot.lane.b32.xlu1 %v2404_v6, %s4059_s27  ;;  %2457 = vrot.lane.b32.xlu0 %v2410_v19, %s4059_s27 }
 0x6a7   : > { %v2672_v0 = vpop.permute.xlu1 %2671  ;;  %v2670_v15 = vpop.permute.xlu0 %2669 }
 0x6a9   : > { %2699 = vrot.lane.b32.xlu1 %v2652_v60, %s4059_s27  ;;  %3001 = vrot.lane.b32.xlu0 %v4755_v39, %s4061_s17 }
 0x6ab   : > { %v5273_v29 = vpop.permute.xlu1 %2883  ;;  %v5275_v21 = vpop.permute.xlu0 %2929 }
 0x6ad   : > { %2455 = vrot.lane.b32.xlu1 %v2408_v42, %s4059_s27  ;;  %3005 = vrot.lane.b32.xlu0 %v4765_v34, %s4061_s17  ;;  %v3041_v34 = vsel %vm1094_vm1, %v5773_v28, %v4554_v23  ;;  %v3042_v23 = vsel %vm1094_vm1, %v5774_v8, %v4562_v37  ;;  %v3043_v37 = vsel %vm1094_vm1, %v5775_v56, %v4569_v43 }
 0x6af   : > { %v5280_v41 = vpop.permute.xlu1 %2931  ;;  %v5282_v27 = vpop.permute.xlu0 %2673 }
 0x6b1   : > { %2459 = vrot.lane.b32.xlu1 %v2412_v55, %s4059_s27  ;;  %3009 = vrot.lane.b32.xlu0 %v4775_v2, %s4061_s17 }
 0x6b3   : > { %v5287_v39 = vpop.permute.xlu1 %2881  ;;  %v2886_v6 = vpop.permute.xlu0 %2885 }
 0x6b4   : > { %v3058_v12 = vsel %vm3053_vm4, %v3041_v34, %v2886_v6 }
 0x6b5   : > { %2995 = vrot.lane.b32.xlu1 %v4729_v49, %s4061_s17  ;;  %3013 = vrot.lane.b32.xlu0 %v5766_v25, %s4061_s17 }
 0x6b7   : > { %v2676_v19 = vpop.permute.xlu1 %2675  ;;  %v2934_v54 = vpop.permute.xlu0 %2933 }
 0x6b8   : > { %v5298_v2 = vsel %vm3070_vm5, %v3058_v12, %v2934_v54 }
 0x6b9   : > { %2999 = vrot.lane.b32.xlu1 %v4739_v48, %s4061_s17 }
 0x6bb   : > { %v2888_v49 = vpop.permute.xlu1 %2887  ;;  %v2432_v60 = vpop.permute.xlu0 %2431 }
 0x6bc   : > { %v3059_v25 = vsel %vm3053_vm4, %v3042_v23, %v2888_v49  ;;  %v2478_v48 = vsub.f32 %v5769_v1, %v2432_v60 }
 0x6bd   : > { %3003 = vrot.lane.b32.xlu1 %v4749_v20, %s4061_s17 }
 0x6be   : > { %v2718_v20 = vadd.f32 %v2672_v0, %v2478_v48 }
 0x6bf   : > { %v2936_v7 = vpop.permute.xlu1 %2935  ;;  %v2678_v42 = vpop.permute.xlu0 %2677 }
 0x6c0   : > { %v5309_v17 = vsel %vm3070_vm5, %v3059_v25, %v2936_v7 }
 0x6c1   : > { %3007 = vrot.lane.b32.xlu1 %v4760_v51, %s4061_s17  ;;  %v3044_v51 = vsel %vm1094_vm1, %v5776_v32, %v4576_v50 }
 0x6c3   : > { %v2680_v55 = vpop.permute.xlu1 %2679  ;;  %v2890_v6 = vpop.permute.xlu0 %2889 }
 0x6c4   : > { %v3060_v34 = vsel %vm3053_vm4, %v3043_v37, %v2890_v6 }
 0x6c5   : > { %3011 = vrot.lane.b32.xlu1 %v4770_v59, %s4061_s17  ;;  %v3403_v59 = vadd.f32 -0.5, %v2718_v20 }
 0x6c7   : > { %v2892_v12 = vpop.permute.xlu1 %2891  ;;  %v2938_v54 = vpop.permute.xlu0 %2937 }
 0x6c8   : > { %v5321_v49 = vsel %vm3070_vm5, %v3060_v34, %v2938_v54  ;;  %v3061_v60 = vsel %vm3053_vm4, %v3044_v51, %v2892_v12 }
 0x6c9   : > { %3015 = vrot.lane.b32.xlu1 %v5765_v61, %s4061_s17  ;;  %v3045_v61 = vsel %vm1094_vm1, %v5777_v35, %v4579_v53 }
 0x6cb   : > { %v2940_v23 = vpop.permute.xlu1 %2939  ;;  %v2682_v43 = vpop.permute.xlu0 %2681 }
 0x6cc   : > { %v5330_v0 = vsel %vm3070_vm5, %v3061_v60, %v2940_v23 }
 0x6cd   : > { %2767 = vrot.lane.b32.xlu1 %v3403_v59, %s4060_s4 }
 0x6cf   : > { %v2430_v25 = vpop.permute.xlu1 %2429  ;;  %v2894_v7 = vpop.permute.xlu0 %2893 }
 0x6d0   : > { %v2477_v48 = vsub.f32 %v5770_v52, %v2430_v25  ;;  %v3062_v50 = vsel %vm3053_vm4, %v3045_v61, %v2894_v7  ;;  %v3046_v25 = vsel %vm1094_vm1, %v5779_v46, %v4587_v57 }
 0x6d2   : > { %v2717_v6 = vadd.f32 %v2670_v15, %v2477_v48 }
 0x6d3   : > { %v2436_v37 = vpop.permute.xlu1 %2435  ;;  %v2942_v20 = vpop.permute.xlu0 %2941 }
 0x6d4   : > { %v3402_v34 = vadd.f32 -0.5, %v2717_v6  ;;  %v2480_v12 = vsub.f32 %v5772_v4, %v2436_v37  ;;  %v5340_v54 = vsel %vm3070_vm5, %v3062_v50, %v2942_v20 }
 0x6d6   : > { %v2720_v51 = vadd.f32 %v2676_v19, %v2480_v12  ;;  %2765 = vrot.lane.b32.xlu0 %v3402_v34, %s4060_s4  ;;  %v3047_v19 = vsel %vm1094_vm1, %v5780_v47, %v4591_v63 }
 0x6d7   : > { %v2684_v59 = vpop.permute.xlu1 %2683  ;;  %v2438_v60 = vpop.permute.xlu0 %2437 }
 0x6d8   : > { %v3405_v15 = vadd.f32 -0.5, %v2720_v51  ;;  %v2481_v34 = vsub.f32 %v5773_v28, %v2438_v60 }
 0x6da   : > { %2771 = vrot.lane.b32.xlu1 %v3405_v15, %s4060_s4 }
 0x6db   : > { %v2896_v23 = vpop.permute.xlu1 %2895  ;;  %v2686_v53 = vpop.permute.xlu0 %2685 }
 0x6dc   : > { %v3063_v7 = vsel %vm3053_vm4, %v3046_v25, %v2896_v23  ;;  %v2721_v25 = vadd.f32 %v2678_v42, %v2481_v34 }
 0x6de   : > { %v3406_v60 = vadd.f32 -0.5, %v2721_v25 }
 0x6df   : > { %v2944_v48 = vpop.permute.xlu1 %2943  ;;  %v2898_v6 = vpop.permute.xlu0 %2897 }
 0x6e0   : > { %v5349_v61 = vsel %vm3070_vm5, %v3063_v7, %v2944_v48  ;;  %v3064_v50 = vsel %vm3053_vm4, %v3047_v19, %v2898_v6 }
 0x6e3   : > { %v2434_v37 = vpop.permute.xlu1 %2433  ;;  %v2946_v20 = vpop.permute.xlu0 %2945 }
 0x6e4   : > { %v2479_v12 = vsub.f32 %v5771_v13, %v2434_v37  ;;  %v5358_v57 = vsel %vm3070_vm5, %v3064_v50, %v2946_v20 }
 0x6e6   : > { %v2719_v51 = vadd.f32 %v5282_v27, %v2479_v12 }
 0x6e7   : > { %v2440_v15 = vpop.permute.xlu1 %2439  ;;  %v2442_v23 = vpop.permute.xlu0 %2441 }
 0x6e8   : > { %v3404_v7 = vadd.f32 -0.5, %v2719_v51  ;;  %v2482_v48 = vsub.f32 %v5774_v8, %v2440_v15  ;;  %v2483_v63 = vsub.f32 %v5775_v56, %v2442_v23  ;;  %v3048_v8 = vsel %vm1094_vm1, %v5787_v9, %v4599_v5 }
 0x6e9   : > { %v3049_v56 = vsel %vm1094_vm1, %v5788_v36, %v4604_v10 }
 0x6ea   : > { %v2722_v6 = vadd.f32 %v2680_v55, %v2482_v48  ;;  %2769 = vrot.lane.b32.xlu0 %v3404_v7, %s4060_s4  ;;  %v2723_v18 = vadd.f32 %v2682_v43, %v2483_v63 }
 0x6eb   : > { %v2688_v19 = vpop.permute.xlu1 %2687  ;;  %v2690_v28 = vpop.permute.xlu0 %2689 }
 0x6ec   : > { %v3407_v37 = vadd.f32 -0.5, %v2722_v6  ;;  %v3408_v42 = vadd.f32 -0.5, %v2723_v18 }
 0x6ee   : > { %2775 = vrot.lane.b32.xlu1 %v3407_v37, %s4060_s4  ;;  %2773 = vrot.lane.b32.xlu0 %v3406_v60, %s4060_s4 }
 0x6ef   : > { %v2900_v27 = vpop.permute.xlu1 %2899  ;;  %v2902_v50 = vpop.permute.xlu0 %2901 }
 0x6f0   : > { %v3065_v55 = vsel %vm3053_vm4, %v3048_v8, %v2900_v27  ;;  %v3066_v43 = vsel %vm3053_vm4, %v3049_v56, %v2902_v50  ;;  %v3050_v27 = vsel %vm1094_vm1, %v5792_v58, %v4612_v26 }
 0x6f2   : > { %2777 = vrot.lane.b32.xlu0 %v3408_v42, %s4060_s4 }
 0x6f3   : > { %v2948_v20 = vpop.permute.xlu1 %2947  ;;  %v2950_v34 = vpop.permute.xlu0 %2949 }
 0x6f4   : > { %v5376_v12 = vsel %vm3070_vm5, %v3065_v55, %v2948_v20  ;;  %v5379_v18 = vsel %vm3070_vm5, %v3066_v43, %v2950_v34 }
 0x6f7   : > { %v2444_v51 = vpop.permute.xlu1 %2443  ;;  %v2446_v5 = vpop.permute.xlu0 %2445 }
 0x6f8   : > { %v2484_v15 = vsub.f32 %v5776_v32, %v2444_v51  ;;  %v2485_v10 = vsub.f32 %v5777_v35, %v2446_v5  ;;  %v3051_v32 = vsel %vm1094_vm1, %v5793_v22, %v5764_v14 }
 0x6fa   : > { %v2724_v23 = vadd.f32 %v2684_v59, %v2484_v15  ;;  %v2725_v25 = vadd.f32 %v2686_v53, %v2485_v10 }
 0x6fb   : > { %v2692_v7 = vpop.permute.xlu1 %2691  ;;  %v2694_v48 = vpop.permute.xlu0 %2693 }
 0x6fc   : > { %v3409_v63 = vadd.f32 -0.5, %v2724_v23  ;;  %v3410_v6 = vadd.f32 -0.5, %v2725_v25 }
 0x6fe   : > { %2779 = vrot.lane.b32.xlu1 %v3409_v63, %s4060_s4  ;;  %2781 = vrot.lane.b32.xlu0 %v3410_v6, %s4060_s4  ;;  %v5797_v63 = vld [vmem:[#allocation26_spill] sm:$0xff] }
 0x6ff   : > { %v2904_v60 = vpop.permute.xlu1 %2903  ;;  %v2906_v37 = vpop.permute.xlu0 %2905 }
 0x700   : > { %v3067_v35 = vsel %vm3053_vm4, %v3050_v27, %v2904_v60  ;;  %v3068_v59 = vsel %vm3053_vm4, %v3051_v32, %v2906_v37 }
 0x703   : > { %v2952_v53 = vpop.permute.xlu1 %2951  ;;  %v2954_v50 = vpop.permute.xlu0 %2953 }
 0x704   : > { %v5394_v42 = vsel %vm3070_vm5, %v3067_v35, %v2952_v53  ;;  %v5397_v8 = vsel %vm3070_vm5, %v3068_v59, %v2954_v50 }
 0x707   : > { %v2448_v56 = vpop.permute.xlu1 %2447  ;;  %v2450_v55 = vpop.permute.xlu0 %2449 }
 0x708   : > { %v2486_v26 = vsub.f32 %v5779_v46, %v2448_v56  ;;  %v2487_v43 = vsub.f32 %v5780_v47, %v2450_v55  ;;  %v3052_v46 = vsel %vm1094_vm1, %v5796_v40, %v5797_v63 }
 0x70a   : > { %v2726_v20 = vadd.f32 %v2688_v19, %v2486_v26  ;;  %v2727_v14 = vadd.f32 %v2690_v28, %v2487_v43 }
 0x70b   : > { %v2696_v34 = vpop.permute.xlu1 %2695  ;;  %v2698_v51 = vpop.permute.xlu0 %2697 }
 0x70c   : > { %v3411_v5 = vadd.f32 -0.5, %v2726_v20  ;;  %v3412_v15 = vadd.f32 -0.5, %v2727_v14 }
 0x70e   : > { %2783 = vrot.lane.b32.xlu1 %v3411_v5, %s4060_s4  ;;  %2785 = vrot.lane.b32.xlu0 %v3412_v15, %s4060_s4 }
 0x70f   : > { %v2908_v10 = vpop.permute.xlu1 %2907  ;;  %v2454_v23 = vpop.permute.xlu0 %2453 }
 0x710   : > { %v2489_v25 = vsub.f32 %v5788_v36, %v2454_v23  ;;  %v3069_v47 = vsel %vm3053_vm4, %v3052_v46, %v2908_v10 }
 0x712   : > { %v2729_v6 = vadd.f32 %v2694_v48, %v2489_v25 }
 0x713   : > { %v2956_v19 = vpop.permute.xlu1 %2955  ;;  %v2998_v28 = vpop.permute.xlu0 %2997 }
 0x714   : > { %v3414_v60 = vadd.f32 -0.5, %v2729_v6  ;;  %v5409_v37 = vsel %vm3070_vm5, %v3069_v47, %v2956_v19  ;;  %v5413_v27 = vsel %vm219_vm0, %v5298_v2, %v2998_v28 }
 0x716   : > { %2789 = vrot.lane.b32.xlu0 %v3414_v60, %s4060_s4 }
 0x717   : > { %v2452_v36 = vpop.permute.xlu1 %2451  ;;  %v2458_v32 = vpop.permute.xlu0 %2457 }
 0x718   : > { %v2488_v35 = vsub.f32 %v5787_v9, %v2452_v36  ;;  %v2491_v48 = vsub.f32 %v5793_v22, %v2458_v32 }
 0x71a   : > { %v2728_v59 = vadd.f32 %v2692_v7, %v2488_v35  ;;  %v2731_v53 = vadd.f32 %v2698_v51, %v2491_v48 }
 0x71b   : > { %v2700_v50 = vpop.permute.xlu1 %2699  ;;  %v3002_v56 = vpop.permute.xlu0 %3001 }
 0x71c   : > { %v3413_v55 = vadd.f32 -0.5, %v2728_v59  ;;  %v3416_v26 = vadd.f32 -0.5, %v2731_v53  ;;  %v5420_v43 = vsel %vm219_vm0, %v5321_v49, %v3002_v56 }
 0x71e   : > { %2787 = vrot.lane.b32.xlu1 %v3413_v55, %s4060_s4  ;;  %2793 = vrot.lane.b32.xlu0 %v3416_v26, %s4060_s4 }
 0x71f   : > { %v2456_v2 = vpop.permute.xlu1 %2455  ;;  %v3006_v20 = vpop.permute.xlu0 %3005 }
 0x720   : > { %v2490_v9 = vsub.f32 %v5792_v58, %v2456_v2  ;;  %v5427_v22 = vsel %vm219_vm0, %v5340_v54, %v3006_v20 }
 0x722   : > { %v2730_v7 = vadd.f32 %v2696_v34, %v2490_v9 }
 0x723   : > { %v2460_v14 = vpop.permute.xlu1 %2459  ;;  %v3010_v51 = vpop.permute.xlu0 %3009 }
 0x724   : > { %v3415_v5 = vadd.f32 -0.5, %v2730_v7  ;;  %v2492_v15 = vsub.f32 %v5796_v40, %v2460_v14  ;;  %v5432_v49 = vsel %vm219_vm0, %v5358_v57, %v3010_v51 }
 0x726   : > { %v2732_v10 = vadd.f32 %v2700_v50, %v2492_v15  ;;  %2791 = vrot.lane.b32.xlu1 %v3415_v5, %s4060_s4 }
 0x727   : > { %v5435_v23 = vpop.permute.xlu1 %2995  ;;  %v3014_v58 = vpop.permute.xlu0 %3013 }
 0x728   : > { %v3417_v25 = vadd.f32 -0.5, %v2732_v10  ;;  %v5439_v54 = vsel %vm219_vm0, %v5379_v18, %v3014_v58 }
 0x72a   : > { %2795 = vrot.lane.b32.xlu1 %v3417_v25, %s4060_s4  ;;  %s3201_s4 = sshll.u32 %s5517_s29, 4  ;;  %s5638_s4 = int_to_ptr.vmem [resolvable:$true] %s3201_s4 }
 0x72b   : > { %v3000_v34 = vpop.permute.xlu1 %2999  ;;  %s3997_s9 = scalar_lea.vmem %s5638_s4, 2048  ;;  %p4004_p0 = scmp.lt.s32.totalorder %s5638_s4, %s4002_s11 }
 0x72c   : > { %v5444_v40 = vsel %vm219_vm0, %v5309_v17, %v3000_v34  ;;  %p3998_p11 = scmp.ne.s32.totalorder %s5638_s4, %s3997_s9 }
 0x72e   : > { %p3999_p12 = pnand %p3998_p11, %p4124_p5 }
 0x72f   : > { %v3004_v57 = vpop.permute.xlu1 %3003 }
 0x730   : > { %v5448_v63 = vsel %vm219_vm0, %v5330_v0, %v3004_v57  ;;  %p4000_p13 = pneg %p3999_p12 }
 0x733   : > { %v3008_v46 = vpop.permute.xlu1 %3007 }
 0x734   : > { %v5452_v6 = vsel %vm219_vm0, %v5349_v61, %v3008_v46 }
 0x737   : > { %v3012_v47 = vpop.permute.xlu1 %3011 }
 0x738   : > { %v5456_v18 = vsel %vm219_vm0, %v5376_v12, %v3012_v47 }
 0x73b   : > { %v3016_v19 = vpop.permute.xlu1 %3015 }
 0x73c   : > { %v5460_v17 = vsel %vm219_vm0, %v5394_v42, %v3016_v19 }
 0x73f   : > { %v2768_v28 = vpop.permute.xlu1 %2767 }
 0x740   : > { %v2816_v32 = vsel %vm1094_vm1, %v2768_v28, 0.0  ;;  %v5798_v28 = vld [vmem:[#allocation29_spill] sm:$0xff] }
 0x748   : > { %v2766_v60 = vpop.permute.xlu0 %2765 }
 0x749   : > { %v2813_v0 = vsel %vm1094_vm1, %v2766_v60, 0.0  ;;  %v5799_v60 = vld [vmem:[#allocation30_spill] sm:$0xff] }
 0x74a   : > { %2814 = vadd.xlane.f32.xlu0 %v2813_v0  ;;  %v5800_v0 = vld [vmem:[#allocation21_spill] sm:$0xff] }
 0x74c   : > { %v2772_v36 = vpop.permute.xlu1 %2771 }
 0x74d   : > { %v2822_v61 = vsel %vm1094_vm1, %v2772_v36, 0.0  ;;  %v3037_v36 = vsel %vm1094_vm1, %v5770_v52, %v5800_v0 }
 0x74e   : > { %2817 = vadd.xlane.f32.xlu1 %v2816_v32  ;;  %2823 = vadd.xlane.f32.xlu0 %v2822_v61  ;;  %v3054_v32 = vsel %vm3053_vm4, %v3037_v36, %v5264_v44  ;;  %v5801_v61 = vld [vmem:[#allocation22_spill] sm:$0xff] }
 0x75c   : > { %v2770_v35 = vpop.permute.xlu0 %2769 }
 0x75d   : > { %v2819_v12 = vsel %vm1094_vm1, %v2770_v35, 0.0  ;;  %v3038_v35 = vsel %vm1094_vm1, %v5769_v1, %v5801_v61 }
 0x75e   : > { %2820 = vadd.xlane.f32.xlu0 %v2819_v12  ;;  %v3071_v12 = vsel %vm3070_vm5, %v3054_v32, %v5266_v31  ;;  %v5804_v31 = vld [vmem:[#allocation5_spill] sm:$0xff] }
 0x760   : > { %v2776_v48 = vpop.permute.xlu1 %2775  ;;  %v2774_v59 = vpop.permute.xlu0 %2773 }
 0x761   : > { %v2828_v42 = vsel %vm1094_vm1, %v2776_v48, 0.0  ;;  %v2825_v53 = vsel %vm1094_vm1, %v2774_v59, 0.0  ;;  %v3055_v48 = vsel %vm3053_vm4, %v3038_v35, %v5257_v11  ;;  %v5802_v59 = vld [vmem:[#allocation25_spill] sm:$0xff] }
 0x762   : > { %2829 = vadd.xlane.f32.xlu0 %v2828_v42  ;;  %2826 = vadd.xlane.f32.xlu1 %v2825_v53  ;;  %v3087_v42 = vsel %vm219_vm0, %v3071_v12, %v5802_v59  ;;  %v3072_v52 = vsel %vm3070_vm5, %v3055_v48, %v5255_v24  ;;  %v5803_v53 = vld [vmem:[#allocation24_spill] sm:$0xff]  ;;  %v5812_v12 = vld [vmem:[#allocation9_spill] sm:$0xff] }
 0x763   : > { %v3040_v44 = vsel %vm1094_vm1, %v5772_v4, %v5803_v53  ;;  %v3109_v48 = vsel %vm3103_vm7, %v5444_v40, %v5812_v12 }
 0x764   : > { %v2778_v50 = vpop.permute.xlu0 %2777  ;;  %v3057_v1 = vsel %vm3053_vm4, %v3040_v44, %v5273_v29 }
 0x765   : > { %v2831_v56 = vsel %vm1094_vm1, %v2778_v50, 0.0  ;;  %v3074_v11 = vsel %vm3070_vm5, %v3057_v1, %v5280_v41  ;;  %v3104_v50 = vsel %vm3103_vm7, %v3087_v42, %v5804_v31  ;;  %v5806_v41 = vld [vmem:[#allocation6_spill] sm:$0xff] }
 0x766   : > { %2832 = vadd.xlane.f32.xlu1 %v2831_v56  ;;  %v3090_v56 = vsel %vm219_vm0, %v3074_v11, %v5435_v23  ;;  %v5807_v23 = vld [vmem:[#allocation7_spill] sm:$0xff] }
 0x770   : > { %v2780_v55 = vpop.permute.xlu1 %2779  ;;  %v2782_v26 = vpop.permute.xlu0 %2781 }
 0x771   : > { %v2834_v2 = vsel %vm1094_vm1, %v2780_v55, 0.0  ;;  %v2837_v20 = vsel %vm1094_vm1, %v2782_v26, 0.0  ;;  %v5805_v55 = vld [vmem:[#allocation27_spill] sm:$0xff] }
 0x772   : > { %2835 = vadd.xlane.f32.xlu0 %v2834_v2  ;;  %2838 = vadd.xlane.f32.xlu1 %v2837_v20  ;;  %v3088_v26 = vsel %vm219_vm0, %v3072_v52, %v5805_v55  ;;  %v5813_v55 = vld [vmem:[#allocation11_spill] sm:$0xff] }
 0x773   : > { %v3105_v20 = vsel %vm3103_vm7, %v3088_v26, %v5806_v41  ;;  %v3111_v26 = vsel %vm3103_vm7, %v5448_v63, %v5813_v55 }
 0x780   : > { %v2784_v9 = vpop.permute.xlu1 %2783  ;;  %v2786_v7 = vpop.permute.xlu0 %2785 }
 0x781   : > { %v2840_v14 = vsel %vm1094_vm1, %v2784_v9, 0.0  ;;  %v2843_v51 = vsel %vm1094_vm1, %v2786_v7, 0.0  ;;  %v3107_v7 = vsel %vm3103_vm7, %v3090_v56, %v5807_v23  ;;  %v3112_v56 = vsel %vm3103_vm7, %v5427_v22, %v5215_v33 }
 0x782   : > { %2841 = vadd.xlane.f32.xlu0 %v2840_v14  ;;  %2844 = vadd.xlane.f32.xlu1 %v2843_v51  ;;  %v3114_v22 = vsel %vm3103_vm7, %v5432_v49, %v5228_v3 }
 0x788   : > { %v2790_v5 = vpop.permute.xlu0 %2789 }
 0x789   : > { %v2849_v15 = vsel %vm1094_vm1, %v2790_v5, 0.0 }
 0x78a   : > { %2850 = vadd.xlane.f32.xlu1 %v2849_v15 }
 0x790   : > { %v2788_v10 = vpop.permute.xlu1 %2787  ;;  %v2794_v58 = vpop.permute.xlu0 %2793 }
 0x791   : > { %v2846_v25 = vsel %vm1094_vm1, %v2788_v10, 0.0  ;;  %v2855_v34 = vsel %vm1094_vm1, %v2794_v58, 0.0 }
 0x792   : > { %2847 = vadd.xlane.f32.xlu0 %v2846_v25  ;;  %2856 = vadd.xlane.f32.xlu1 %v2855_v34  ;;  %v5808_v34 = vld [vmem:[#allocation23_spill] sm:$0xff] }
 0x798   : > { %v2792_v57 = vpop.permute.xlu1 %2791 }
 0x799   : > { %v2852_v46 = vsel %vm1094_vm1, %v2792_v57, 0.0  ;;  %v3039_v57 = vsel %vm1094_vm1, %v5771_v13, %v5808_v34  ;;  %v5814_v34 = vld [vmem:[#allocation12_spill] sm:$0xff] }
 0x79a   : > { %2853 = vadd.xlane.f32.xlu0 %v2852_v46  ;;  %v3056_v46 = vsel %vm3053_vm4, %v3039_v57, %v5287_v39  ;;  %v5811_v39 = vld [vmem:[#allocation10_spill] sm:$0xff]  ;;  %v3115_v57 = vsel %vm3103_vm7, %v5456_v18, %v5814_v34 }
 0x79c   : > { %v2796_v47 = vpop.permute.xlu1 %2795 }
 0x79d   : > { %v2858_v19 = vsel %vm1094_vm1, %v2796_v47, 0.0  ;;  %v3073_v47 = vsel %vm3070_vm5, %v3056_v46, %v5275_v21  ;;  %v3108_v21 = vsel %vm3103_vm7, %v5413_v27, %v5811_v39  ;;  %v3110_v27 = vsel %vm3103_vm7, %v5420_v43, %v5204_v30 }
 0x79e   : > { %2859 = vadd.xlane.f32.xlu0 %v2858_v19  ;;  %v5809_v19 = vld [vmem:[#allocation28_spill] sm:$0xff] }
 0x7a3   : > { %3019 = vrot.lane.b32.xlu1 %v5798_v28, %s4061_s17  ;;  %v3089_v28 = vsel %vm219_vm0, %v3073_v47, %v5809_v19 }
 0x7b4   : > { %3017 = vrot.lane.b32.xlu0 %v5799_v60, %s4061_s17  ;;  %v5810_v60 = vld [vmem:[#allocation8_spill] sm:$0xff]  ;;  %s4003_s17 = scalar_lea.vmem %s4002_s11, 4096 }
 0x7b5   : > { %v3106_v0 = vsel %vm3103_vm7, %v3089_v28, %v5810_v60  ;;  %v3117_v28 = vsel %vm3103_vm7, %v5460_v17, %v5236_v16  ;;  %p4005_p1 = scmp.lt.s32.totalorder %s4003_s17, %s3997_s9 }
 0x7b7   : > { %p4006_p2 = por %p4005_p1, %p4004_p0 }
 0x7b9   : > { %p4007_p3 = pnand %p4006_p2, %p4000_p13 }
 0x7d3   : > { %v2815_v24 = vpop.xlane.xlu0 %2814 }
 0x7d4   : > { %v3121_v4 = vsel %vm3120_vm6, %v3104_v50, %v2815_v24 }
 0x7d5   : > { %v3138_v29 = vsel %vm3137_vm8, %v3121_v4, %v2815_v24 }
 0x7d6   : > { %v3155_v2 = vsel %vm3154_vm9, %v3138_v29, 0.0 }
 0x7d7   : > { %3171 = vst [vmem:[%s5517_s29] sm:$0xff] %v3155_v2  ;;  %v2818_v9 = vpop.xlane.xlu1 %2817  ;;  %v2824_v14 = vpop.xlane.xlu0 %2823 }
 0x7d8   : > { %v3122_v51 = vsel %vm3120_vm6, %v3105_v20, %v2818_v9  ;;  %v3124_v5 = vsel %vm3120_vm6, %v3107_v7, %v2824_v14 }
 0x7d9   : > { %v3139_v15 = vsel %vm3137_vm8, %v3122_v51, %v2818_v9  ;;  %v3141_v10 = vsel %vm3137_vm8, %v3124_v5, %v2824_v14  ;;  %v3113_v9 = vsel %vm3103_vm7, %v5452_v6, %v5213_v62  ;;  %v3116_v62 = vsel %vm3103_vm7, %v5439_v54, %v5238_v45 }
 0x7da   : > { %v3156_v58 = vsel %vm3154_vm9, %v3139_v15, 0.0  ;;  %v3158_v25 = vsel %vm3154_vm9, %v3141_v10, 0.0 }
 0x7db   : > { %3172 = vst [vmem:[%s5517_s29 + $0x8] sm:$0xff] %v3156_v58  ;;  %3174 = vst [vmem:[%s5517_s29 + $0x18] sm:$0xff] %v3158_v25 }
 0x7e7   : > { %v2821_v36 = vpop.xlane.xlu0 %2820 }
 0x7e8   : > { %v3123_v32 = vsel %vm3120_vm6, %v3106_v0, %v2821_v36 }
 0x7e9   : > { %v3140_v61 = vsel %vm3137_vm8, %v3123_v32, %v2821_v36 }
 0x7ea   : > { %v3157_v13 = vsel %vm3154_vm9, %v3140_v61, 0.0 }
 0x7eb   : > { %3173 = vst [vmem:[%s5517_s29 + $0x10] sm:$0xff] %v3157_v13  ;;  %v2827_v35 = vpop.xlane.xlu1 %2826  ;;  %v2830_v59 = vpop.xlane.xlu0 %2829 }
 0x7ec   : > { %v3125_v42 = vsel %vm3120_vm6, %v3108_v21, %v2827_v35  ;;  %v3126_v52 = vsel %vm3120_vm6, %v3109_v48, %v2830_v59 }
 0x7ed   : > { %v3142_v53 = vsel %vm3137_vm8, %v3125_v42, %v2827_v35  ;;  %v3143_v44 = vsel %vm3137_vm8, %v3126_v52, %v2830_v59  ;;  %v5815_v35 = vld [vmem:[#allocation13_spill] sm:$0xff] }
 0x7ee   : > { %v3159_v1 = vsel %vm3154_vm9, %v3142_v53, 0.0  ;;  %v3160_v11 = vsel %vm3154_vm9, %v3143_v44, 0.0 }
 0x7ef   : > { %3175 = vst [vmem:[%s5517_s29 + $0x20] sm:$0xff] %v3159_v1  ;;  %3176 = vst [vmem:[%s5517_s29 + $0x28] sm:$0xff] %v3160_v11  ;;  %v2833_v40 = vpop.xlane.xlu1 %2832 }
 0x7f0   : > { %v3127_v31 = vsel %vm3120_vm6, %v3110_v27, %v2833_v40 }
 0x7f1   : > { %v3144_v50 = vsel %vm3137_vm8, %v3127_v31, %v2833_v40 }
 0x7f2   : > { %v3161_v24 = vsel %vm3154_vm9, %v3144_v50, 0.0 }
 0x7f3   : > { %3177 = vst [vmem:[%s5517_s29 + $0x30] sm:$0xff] %v3161_v24 }
 0x7fb   : > { %v2839_v4 = vpop.xlane.xlu1 %2838  ;;  %v2836_v30 = vpop.xlane.xlu0 %2835 }
 0x7fc   : > { %v3129_v43 = vsel %vm3120_vm6, %v3112_v56, %v2839_v4  ;;  %v3128_v29 = vsel %vm3120_vm6, %v3111_v26, %v2836_v30 }
 0x7fd   : > { %v3146_v2 = vsel %vm3137_vm8, %v3129_v43, %v2839_v4  ;;  %v3145_v41 = vsel %vm3137_vm8, %v3128_v29, %v2836_v30 }
 0x7fe   : > { %v3163_v20 = vsel %vm3154_vm9, %v3146_v2, 0.0  ;;  %v3162_v33 = vsel %vm3154_vm9, %v3145_v41, 0.0 }
 0x7ff   : > { %3179 = vst [vmem:[%s5517_s29 + $0x40] sm:$0xff] %v3163_v20  ;;  %3178 = vst [vmem:[%s5517_s29 + $0x38] sm:$0xff] %v3162_v33 }
 0x80b   : > { %v2845_v63 = vpop.xlane.xlu1 %2844  ;;  %v2842_v23 = vpop.xlane.xlu0 %2841 }
 0x80c   : > { %v3131_v7 = vsel %vm3120_vm6, %v3114_v22, %v2845_v63  ;;  %v3130_v14 = vsel %vm3120_vm6, %v3113_v9, %v2842_v23 }
 0x80d   : > { %v3148_v51 = vsel %vm3137_vm8, %v3131_v7, %v2845_v63  ;;  %v3147_v5 = vsel %vm3137_vm8, %v3130_v14, %v2842_v23 }
 0x80e   : > { %v3165_v15 = vsel %vm3154_vm9, %v3148_v51, 0.0  ;;  %v3164_v3 = vsel %vm3154_vm9, %v3147_v5, 0.0 }
 0x80f   : > { %3181 = vst [vmem:[%s5517_s29 + $0x50] sm:$0xff] %v3165_v15  ;;  %3180 = vst [vmem:[%s5517_s29 + $0x48] sm:$0xff] %v3164_v3 }
 0x813   : > { %v2851_v49 = vpop.xlane.xlu1 %2850 }
 0x814   : > { %v3133_v6 = vsel %vm3120_vm6, %v3116_v62, %v2851_v49 }
 0x815   : > { %v3150_v10 = vsel %vm3137_vm8, %v3133_v6, %v2851_v49 }
 0x816   : > { %v3167_v58 = vsel %vm3154_vm9, %v3150_v10, 0.0 }
 0x817   : > { %3183 = vst [vmem:[%s5517_s29 + $0x60] sm:$0xff] %v3167_v58 }
 0x81b   : > { %v2857_v25 = vpop.xlane.xlu1 %2856  ;;  %v2848_v46 = vpop.xlane.xlu0 %2847 }
 0x81c   : > { %v3132_v47 = vsel %vm3120_vm6, %v3115_v57, %v2848_v46 }
 0x81d   : > { %v3149_v19 = vsel %vm3137_vm8, %v3132_v47, %v2848_v46 }
 0x81e   : > { %v3166_v45 = vsel %vm3154_vm9, %v3149_v19, 0.0 }
 0x81f   : > { %3182 = vst [vmem:[%s5517_s29 + $0x58] sm:$0xff] %v3166_v45  ;;  %v3020_v54 = vpop.permute.xlu1 %3019 }
 0x820   : > { %v3102_v18 = vsel %vm219_vm0, %v5409_v37, %v3020_v54 }
 0x821   : > { %v3119_v61 = vsel %vm3103_vm7, %v3102_v18, %v5246_v38 }
 0x823   : > { %v2854_v60 = vpop.xlane.xlu0 %2853 }
 0x824   : > { %v3134_v0 = vsel %vm3120_vm6, %v3117_v28, %v2854_v60 }
 0x825   : > { %v3151_v36 = vsel %vm3137_vm8, %v3134_v0, %v2854_v60 }
 0x826   : > { %v3168_v32 = vsel %vm3154_vm9, %v3151_v36, 0.0 }
 0x827   : > { %3184 = vst [vmem:[%s5517_s29 + $0x68] sm:$0xff] %v3168_v32  ;;  %v2860_v13 = vpop.xlane.xlu0 %2859 }
 0x828   : > { %v3136_v16 = vsel %vm3120_vm6, %v3119_v61, %v2860_v13 }
 0x829   : > { %v3153_v17 = vsel %vm3137_vm8, %v3136_v16, %v2860_v13 }
 0x82a   : > { %v3170_v39 = vsel %vm3154_vm9, %v3153_v17, 0.0 }
 0x82b   : > { %3186 = vst [vmem:[%s5517_s29 + $0x78] sm:$0xff] %v3170_v39  ;;  %v3018_v37 = vpop.permute.xlu0 %3017 }
 0x82c   : > { %v3101_v21 = vsel %vm219_vm0, %v5397_v8, %v3018_v37 }
 0x82d   : > { %v3118_v38 = vsel %vm3103_vm7, %v3101_v21, %v5815_v35 }
 0x82e   : > { %v3135_v12 = vsel %vm3120_vm6, %v3118_v38, %v2857_v25 }
 0x82f   : > { %v3152_v48 = vsel %vm3137_vm8, %v3135_v12, %v2857_v25 }
 0x830   : > { %v3169_v8 = vsel %vm3154_vm9, %v3152_v48, 0.0 }
 0x831   : > { %3185 = vst [vmem:[%s5517_s29 + $0x70] sm:$0xff] %v3169_v8 }
 0x832   : > { %4010 = shalt.err (!%p4007_p3)
}
 0x833   : > { %s4011_s19 = scalar_lea.hbm %s5635_s8, 2048  ;;  %s4015_s28 = scalar_lea.hbm %s5688_s3, 4096 }
 0x834   : > { %p4012_p4 = scmp.ne.s32.totalorder %s5635_s8, %s4011_s19  ;;  %p4016_p9 = scmp.lt.s32.totalorder %s5635_s8, %s5688_s3 }
 0x835   : > { %p4017_p10 = scmp.lt.s32.totalorder %s4015_s28, %s4011_s19 }
 0x836   : > { %p4013_p7 = pnand %p4012_p4, %p4124_p5 }
 0x837   : > { %p4018_p11 = por %p4017_p10, %p4016_p9 }
 0x838   : > { %p4014_p8 = pneg %p4013_p7 }
 0x83a   : > { %p4019_p12 = pnand %p4018_p11, %p4014_p8 }
 0x83c   : > { %4022 = shalt.err (!%p4019_p12)
}
 0x83d   : > { %s4065_s26 = smov 128  }
 0x83e   : > { %3760 = dma.vmem_to_hbm [thread:$0]  (%p4124_p5), %s5638_s4, 2048, %s5635_s8, %s5644_s16, %s4065_s26, %s4065_s26, %s4059_s27  }
 0x83f PF: > { %p3766_p13 = scmp.ge.s32.totalorder %s4057_s15, 2  ;;  %s3216_s29 = sand.u32 1, %s4045_s12  }
 0x840   : > { %s3217_s30 = scalar_lea.sflag [#allocation3], %s3216_s29 }
 0x841   : > { %p3763_p0 = pnand %p3766_p13, %p4128_p6 }
 0x843   : > { %p3764_p1 = pneg %p3763_p0 }
 0x845   : > { %4040 = dma.done.wait (%p3764_p1), %s3217_s30, 2048  }
 0x846   : > { %4042 = vsyncadd (%p3764_p1), %s3217_s30, 4294965248  ;;  %p13_p2 = scmp.ge.s32.totalorder %s4111_s18, 4   ;;  %s5816_s12 = smov %s4049_s13 }
 0x847   : > { %s5817_s13 = smov %s4053_s14  ;;  %s5818_s14 = smov %s4122_s21 }
 0x848   : > { %s5819_s15 = smov %s4111_s18  ;;  %15 = sbr.rel (!%p13_p2) target bundleno = 3 (0x3), region = 70 }
 0x84d   :  { %3222 = vsyncpa [#allocation3], 1 }
 0x84e   :  { %3224 = vsyncpa [#allocation3 + $0x1], 1 }

</bundles_post_ra>
